<compile_context>
chip_gen: v7x
topology: tpu7x:2x2x1
jax: 0.10.0
libtpu: 0.0.40
codegen_flags: <defaults>
</compile_context>

<pallas_src>
import functools

import jax
import jax.numpy as jnp
from jax import lax
from jax.experimental import pallas as pl
from jax.experimental.pallas import tpu as pltpu


def _round_up(a, b):
    return (a + b - 1) // b * b


def _pow_static_int(base, exponent):
    """base ** exponent for a static non-negative integer (VPU multiplies)."""
    if exponent == 0:
        return jnp.ones_like(base)
    out = base
    for _ in range(exponent - 1):
        out = out * base
    return out


def _pow_k(base, k):
    ik = int(round(k))
    if abs(float(ik) - float(k)) < 1e-12 and ik >= 0:
        return _pow_static_int(base, ik)
    # TODO(synk): non-integer k falls back to the transcendental pow (EUP) path.
    return base ** k


def _weight2(dist, r, inv_r, k):
    # torch: 1 if d < r/2 ; (1 - ((2d - r)/r)^2)^k if r/2 <= d < r ; else 0
    t = 2.0 * dist * inv_r - 1.0
    base = jnp.maximum(1.0 - t * t, 0.0)
    mid = jnp.where((dist >= 0.5 * r) & (dist < r), _pow_k(base, k), 0.0)
    return jnp.where(dist < 0.5 * r, 1.0, mid)


def _rowmask_kernel(params_ref, x_ref, z_ref, o_ref, *, m_real):
    """Pre-pass (used only when m is tiled): o[i] = any_j ||x_i - z_j|| <= r0."""
    f32 = jnp.float32
    mt = pl.program_id(1)
    tm = z_ref.shape[0]

    @pl.when(mt == 0)
    def _init():
        o_ref[...] = jnp.zeros_like(o_ref)

    r0_sq = params_ref[0]
    x = x_ref[...]
    z = z_ref[...]
    xx = jnp.sum(x * x, axis=1, keepdims=True)                       # (tn, 1)
    zz = jnp.sum(z * z, axis=1, keepdims=True)                       # (tm, 1)
    xz = lax.dot_general(x, z, (((1,), (1,)), ((), ())),
                         preferred_element_type=f32)                 # (tn, tm)
    d2 = jnp.maximum(xx + zz.T - 2.0 * xz, 0.0)

    col_ids = mt * tm + lax.broadcasted_iota(jnp.int32, (1, tm), 1)
    hit = (d2 <= r0_sq) & (col_ids < m_real)
    any_hit = jnp.max(jnp.where(hit, 1.0, 0.0), axis=1, keepdims=True)
    o_ref[...] = jnp.maximum(o_ref[...], any_hit)


def _mf_kernel(params_ref, *refs, k, n_real, m_real, external_mask, accum_dtype):
    """grid = (m_tile ['parallel'], phase in {0: mu stats, 1: beta stats}, n_tile)."""
    if external_mask:
        (rowmask_ref, x_ref, z_ref, o_ref,
         sum_ref, acc_ref, u_ref, cstat_ref) = refs
    else:
        (x_ref, z_ref, o_ref,
         sum_ref, acc_ref, u_ref, cstat_ref) = refs
        rowmask_ref = None

    f32 = jnp.float32
    mt = pl.program_id(0)
    phase = pl.program_id(1)
    nt = pl.program_id(2)
    n_tiles = pl.num_programs(2)

    tn = x_ref.shape[0]
    tm = z_ref.shape[0]

    # Radii read once per grid step; derived scalars are cheap scalar-unit work.
    r0_sq = params_ref[0]
    r1 = params_ref[1]
    r2 = params_ref[2]
    inv_r0_sq = 1.0 / r0_sq
    inv_r1 = 1.0 / r1
    inv_r2 = 1.0 / r2

    x = x_ref[...]                                                   # (tn, P)
    z = z_ref[...]                                                   # (tm, P)

    # -------- per-m-tile one-time init (first grid step of each m tile) -------
    @pl.when((phase == 0) & (nt == 0))
    def _init():
        sum_ref[...] = jnp.zeros_like(sum_ref)
        acc_ref[...] = jnp.zeros_like(acc_ref)
        zz = jnp.sum(z * z, axis=1, keepdims=True)                   # (tm, 1)
        cstat_ref[3:4, :] = zz.T                                     # ||Z_j||^2
        col_ids = mt * tm + lax.broadcasted_iota(jnp.int32, (1, tm), 1)
        cstat_ref[4:5, :] = jnp.where(col_ids < m_real, 1.0, 0.0)    # col validity

    zz_row = cstat_ref[3:4, :]                                       # (1, tm)

    # Validity of this X tile's rows (guards the zero padding of n).
    row_ids = nt * tn + lax.broadcasted_iota(jnp.int32, (tn, 1), 0)
    keep_row = row_ids < n_real                                      # (tn, 1) bool

    # Squared pairwise distances for this tile (shared by both phases); the
    # cdist sqrt is never materialized for weight1 / the row mask.  This
    # product must stay f32 (cancellation in xx + zz - 2*xz).
    xx = jnp.sum(x * x, axis=1, keepdims=True)                       # (tn, 1)
    xz = lax.dot_general(x, z, (((1,), (1,)), ((), ())),
                         preferred_element_type=f32)                 # (tn, tm)
    d2 = jnp.maximum(xx + zz_row - 2.0 * xz, 0.0)

    # ---------------- phase 0: accumulate weight1 stats for mu ----------------
    @pl.when(phase == 0)
    def _phase0():
        base = jnp.maximum(1.0 - d2 * inv_r0_sq, 0.0)
        w1 = jnp.where((d2 < r0_sq) & keep_row, _pow_k(base, k), 0.0)
        sum_ref[...] += jnp.sum(w1, axis=0, keepdims=True)           # (1, tm)
        # Keep this accumulation in f32: mu feeds U = Z - mu which is strongly
        # amplified into dist_u / the dv_sq sign decision.
        acc_ref[...] += lax.dot_general(w1, x, (((0,), (0,)), ((), ())),
                                        preferred_element_type=f32)  # (tm, P)

    # ------------- phase 1: finalize mu, accumulate beta stats ---------------
    @pl.when(phase == 1)
    def _phase1():
        @pl.when(nt == 0)
        def _finalize_mu():
            s_col = sum_ref[...].T                                   # (tm, 1)
            pos = s_col > 0.0
            inv_s = jnp.where(pos, 1.0 / s_col, 0.0)                 # per-col recip
            mu = jnp.where(pos, acc_ref[...] * inv_s, z)             # mu[nan] <- Z
            u = z - mu
            u_ref[...] = u
            u2 = jnp.sum(u * u, axis=1, keepdims=True)               # ||U_j||^2
            zu = jnp.sum(z * u, axis=1, keepdims=True)               # <Z_j, U_j>
            cstat_ref[0:1, :] = zu.T
            cstat_ref[1:2, :] = u2.T
            cstat_ref[2:3, :] = jnp.sqrt(u2).T                       # ||U_j||
            # Reuse the phase-0 accumulators for the beta statistics.
            sum_ref[...] = jnp.zeros_like(sum_ref)
            acc_ref[...] = jnp.zeros_like(acc_ref)

        u = u_ref[...]
        zu_row = cstat_ref[0:1, :]
        u2_row = cstat_ref[1:2, :]
        su_row = cstat_ref[2:3, :]

        # c_ij = <X_i - Z_j, U_j>   (kept f32: feeds the dv_sq cancellation)
        c = lax.dot_general(x, u, (((1,), (1,)), ((), ())),
                            preferred_element_type=f32) - zu_row     # (tn, tm)
        du_sq = (c * c) * u2_row
        dv_sq = d2 - du_sq
        # torch: sqrt of a negative value -> NaN -> weight 0.  Mask explicitly.
        ortho_ok = dv_sq >= 0.0
        dist_v = jnp.sqrt(jnp.maximum(dv_sq, 0.0))                   # one (n,m) sqrt
        dist_u = jnp.abs(c) * su_row

        # torch keeps only X rows with at least one (real) Z within r0.
        if external_mask:
            row_hit = rowmask_ref[...] > 0.0                         # (tn, 1)
        else:
            col_valid = cstat_ref[4:5, :]
            row_hit = jnp.any((d2 <= r0_sq) & (col_valid > 0.0),
                              axis=1, keepdims=True)
        gate = keep_row & row_hit

        beta = jnp.where(ortho_ok & gate,
                         _weight2(dist_v, r1, inv_r1, k)
                         * _weight2(dist_u, r2, inv_r2, k),
                         0.0)
        sum_ref[...] += jnp.sum(beta, axis=0, keepdims=True)
        # bf16 MXU path for the final weighted sum (f32 accumulate).
        acc_ref[...] += lax.dot_general(beta.astype(accum_dtype),
                                        x.astype(accum_dtype),
                                        (((0,), (0,)), ((), ())),
                                        preferred_element_type=f32)

        @pl.when(nt == n_tiles - 1)
        def _finalize_out():
            s_col = sum_ref[...].T
            pos = s_col > 0.0
            inv_s = jnp.where(pos, 1.0 / s_col, 0.0)
            o_ref[...] = jnp.where(pos, acc_ref[...] * inv_s, z)     # e_Z[nan] <- Z


def mf_forward(X, Z, r0, r1, r2, r0_init, r1_init, r2_init, k=3.0,
               block_n=512, block_m=None, accum_dtype=jnp.bfloat16):
    """JAX/Pallas equivalent of MF.forward(Z) with sample data X."""
    per_sample_shape = Z.shape[1:]
    is_pic = len(per_sample_shape) > 1

    Xf = X.reshape(X.shape[0], -1).astype(jnp.float32)
    Zf = Z.reshape(Z.shape[0], -1).astype(jnp.float32)
    n, p = Xf.shape
    m, _ = Zf.shape

    # Parameter clamping from MF.forward (reset to 10x the init if exceeded).
    r0 = min(float(r0), float(r0_init) * 10.0)
    r1 = min(float(r1), float(r1_init) * 10.0)
    r2 = min(float(r2), float(r2_init) * 10.0)
    params = jnp.asarray([r0 * r0, r1, r2], dtype=jnp.float32)

    # Lane/sublane friendly padding (neutralized in-kernel with masks).
    P = _round_up(p, 128)
    M = _round_up(m, 128)

    # ---------------- generation-aware VMEM budget ----------------
    try:
        vmem_cap = int(pltpu.get_tpu_info().vmem_capacity_bytes)
    except Exception:  # pragma: no cover - conservative default (v7x per-TC)
        vmem_cap = 64 * 1024 * 1024
    vmem_budget = (vmem_cap * 7) // 10     # leave ~30% for compiler scratch/spills

    # ---------------- m tiling ----------------
    min_x_bytes = 2 * 256 * P * 4          # room for at least TN=256, double buffered
    if block_m is not None:
        TM = min(_round_up(int(block_m), 128), M)
    else:
        TM = M
        # Shrink TM until Z + e_Z + acc + U (single-buffered) fit the budget.
        while TM > 128 and 4 * TM * P * 4 + min_x_bytes > vmem_budget:
            TM -= 128
        if TM == M and M >= 2048:
            # v7x megacore: split m over the two TensorCores.  Per-X-byte MXU
            # intensity stays >= 1024 MACs, so the extra X pass stays hidden.
            TM = _round_up(M // 2, 128)
    M_pad = _round_up(M, TM)
    m_tiles = M_pad // TM
    external_mask = m_tiles > 1

    # ---------------- n tiling ----------------
    x_buffers = 3 if TM <= 256 else 2      # deeper X pipeline when memory-bound
    fixed_bytes = 4 * TM * P * 4 + 64 * TM * 4 + 4096
    row_bytes = x_buffers * P * 4
    avail = max(vmem_budget - fixed_bytes, 8 * row_bytes)
    tn_cap = max((avail // row_bytes) // 8 * 8, 8)
    block_n = _round_up(max(int(block_n), 8), 8)
    TN = int(min(block_n, _round_up(n, 8), tn_cap))
    N = _round_up(n, TN)
    n_tiles = N // TN

    Xp = jnp.pad(Xf, ((0, N - n), (0, P - p)))
    Zp = jnp.pad(Zf, ((0, M_pad - m), (0, P - p)))

    need_worst = (6 * TM * P + x_buffers * TN * P + 64 * TM) * 4 + (1 << 20)
    vmem_limit = int(max(32 * 1024 * 1024,
                         min(vmem_cap - 4 * 1024 * 1024,
                             need_worst + 16 * 1024 * 1024)))

    # ---------------- optional row-mask pre-pass (m tiled only) ----------------
    rowmask = None
    if external_mask:
        rowmask = pl.pallas_call(
            functools.partial(_rowmask_kernel, m_real=m),
            out_shape=jax.ShapeDtypeStruct((N, 1), jnp.float32),
            grid_spec=pltpu.PrefetchScalarGridSpec(
                num_scalar_prefetch=0,
                grid=(n_tiles, m_tiles),
                in_specs=[
                    pl.BlockSpec(memory_space=pltpu.MemorySpace.SMEM),   # radii
                    pl.BlockSpec((TN, P), lambda nt, mt: (nt, 0)),       # X tile
                    pl.BlockSpec((TM, P), lambda nt, mt: (mt, 0)),       # Z tile
                ],
                out_specs=pl.BlockSpec((TN, 1), lambda nt, mt: (nt, 0)),
            ),
            compiler_params=pltpu.CompilerParams(
                dimension_semantics=("parallel", "arbitrary"),
                vmem_limit_bytes=vmem_limit),
        )(params, Xp, Zp)

    cost = pl.CostEstimate(
        flops=int(10 * N * M_pad * P),        # 5 (TN,TM,P) MXU products per (mt,nt)
        transcendentals=int(N * M_pad),       # one sqrt per pair
        bytes_accessed=int(4 * (2 * m_tiles * N * P + 3 * M_pad * P)),
    )

    def _main_call(use_hints):
        def spec(shape, index_map, buffers=None):
            if use_hints and buffers is not None and hasattr(pl, "Buffered"):
                try:
                    return pl.BlockSpec(shape, index_map,
                                        pipeline_mode=pl.Buffered(buffers))
                except TypeError:  # pragma: no cover - older BlockSpec signature
                    pass
            return pl.BlockSpec(shape, index_map)

        x_buf_hint = x_buffers if x_buffers != 2 else None

        in_specs = [pl.BlockSpec(memory_space=pltpu.MemorySpace.SMEM)]  # radii
        args = [params]
        if external_mask:
            in_specs.append(pl.BlockSpec((TN, 1), lambda mt, ph, nt: (nt, 0)))
            args.append(rowmask)
        in_specs += [
            spec((TN, P), lambda mt, ph, nt: (nt, 0), buffers=x_buf_hint),  # X tile
            spec((TM, P), lambda mt, ph, nt: (mt, 0), buffers=1),           # Z resident
        ]
        args += [Xp, Zp]

        return pl.pallas_call(
            functools.partial(_mf_kernel, k=float(k), n_real=n, m_real=m,
                              external_mask=external_mask,
                              accum_dtype=accum_dtype),
            out_shape=jax.ShapeDtypeStruct((M_pad, P), jnp.float32),
            grid_spec=pltpu.PrefetchScalarGridSpec(
                num_scalar_prefetch=0,
                grid=(m_tiles, 2, n_tiles),     # (m tile, phase, n tile)
                in_specs=in_specs,
                out_specs=spec((TM, P), lambda mt, ph, nt: (mt, 0), buffers=1),
                scratch_shapes=[
                    pltpu.VMEM((1, TM), jnp.float32),   # column sums (w1 / beta)
                    pltpu.VMEM((TM, P), jnp.float32),   # weighted-X accumulator
                    pltpu.VMEM((TM, P), jnp.float32),   # U = Z - mu
                    pltpu.VMEM((8, TM), jnp.float32),   # hoisted per-column stats
                ],
            ),
            compiler_params=pltpu.CompilerParams(
                dimension_semantics=("parallel", "arbitrary", "arbitrary"),
                vmem_limit_bytes=vmem_limit),
            cost_estimate=cost,
        )(*args)

    e_z = None
    last_err = None
    for use_hints in (True, False):
        try:
            e_z = _main_call(use_hints)
            break
        except Exception as err:  # pragma: no cover - fallback for older jax
            last_err = err
    if e_z is None:
        raise last_err

    e_z = e_z[:m, :p]
    if is_pic:
        e_z = e_z.reshape(m, *per_sample_shape)
    return e_z


def mf_reference(X, Z, r0, r1, r2, k=3.0):
    """Straightforward pure-JAX translation of the torch module (validation)."""
    per_sample_shape = Z.shape[1:]
    Xf = X.reshape(X.shape[0], -1).astype(jnp.float32)
    Zf = Z.reshape(Z.shape[0], -1).astype(jnp.float32)
    hi = lax.Precision.HIGHEST

    def w1_fn(dist, r):
        base = jnp.maximum(1.0 - (dist / r) ** 2, 0.0)
        return jnp.where(dist < r, base ** k, 0.0)

    def w2_fn(dist, r):
        base = jnp.maximum(1.0 - ((2.0 * dist - r) / r) ** 2, 0.0)
        mid = jnp.where((dist >= 0.5 * r) & (dist < r), base ** k, 0.0)
        return jnp.where(dist < 0.5 * r, 1.0, mid)

    xx = jnp.sum(Xf * Xf, axis=1, keepdims=True)
    zz = jnp.sum(Zf * Zf, axis=1, keepdims=True)
    xz = jnp.dot(Xf, Zf.T, precision=hi)
    dist = jnp.sqrt(jnp.maximum(xx + zz.T - 2.0 * xz, 0.0))

    row_mask = jnp.any(dist <= r0, axis=1, keepdims=True).astype(jnp.float32)

    a = w1_fn(dist, r0)
    a_sum = jnp.sum(a, axis=0, keepdims=True)
    mu = jnp.dot(a.T, Xf, precision=hi) / a_sum.T
    mu = jnp.where(jnp.isnan(mu), Zf, mu)

    U = Zf - mu
    u2 = jnp.sum(U * U, axis=1, keepdims=True)
    zu = jnp.sum(Zf * U, axis=1, keepdims=True)
    c = jnp.dot(Xf, U.T, precision=hi) - zu.T
    du_sq = (c * c) * u2.T
    dist_u = jnp.sqrt(du_sq)
    dist_v = jnp.sqrt(dist * dist - du_sq)      # NaN -> weight 0, as in torch

    beta = w2_fn(dist_v, r1) * w2_fn(dist_u, r2) * row_mask
    b_sum = jnp.sum(beta, axis=0, keepdims=True)
    e_z = jnp.dot(beta.T, Xf, precision=hi) / b_sum.T
    e_z = jnp.where(jnp.isnan(e_z), Zf, e_z)

    if len(per_sample_shape) > 1:
        e_z = e_z.reshape(Zf.shape[0], *per_sample_shape)
    return e_z


if __name__ == "__main__":
    key = jax.random.PRNGKey(0)
    kx, kz, kx2, kz2 = jax.random.split(key, 4)

    # ---- Case 1: "Is_pic" inputs (C, H, W per sample), single m tile -------
    n, m, C, H, W = 64, 16, 2, 4, 4
    X = jax.random.normal(kx, (n, C, H, W), dtype=jnp.float32)
    Z = jax.random.normal(kz, (m, C, H, W), dtype=jnp.float32)
    # r2 below the minimum pairwise distance keeps the dv_sq<0 discontinuity of
    # the torch formulation weightless, so kernel vs reference stay comparable.
    r0, r1, r2, k = 10.0, 12.0, 5.0, 3.0

    ref = mf_reference(X, Z, r0, r1, r2, k=k)

    # Default path (bf16 accumulation of beta^T X) -> slightly looser tolerance.
    out = mf_forward(X, Z, r0, r1, r2, r0, r1, r2, k=k, block_n=32)
    out = jax.block_until_ready(out)
    assert out.shape == (m, C, H, W), out.shape
    assert bool(jnp.all(jnp.isfinite(out)))
    err = float(jnp.max(jnp.abs(out - ref)))
    assert bool(jnp.allclose(out, ref, atol=1e-2, rtol=1e-2)), err

    # Full f32 accumulation -> tight tolerance (matmul algorithm differences only).
    out32 = mf_forward(X, Z, r0, r1, r2, r0, r1, r2, k=k, block_n=32,
                       accum_dtype=jnp.float32)
    out32 = jax.block_until_ready(out32)
    err32 = float(jnp.max(jnp.abs(out32 - ref)))
    assert bool(jnp.allclose(out32, ref, atol=5e-3, rtol=5e-3)), err32

    # ---- Case 2: flat samples, forced m tiling (2 m tiles) -----------------
    # Exercises the row-mask pre-pass + the megacore-parallel m axis.
    n2, m2, p2 = 96, 160, 24
    X2 = jax.random.normal(kx2, (n2, p2), dtype=jnp.float32)
    Z2 = jax.random.normal(kz2, (m2, p2), dtype=jnp.float32)
    r0b, r1b, r2b = 9.0, 10.0, 4.0
    ref2 = mf_reference(X2, Z2, r0b, r1b, r2b, k=k)
    out2 = mf_forward(X2, Z2, r0b, r1b, r2b, r0b, r1b, r2b, k=k,
                      block_n=64, block_m=128, accum_dtype=jnp.float32)
    out2 = jax.block_until_ready(out2)
    assert out2.shape == (m2, p2), out2.shape
    assert bool(jnp.all(jnp.isfinite(out2)))
    err2 = float(jnp.max(jnp.abs(out2 - ref2)))
    assert bool(jnp.allclose(out2, ref2, atol=5e-3, rtol=5e-3)), err2

    print("KERNEL_OK")
</pallas_src>

<mosaic_0001>
module attributes {stable_mosaic.version = 11 : i64} {
  func.func @_mf_kernel(%arg0: i32, %arg1: i32, %arg2: i32, %arg3: memref<3xf32, #tpu.memory_space<smem>>, %arg4: memref<32x128xf32, #tpu.memory_space<vmem>>, %arg5: memref<128x128xf32, #tpu.memory_space<vmem>>, %arg6: memref<128x128xf32, #tpu.memory_space<vmem>>, %arg7: memref<1x128xf32, #tpu.memory_space<vmem>>, %arg8: memref<128x128xf32, #tpu.memory_space<vmem>>, %arg9: memref<128x128xf32, #tpu.memory_space<vmem>>, %arg10: memref<8x128xf32, #tpu.memory_space<vmem>>) attributes {dimension_semantics = [#tpu.dimension_semantics<parallel>, #tpu.dimension_semantics<arbitrary>, #tpu.dimension_semantics<arbitrary>], iteration_bounds = array<i64: 1, 2, 2>, scalar_prefetch = 0 : i64, scratch_operands = 4 : i64, tpu.core_type = #tpu.core_type<tc>, window_params = [{transform_indices = @transform_0, window_bounds = array<i64: 3>}, {transform_indices = @transform_1, window_bounds = array<i64: 32, 128>}, {transform_indices = @transform_2, window_bounds = array<i64: 128, 128>}, {transform_indices = @transform_3, window_bounds = array<i64: 128, 128>}]} {
    %c0 = arith.constant 0 : index
    %0 = memref.load %arg3[%c0] : memref<3xf32, #tpu.memory_space<smem>>
    %c1 = arith.constant 1 : index
    %1 = memref.load %arg3[%c1] : memref<3xf32, #tpu.memory_space<smem>>
    %c2 = arith.constant 2 : index
    %2 = memref.load %arg3[%c2] : memref<3xf32, #tpu.memory_space<smem>>
    %cst = arith.constant 1.000000e+00 : f32
    %3 = arith.divf %cst, %0 : f32
    %cst_0 = arith.constant 1.000000e+00 : f32
    %4 = arith.divf %cst_0, %1 : f32
    %cst_1 = arith.constant 1.000000e+00 : f32
    %5 = arith.divf %cst_1, %2 : f32
    %c0_2 = arith.constant 0 : index
    %c0_3 = arith.constant 0 : index
    %6 = vector.load %arg4[%c0_2, %c0_3] : memref<32x128xf32, #tpu.memory_space<vmem>>, vector<32x128xf32>
    %c0_4 = arith.constant 0 : index
    %c0_5 = arith.constant 0 : index
    %7 = vector.load %arg5[%c0_4, %c0_5] : memref<128x128xf32, #tpu.memory_space<vmem>>, vector<128x128xf32>
    %c0_i32 = arith.constant 0 : i32
    %8 = arith.cmpi eq, %arg1, %c0_i32 : i32
    %c0_i32_6 = arith.constant 0 : i32
    %9 = arith.cmpi eq, %arg2, %c0_i32_6 : i32
    %10 = arith.andi %8, %9 : i1
    %11 = arith.extui %10 : i1 to i32
    %c0_i32_7 = arith.constant 0 : i32
    %12 = arith.cmpi ne, %11, %c0_i32_7 : i32
    scf.if %12 {
      %cst_16 = arith.constant 0.000000e+00 : f32
      %38 = vector.broadcast %cst_16 : f32 to vector<1x128xf32>
      %c0_17 = arith.constant 0 : index
      %c0_18 = arith.constant 0 : index
      %39 = vector.load %arg7[%c0_17, %c0_18] : memref<1x128xf32, #tpu.memory_space<vmem>>, vector<1x128xf32>
      tpu.vector_store %arg7[%c0_17, %c0_18], %38 {strides = array<i32>} : memref<1x128xf32, #tpu.memory_space<vmem>>, vector<1x128xf32>,
      %cst_19 = arith.constant 0.000000e+00 : f32
      %40 = vector.broadcast %cst_19 : f32 to vector<128x128xf32>
      %c0_20 = arith.constant 0 : index
      %c0_21 = arith.constant 0 : index
      %41 = vector.load %arg8[%c0_20, %c0_21] : memref<128x128xf32, #tpu.memory_space<vmem>>, vector<128x128xf32>
      tpu.vector_store %arg8[%c0_20, %c0_21], %40 {strides = array<i32>} : memref<128x128xf32, #tpu.memory_space<vmem>>, vector<128x128xf32>,
      %42 = arith.mulf %7, %7 : vector<128x128xf32>
      %cst_22 = arith.constant dense<0.000000e+00> : vector<128xf32>
      %43 = vector.multi_reduction <add>, %42, %cst_22 [1] : vector<128x128xf32> to vector<128xf32>
      %44 = vector.shape_cast %43 : vector<128xf32> to vector<128x1xf32>
      %45 = tpu.transpose %44, [1, 0] : vector<128x1xf32> -> vector<1x128xf32>
      %c3_23 = arith.constant 3 : index
      %c0_24 = arith.constant 0 : index
      %46 = vector.load %arg10[%c3_23, %c0_24] : memref<8x128xf32, #tpu.memory_space<vmem>>, vector<1x128xf32>
      tpu.vector_store %arg10[%c3_23, %c0_24], %45 {strides = array<i32>} : memref<8x128xf32, #tpu.memory_space<vmem>>, vector<1x128xf32>,
      %c128_i32 = arith.constant 128 : i32
      %47 = arith.muli %arg0, %c128_i32 : i32
      %48 = tpu.iota {dimensions = array<i32: 1>} : vector<1x128xi32>
      %49 = vector.broadcast %47 : i32 to vector<1x128xi32>
      %50 = arith.addi %49, %48 : vector<1x128xi32>
      %c16_i32 = arith.constant 16 : i32
      %51 = vector.broadcast %c16_i32 : i32 to vector<1x128xi32>
      %52 = arith.cmpi slt, %50, %51 : vector<1x128xi32>
      %cst_25 = arith.constant 1.000000e+00 : f32
      %cst_26 = arith.constant 0.000000e+00 : f32
      %53 = vector.broadcast %cst_25 : f32 to vector<1x128xf32>
      %54 = vector.broadcast %cst_26 : f32 to vector<1x128xf32>
      %55 = arith.select %52, %53, %54 : vector<1x128xi1>, vector<1x128xf32>
      %c4 = arith.constant 4 : index
      %c0_27 = arith.constant 0 : index
      %56 = vector.load %arg10[%c4, %c0_27] : memref<8x128xf32, #tpu.memory_space<vmem>>, vector<1x128xf32>
      tpu.vector_store %arg10[%c4, %c0_27], %55 {strides = array<i32>} : memref<8x128xf32, #tpu.memory_space<vmem>>, vector<1x128xf32>,
    } else {
    }
    %c3 = arith.constant 3 : index
    %c0_8 = arith.constant 0 : index
    %13 = vector.load %arg10[%c3, %c0_8] : memref<8x128xf32, #tpu.memory_space<vmem>>, vector<1x128xf32>
    %c32_i32 = arith.constant 32 : i32
    %14 = arith.muli %arg2, %c32_i32 : i32
    %15 = tpu.iota {dimensions = array<i32: 0>} : vector<32x1xi32>
    %16 = vector.broadcast %14 : i32 to vector<32x1xi32>
    %17 = arith.addi %16, %15 : vector<32x1xi32>
    %c64_i32 = arith.constant 64 : i32
    %18 = vector.broadcast %c64_i32 : i32 to vector<32x1xi32>
    %19 = arith.cmpi slt, %17, %18 : vector<32x1xi32>
    %20 = arith.mulf %6, %6 : vector<32x128xf32>
    %cst_9 = arith.constant dense<0.000000e+00> : vector<32xf32>
    %21 = vector.multi_reduction <add>, %20, %cst_9 [1] : vector<32x128xf32> to vector<32xf32>
    %22 = vector.shape_cast %21 : vector<32xf32> to vector<32x1xf32>
    %cst_10 = arith.constant dense<0.000000e+00> : vector<32x128xf32>
    %23 = tpu.matmul %6, %7, %cst_10 {dimension_numbers = #tpu.dot_dimension_numbers<[1], [1], [0], [0], [0, 0, 1, 0], [], []>} : vector<32x128xf32>, vector<128x128xf32>, vector<32x128xf32> -> vector<32x128xf32>
    %24 = vector.broadcast %22 : vector<32x1xf32> to vector<32x128xf32>
    %25 = vector.broadcast %13 : vector<1x128xf32> to vector<32x128xf32>
    %26 = arith.addf %24, %25 : vector<32x128xf32>
    %cst_11 = arith.constant 2.000000e+00 : f32
    %27 = vector.broadcast %cst_11 : f32 to vector<32x128xf32>
    %28 = arith.mulf %27, %23 : vector<32x128xf32>
    %29 = arith.subf %26, %28 : vector<32x128xf32>
    %cst_12 = arith.constant 0.000000e+00 : f32
    %30 = vector.broadcast %cst_12 : f32 to vector<32x128xf32>
    %31 = arith.maximumf %29, %30 : vector<32x128xf32>
    %c0_i32_13 = arith.constant 0 : i32
    %32 = arith.cmpi eq, %arg1, %c0_i32_13 : i32
    %33 = arith.extui %32 : i1 to i32
    %c0_i32_14 = arith.constant 0 : i32
    %34 = arith.cmpi ne, %33, %c0_i32_14 : i32
    scf.if %34 {
      %38 = vector.broadcast %3 : f32 to vector<32x128xf32>
      %39 = arith.mulf %31, %38 : vector<32x128xf32>
      %cst_16 = arith.constant 1.000000e+00 : f32
      %40 = vector.broadcast %cst_16 : f32 to vector<32x128xf32>
      %41 = arith.subf %40, %39 : vector<32x128xf32>
      %cst_17 = arith.constant 0.000000e+00 : f32
      %42 = vector.broadcast %cst_17 : f32 to vector<32x128xf32>
      %43 = arith.maximumf %41, %42 : vector<32x128xf32>
      %44 = vector.broadcast %0 : f32 to vector<32x128xf32>
      %45 = arith.cmpf olt, %31, %44 : vector<32x128xf32>
      %46 = vector.broadcast %19 : vector<32x1xi1> to vector<32x128xi1>
      %47 = arith.andi %45, %46 : vector<32x128xi1>
      %48 = arith.mulf %43, %43 : vector<32x128xf32>
      %49 = arith.mulf %48, %43 : vector<32x128xf32>
      %cst_18 = arith.constant 0.000000e+00 : f32
      %50 = vector.broadcast %cst_18 : f32 to vector<32x128xf32>
      %51 = arith.select %47, %49, %50 : vector<32x128xi1>, vector<32x128xf32>
      %c0_19 = arith.constant 0 : index
      %c0_20 = arith.constant 0 : index
      %52 = vector.load %arg7[%c0_19, %c0_20] : memref<1x128xf32, #tpu.memory_space<vmem>>, vector<1x128xf32>
      %cst_21 = arith.constant dense<0.000000e+00> : vector<128xf32>
      %53 = vector.multi_reduction <add>, %51, %cst_21 [0] : vector<32x128xf32> to vector<128xf32>
      %54 = vector.shape_cast %53 : vector<128xf32> to vector<1x128xf32>
      %55 = arith.addf %52, %54 : vector<1x128xf32>
      %c0_22 = arith.constant 0 : index
      %c0_23 = arith.constant 0 : index
      %56 = vector.load %arg7[%c0_22, %c0_23] : memref<1x128xf32, #tpu.memory_space<vmem>>, vector<1x128xf32>
      tpu.vector_store %arg7[%c0_22, %c0_23], %55 {strides = array<i32>} : memref<1x128xf32, #tpu.memory_space<vmem>>, vector<1x128xf32>,
      %c0_24 = arith.constant 0 : index
      %c0_25 = arith.constant 0 : index
      %57 = vector.load %arg8[%c0_24, %c0_25] : memref<128x128xf32, #tpu.memory_space<vmem>>, vector<128x128xf32>
      %cst_26 = arith.constant dense<0.000000e+00> : vector<128x128xf32>
      %58 = tpu.matmul %51, %6, %cst_26 {dimension_numbers = #tpu.dot_dimension_numbers<[0], [0], [1], [1], [0, 1, 1, 1], [], []>} : vector<32x128xf32>, vector<32x128xf32>, vector<128x128xf32> -> vector<128x128xf32>
      %59 = arith.addf %57, %58 : vector<128x128xf32>
      %c0_27 = arith.constant 0 : index
      %c0_28 = arith.constant 0 : index
      %60 = vector.load %arg8[%c0_27, %c0_28] : memref<128x128xf32, #tpu.memory_space<vmem>>, vector<128x128xf32>
      tpu.vector_store %arg8[%c0_27, %c0_28], %59 {strides = array<i32>} : memref<128x128xf32, #tpu.memory_space<vmem>>, vector<128x128xf32>,
    } else {
    }
    %c1_i32 = arith.constant 1 : i32
    %35 = arith.cmpi eq, %arg1, %c1_i32 : i32
    %36 = arith.extui %35 : i1 to i32
    %c0_i32_15 = arith.constant 0 : i32
    %37 = arith.cmpi ne, %36, %c0_i32_15 : i32
    scf.if %37 {
      %c0_i32_16 = arith.constant 0 : i32
      %38 = arith.cmpi eq, %arg2, %c0_i32_16 : i32
      %39 = arith.extui %38 : i1 to i32
      %c0_i32_17 = arith.constant 0 : i32
      %40 = arith.cmpi ne, %39, %c0_i32_17 : i32
      scf.if %40 {
        %c0_64 = arith.constant 0 : index
        %c0_65 = arith.constant 0 : index
        %146 = vector.load %arg7[%c0_64, %c0_65] : memref<1x128xf32, #tpu.memory_space<vmem>>, vector<1x128xf32>
        %147 = tpu.transpose %146, [1, 0] : vector<1x128xf32> -> vector<128x1xf32>
        %cst_66 = arith.constant 0.000000e+00 : f32
        %148 = vector.broadcast %cst_66 : f32 to vector<128x1xf32>
        %149 = arith.cmpf ogt, %147, %148 : vector<128x1xf32>
        %cst_67 = arith.constant 1.000000e+00 : f32
        %150 = vector.broadcast %cst_67 : f32 to vector<128x1xf32>
        %151 = arith.divf %150, %147 : vector<128x1xf32>
        %cst_68 = arith.constant 0.000000e+00 : f32
        %152 = vector.broadcast %cst_68 : f32 to vector<128x1xf32>
        %153 = arith.select %149, %151, %152 : vector<128x1xi1>, vector<128x1xf32>
        %c0_69 = arith.constant 0 : index
        %c0_70 = arith.constant 0 : index
        %154 = vector.load %arg8[%c0_69, %c0_70] : memref<128x128xf32, #tpu.memory_space<vmem>>, vector<128x128xf32>
        %155 = vector.broadcast %153 : vector<128x1xf32> to vector<128x128xf32>
        %156 = arith.mulf %154, %155 : vector<128x128xf32>
        %157 = vector.shape_cast %149 : vector<128x1xi1> to vector<128x1xi1>
        %158 = vector.broadcast %157 : vector<128x1xi1> to vector<128x128xi1>
        %159 = arith.select %158, %156, %7 : vector<128x128xi1>, vector<128x128xf32>
        %160 = arith.subf %7, %159 : vector<128x128xf32>
        %c0_71 = arith.constant 0 : index
        %c0_72 = arith.constant 0 : index
        %161 = vector.load %arg9[%c0_71, %c0_72] : memref<128x128xf32, #tpu.memory_space<vmem>>, vector<128x128xf32>
        tpu.vector_store %arg9[%c0_71, %c0_72], %160 {strides = array<i32>} : memref<128x128xf32, #tpu.memory_space<vmem>>, vector<128x128xf32>,
        %162 = arith.mulf %160, %160 : vector<128x128xf32>
        %cst_73 = arith.constant dense<0.000000e+00> : vector<128xf32>
        %163 = vector.multi_reduction <add>, %162, %cst_73 [1] : vector<128x128xf32> to vector<128xf32>
        %164 = vector.shape_cast %163 : vector<128xf32> to vector<128x1xf32>
        %165 = arith.mulf %7, %160 : vector<128x128xf32>
        %cst_74 = arith.constant dense<0.000000e+00> : vector<128xf32>
        %166 = vector.multi_reduction <add>, %165, %cst_74 [1] : vector<128x128xf32> to vector<128xf32>
        %167 = vector.shape_cast %166 : vector<128xf32> to vector<128x1xf32>
        %168 = tpu.transpose %167, [1, 0] : vector<128x1xf32> -> vector<1x128xf32>
        %c0_75 = arith.constant 0 : index
        %c0_76 = arith.constant 0 : index
        %169 = vector.load %arg10[%c0_75, %c0_76] : memref<8x128xf32, #tpu.memory_space<vmem>>, vector<1x128xf32>
        tpu.vector_store %arg10[%c0_75, %c0_76], %168 {strides = array<i32>} : memref<8x128xf32, #tpu.memory_space<vmem>>, vector<1x128xf32>,
        %170 = tpu.transpose %164, [1, 0] : vector<128x1xf32> -> vector<1x128xf32>
        %c1_77 = arith.constant 1 : index
        %c0_78 = arith.constant 0 : index
        %171 = vector.load %arg10[%c1_77, %c0_78] : memref<8x128xf32, #tpu.memory_space<vmem>>, vector<1x128xf32>
        tpu.vector_store %arg10[%c1_77, %c0_78], %170 {strides = array<i32>} : memref<8x128xf32, #tpu.memory_space<vmem>>, vector<1x128xf32>,
        %172 = math.sqrt %164 : vector<128x1xf32>
        %173 = tpu.transpose %172, [1, 0] : vector<128x1xf32> -> vector<1x128xf32>
        %c2_79 = arith.constant 2 : index
        %c0_80 = arith.constant 0 : index
        %174 = vector.load %arg10[%c2_79, %c0_80] : memref<8x128xf32, #tpu.memory_space<vmem>>, vector<1x128xf32>
        tpu.vector_store %arg10[%c2_79, %c0_80], %173 {strides = array<i32>} : memref<8x128xf32, #tpu.memory_space<vmem>>, vector<1x128xf32>,
        %cst_81 = arith.constant 0.000000e+00 : f32
        %175 = vector.broadcast %cst_81 : f32 to vector<1x128xf32>
        %c0_82 = arith.constant 0 : index
        %c0_83 = arith.constant 0 : index
        %176 = vector.load %arg7[%c0_82, %c0_83] : memref<1x128xf32, #tpu.memory_space<vmem>>, vector<1x128xf32>
        tpu.vector_store %arg7[%c0_82, %c0_83], %175 {strides = array<i32>} : memref<1x128xf32, #tpu.memory_space<vmem>>, vector<1x128xf32>,
        %cst_84 = arith.constant 0.000000e+00 : f32
        %177 = vector.broadcast %cst_84 : f32 to vector<128x128xf32>
        %c0_85 = arith.constant 0 : index
        %c0_86 = arith.constant 0 : index
        %178 = vector.load %arg8[%c0_85, %c0_86] : memref<128x128xf32, #tpu.memory_space<vmem>>, vector<128x128xf32>
        tpu.vector_store %arg8[%c0_85, %c0_86], %177 {strides = array<i32>} : memref<128x128xf32, #tpu.memory_space<vmem>>, vector<128x128xf32>,
      } else {
      }
      %c0_18 = arith.constant 0 : index
      %c0_19 = arith.constant 0 : index
      %41 = vector.load %arg9[%c0_18, %c0_19] : memref<128x128xf32, #tpu.memory_space<vmem>>, vector<128x128xf32>
      %c0_20 = arith.constant 0 : index
      %c0_21 = arith.constant 0 : index
      %42 = vector.load %arg10[%c0_20, %c0_21] : memref<8x128xf32, #tpu.memory_space<vmem>>, vector<1x128xf32>
      %c1_22 = arith.constant 1 : index
      %c0_23 = arith.constant 0 : index
      %43 = vector.load %arg10[%c1_22, %c0_23] : memref<8x128xf32, #tpu.memory_space<vmem>>, vector<1x128xf32>
      %c2_24 = arith.constant 2 : index
      %c0_25 = arith.constant 0 : index
      %44 = vector.load %arg10[%c2_24, %c0_25] : memref<8x128xf32, #tpu.memory_space<vmem>>, vector<1x128xf32>
      %cst_26 = arith.constant dense<0.000000e+00> : vector<32x128xf32>
      %45 = tpu.matmul %6, %41, %cst_26 {dimension_numbers = #tpu.dot_dimension_numbers<[1], [1], [0], [0], [0, 0, 1, 0], [], []>} : vector<32x128xf32>, vector<128x128xf32>, vector<32x128xf32> -> vector<32x128xf32>
      %46 = vector.broadcast %42 : vector<1x128xf32> to vector<32x128xf32>
      %47 = arith.subf %45, %46 : vector<32x128xf32>
      %48 = arith.mulf %47, %47 : vector<32x128xf32>
      %49 = vector.broadcast %43 : vector<1x128xf32> to vector<32x128xf32>
      %50 = arith.mulf %48, %49 : vector<32x128xf32>
      %51 = arith.subf %31, %50 : vector<32x128xf32>
      %cst_27 = arith.constant 0.000000e+00 : f32
      %52 = vector.broadcast %cst_27 : f32 to vector<32x128xf32>
      %53 = arith.cmpf oge, %51, %52 : vector<32x128xf32>
      %cst_28 = arith.constant 0.000000e+00 : f32
      %54 = vector.broadcast %cst_28 : f32 to vector<32x128xf32>
      %55 = arith.maximumf %51, %54 : vector<32x128xf32>
      %56 = math.sqrt %55 : vector<32x128xf32>
      %57 = math.absf %47 : vector<32x128xf32>
      %58 = vector.broadcast %44 : vector<1x128xf32> to vector<32x128xf32>
      %59 = arith.mulf %57, %58 : vector<32x128xf32>
      %c4 = arith.constant 4 : index
      %c0_29 = arith.constant 0 : index
      %60 = vector.load %arg10[%c4, %c0_29] : memref<8x128xf32, #tpu.memory_space<vmem>>, vector<1x128xf32>
      %61 = vector.broadcast %0 : f32 to vector<32x128xf32>
      %62 = arith.cmpf ole, %31, %61 : vector<32x128xf32>
      %cst_30 = arith.constant 0.000000e+00 : f32
      %63 = vector.broadcast %cst_30 : f32 to vector<1x128xf32>
      %64 = arith.cmpf ogt, %60, %63 : vector<1x128xf32>
      %65 = vector.broadcast %64 : vector<1x128xi1> to vector<32x128xi1>
      %66 = arith.andi %62, %65 : vector<32x128xi1>
      %cst_31 = arith.constant 1.000000e+00 : f32
      %cst_32 = arith.constant 0.000000e+00 : f32
      %67 = vector.broadcast %cst_31 : f32 to vector<32x128xf32>
      %68 = vector.broadcast %cst_32 : f32 to vector<32x128xf32>
      %69 = arith.select %66, %67, %68 : vector<32x128xi1>, vector<32x128xf32>
      %cst_33 = arith.constant dense<0xFF800000> : vector<32xf32>
      %70 = vector.multi_reduction <maximumf>, %69, %cst_33 [1] : vector<32x128xf32> to vector<32xf32>
      %cst_34 = arith.constant 0.000000e+00 : f32
      %71 = vector.broadcast %cst_34 : f32 to vector<32xf32>
      %72 = arith.cmpf ogt, %70, %71 : vector<32xf32>
      %73 = vector.shape_cast %72 : vector<32xi1> to vector<32x1xi1>
      %74 = arith.andi %19, %73 : vector<32x1xi1>
      %75 = vector.broadcast %74 : vector<32x1xi1> to vector<32x128xi1>
      %76 = arith.andi %53, %75 : vector<32x128xi1>
      %cst_35 = arith.constant 2.000000e+00 : f32
      %77 = vector.broadcast %cst_35 : f32 to vector<32x128xf32>
      %78 = arith.mulf %77, %56 : vector<32x128xf32>
      %79 = vector.broadcast %4 : f32 to vector<32x128xf32>
      %80 = arith.mulf %78, %79 : vector<32x128xf32>
      %cst_36 = arith.constant 1.000000e+00 : f32
      %81 = vector.broadcast %cst_36 : f32 to vector<32x128xf32>
      %82 = arith.subf %80, %81 : vector<32x128xf32>
      %83 = arith.mulf %82, %82 : vector<32x128xf32>
      %cst_37 = arith.constant 1.000000e+00 : f32
      %84 = vector.broadcast %cst_37 : f32 to vector<32x128xf32>
      %85 = arith.subf %84, %83 : vector<32x128xf32>
      %cst_38 = arith.constant 0.000000e+00 : f32
      %86 = vector.broadcast %cst_38 : f32 to vector<32x128xf32>
      %87 = arith.maximumf %85, %86 : vector<32x128xf32>
      %cst_39 = arith.constant 5.000000e-01 : f32
      %88 = arith.mulf %cst_39, %1 : f32
      %89 = vector.broadcast %88 : f32 to vector<32x128xf32>
      %90 = arith.cmpf oge, %56, %89 : vector<32x128xf32>
      %91 = vector.broadcast %1 : f32 to vector<32x128xf32>
      %92 = arith.cmpf olt, %56, %91 : vector<32x128xf32>
      %93 = arith.andi %90, %92 : vector<32x128xi1>
      %94 = arith.mulf %87, %87 : vector<32x128xf32>
      %95 = arith.mulf %94, %87 : vector<32x128xf32>
      %cst_40 = arith.constant 0.000000e+00 : f32
      %96 = vector.broadcast %cst_40 : f32 to vector<32x128xf32>
      %97 = arith.select %93, %95, %96 : vector<32x128xi1>, vector<32x128xf32>
      %cst_41 = arith.constant 5.000000e-01 : f32
      %98 = arith.mulf %cst_41, %1 : f32
      %99 = vector.broadcast %98 : f32 to vector<32x128xf32>
      %100 = arith.cmpf olt, %56, %99 : vector<32x128xf32>
      %cst_42 = arith.constant 1.000000e+00 : f32
      %101 = vector.broadcast %cst_42 : f32 to vector<32x128xf32>
      %102 = arith.select %100, %101, %97 : vector<32x128xi1>, vector<32x128xf32>
      %cst_43 = arith.constant 2.000000e+00 : f32
      %103 = vector.broadcast %cst_43 : f32 to vector<32x128xf32>
      %104 = arith.mulf %103, %59 : vector<32x128xf32>
      %105 = vector.broadcast %5 : f32 to vector<32x128xf32>
      %106 = arith.mulf %104, %105 : vector<32x128xf32>
      %cst_44 = arith.constant 1.000000e+00 : f32
      %107 = vector.broadcast %cst_44 : f32 to vector<32x128xf32>
      %108 = arith.subf %106, %107 : vector<32x128xf32>
      %109 = arith.mulf %108, %108 : vector<32x128xf32>
      %cst_45 = arith.constant 1.000000e+00 : f32
      %110 = vector.broadcast %cst_45 : f32 to vector<32x128xf32>
      %111 = arith.subf %110, %109 : vector<32x128xf32>
      %cst_46 = arith.constant 0.000000e+00 : f32
      %112 = vector.broadcast %cst_46 : f32 to vector<32x128xf32>
      %113 = arith.maximumf %111, %112 : vector<32x128xf32>
      %cst_47 = arith.constant 5.000000e-01 : f32
      %114 = arith.mulf %cst_47, %2 : f32
      %115 = vector.broadcast %114 : f32 to vector<32x128xf32>
      %116 = arith.cmpf oge, %59, %115 : vector<32x128xf32>
      %117 = vector.broadcast %2 : f32 to vector<32x128xf32>
      %118 = arith.cmpf olt, %59, %117 : vector<32x128xf32>
      %119 = arith.andi %116, %118 : vector<32x128xi1>
      %120 = arith.mulf %113, %113 : vector<32x128xf32>
      %121 = arith.mulf %120, %113 : vector<32x128xf32>
      %cst_48 = arith.constant 0.000000e+00 : f32
      %122 = vector.broadcast %cst_48 : f32 to vector<32x128xf32>
      %123 = arith.select %119, %121, %122 : vector<32x128xi1>, vector<32x128xf32>
      %cst_49 = arith.constant 5.000000e-01 : f32
      %124 = arith.mulf %cst_49, %2 : f32
      %125 = vector.broadcast %124 : f32 to vector<32x128xf32>
      %126 = arith.cmpf olt, %59, %125 : vector<32x128xf32>
      %cst_50 = arith.constant 1.000000e+00 : f32
      %127 = vector.broadcast %cst_50 : f32 to vector<32x128xf32>
      %128 = arith.select %126, %127, %123 : vector<32x128xi1>, vector<32x128xf32>
      %129 = arith.mulf %102, %128 : vector<32x128xf32>
      %cst_51 = arith.constant 0.000000e+00 : f32
      %130 = vector.broadcast %cst_51 : f32 to vector<32x128xf32>
      %131 = arith.select %76, %129, %130 : vector<32x128xi1>, vector<32x128xf32>
      %c0_52 = arith.constant 0 : index
      %c0_53 = arith.constant 0 : index
      %132 = vector.load %arg7[%c0_52, %c0_53] : memref<1x128xf32, #tpu.memory_space<vmem>>, vector<1x128xf32>
      %cst_54 = arith.constant dense<0.000000e+00> : vector<128xf32>
      %133 = vector.multi_reduction <add>, %131, %cst_54 [0] : vector<32x128xf32> to vector<128xf32>
      %134 = vector.shape_cast %133 : vector<128xf32> to vector<1x128xf32>
      %135 = arith.addf %132, %134 : vector<1x128xf32>
      %c0_55 = arith.constant 0 : index
      %c0_56 = arith.constant 0 : index
      %136 = vector.load %arg7[%c0_55, %c0_56] : memref<1x128xf32, #tpu.memory_space<vmem>>, vector<1x128xf32>
      tpu.vector_store %arg7[%c0_55, %c0_56], %135 {strides = array<i32>} : memref<1x128xf32, #tpu.memory_space<vmem>>, vector<1x128xf32>,
      %c0_57 = arith.constant 0 : index
      %c0_58 = arith.constant 0 : index
      %137 = vector.load %arg8[%c0_57, %c0_58] : memref<128x128xf32, #tpu.memory_space<vmem>>, vector<128x128xf32>
      %138 = arith.truncf %131 : vector<32x128xf32> to vector<32x128xbf16>
      %139 = arith.truncf %6 : vector<32x128xf32> to vector<32x128xbf16>
      %cst_59 = arith.constant dense<0.000000e+00> : vector<128x128xf32>
      %140 = tpu.matmul %138, %139, %cst_59 {dimension_numbers = #tpu.dot_dimension_numbers<[0], [0], [1], [1], [0, 1, 1, 1], [], []>} : vector<32x128xbf16>, vector<32x128xbf16>, vector<128x128xf32> -> vector<128x128xf32>
      %141 = arith.addf %137, %140 : vector<128x128xf32>
      %c0_60 = arith.constant 0 : index
      %c0_61 = arith.constant 0 : index
      %142 = vector.load %arg8[%c0_60, %c0_61] : memref<128x128xf32, #tpu.memory_space<vmem>>, vector<128x128xf32>
      tpu.vector_store %arg8[%c0_60, %c0_61], %141 {strides = array<i32>} : memref<128x128xf32, #tpu.memory_space<vmem>>, vector<128x128xf32>,
      %c1_i32_62 = arith.constant 1 : i32
      %143 = arith.cmpi eq, %arg2, %c1_i32_62 : i32
      %144 = arith.extui %143 : i1 to i32
      %c0_i32_63 = arith.constant 0 : i32
      %145 = arith.cmpi ne, %144, %c0_i32_63 : i32
      scf.if %145 {
        %c0_64 = arith.constant 0 : index
        %c0_65 = arith.constant 0 : index
        %146 = vector.load %arg7[%c0_64, %c0_65] : memref<1x128xf32, #tpu.memory_space<vmem>>, vector<1x128xf32>
        %147 = tpu.transpose %146, [1, 0] : vector<1x128xf32> -> vector<128x1xf32>
        %cst_66 = arith.constant 0.000000e+00 : f32
        %148 = vector.broadcast %cst_66 : f32 to vector<128x1xf32>
        %149 = arith.cmpf ogt, %147, %148 : vector<128x1xf32>
        %cst_67 = arith.constant 1.000000e+00 : f32
        %150 = vector.broadcast %cst_67 : f32 to vector<128x1xf32>
        %151 = arith.divf %150, %147 : vector<128x1xf32>
        %cst_68 = arith.constant 0.000000e+00 : f32
        %152 = vector.broadcast %cst_68 : f32 to vector<128x1xf32>
        %153 = arith.select %149, %151, %152 : vector<128x1xi1>, vector<128x1xf32>
        %c0_69 = arith.constant 0 : index
        %c0_70 = arith.constant 0 : index
        %154 = vector.load %arg8[%c0_69, %c0_70] : memref<128x128xf32, #tpu.memory_space<vmem>>, vector<128x128xf32>
        %155 = vector.broadcast %153 : vector<128x1xf32> to vector<128x128xf32>
        %156 = arith.mulf %154, %155 : vector<128x128xf32>
        %157 = vector.shape_cast %149 : vector<128x1xi1> to vector<128x1xi1>
        %158 = vector.broadcast %157 : vector<128x1xi1> to vector<128x128xi1>
        %159 = arith.select %158, %156, %7 : vector<128x128xi1>, vector<128x128xf32>
        %c0_71 = arith.constant 0 : index
        %c0_72 = arith.constant 0 : index
        %160 = vector.load %arg6[%c0_71, %c0_72] : memref<128x128xf32, #tpu.memory_space<vmem>>, vector<128x128xf32>
        tpu.vector_store %arg6[%c0_71, %c0_72], %159 {strides = array<i32>} : memref<128x128xf32, #tpu.memory_space<vmem>>, vector<128x128xf32>,
      } else {
      }
    } else {
    }
    return
  }
  func.func @transform_0(%arg0: i32, %arg1: i32, %arg2: i32) -> i32 {
    %c0_i32 = arith.constant 0 : i32
    %c0_i32_0 = arith.constant 0 : i32
    return %c0_i32 : i32
  }
  func.func @transform_1(%arg0: i32, %arg1: i32, %arg2: i32) -> (i32, i32) {
    %c0_i32 = arith.constant 0 : i32
    %c0_i32_0 = arith.constant 0 : i32
    return %arg2, %c0_i32 : i32, i32
  }
  func.func @transform_2(%arg0: i32, %arg1: i32, %arg2: i32) -> (i32, i32) {
    %c0_i32 = arith.constant 0 : i32
    %c0_i32_0 = arith.constant 0 : i32
    return %arg0, %c0_i32 : i32, i32
  }
  func.func @transform_3(%arg0: i32, %arg1: i32, %arg2: i32) -> (i32, i32) {
    %c0_i32 = arith.constant 0 : i32
    %c0_i32_0 = arith.constant 0 : i32
    return %arg0, %c0_i32 : i32, i32
  }
}

</mosaic_0001>

<bundles_post_ra>
// kernel: tpu_custom_call.1
= control target key start
LH: loop header
LB: loop body
LE: loop exit
PB: predicated region body
PF: predicated region fallthrough
CT: control target
= control target key end

     0   :  { %8 = vsyncpa [#allocation9], 0  ;;  %s4467_s0 = inlined_call_operand.hbm [shape: f32[3], index: 0, kind: input, shape index: {}]   ;;  %s4468_s1 = inlined_call_operand.hbm [shape: f32[64,128], index: 1, kind: input, shape index: {}]   ;;  %s4469_s2 = inlined_call_operand.hbm [shape: f32[128,128], index: 2, kind: input, shape index: {}]   ;;  %s4470_s3 = inlined_call_operand.hbm [shape: f32[128,128], index: 3, kind: output, shape index: {}]  }
   0x1   :  { %9 = vsyncpa [#allocation7], 0 }
   0x2   :  { %11 = vsyncpa [#allocation7 + $0x1], 0 }
   0x3   :  { %12 = vsyncpa [#allocation12], 0 }
   0x4   :  { %13 = vsyncpa [#allocation8], 0  ;;  %s3291_s12 = smov 0   ;;  %s3293_s13 = smov 0  }
   0x5   :  { %s3295_s14 = smov 0   ;;  %s3297_s15 = smov 0  }
   0x6   :  { %s3299_s16 = smov 0   ;;  %s3301_s17 = smov 0  }
   0x7   :  { %s3303_s18 = smov 0   ;;  %s3305_s19 = smov 0  }
   0x8 LB: > { %s4474_s20 = sadd.s32 4294967295, %s3255_s19   ;;  %p73_p0 = scmp.ne.s32.totalorder %s3235_s14, %s3231_s13  ;;  %s3255_s19 = sphi %s3305_s19, %s19_s19   ;;  %s3251_s18 = sphi %s3303_s18, %s4526_s18   ;;  %s3247_s17 = sphi %s3301_s17, %s4525_s17   ;;  %s3243_s16 = sphi %s3299_s16, %s4524_s16   ;;  %s3239_s15 = sphi %s3297_s15, %s4523_s15   ;;  %s3235_s14 = sphi %s3295_s14, %s4522_s14   ;;  %s3231_s13 = sphi %s3293_s13, %s4521_s13   ;;  %s3227_s12 = sphi %s3291_s12, %s4520_s12  }
   0x9   : > { %p74_p1 = scmp.eq.s32.totalorder %s3255_s19, 0  ;;  %p79_p2 = scmp.ne.s32.totalorder %s3231_s13, %s3227_s12 }
   0xa   : > { %p3336_p3 = scmp.eq.s32.totalorder %s4474_s20, 0  ;;  %p2500_p5 = scmp.ge.s32.totalorder %s3255_s19, 1 }
   0xb   : > { %p75_p4 = por %p74_p1, %p73_p0  ;;  %p142_p7 = scmp.lt.s32.totalorder %s3255_s19, 5 }
   0xc   : > { %s4477_s21 = scalar_select %p3336_p3, 1, 0 }
   0xd   : > { %p3343_p6 = por %p3336_p3, %p79_p2  ;;  %p3348_p8 = pnand %p2500_p5, %p142_p7 }
   0xe   : > { %p2882_p9 = scmp.lt.s32.totalorder %s3255_s19, 4  ;;  %s3257_s24 = smov [#allocation11]  }
   0xf   : > { %s4478_s22 = scalar_select %p3343_p6, 1, 0 }
  0x10   : > { %p2869_p10 = pneg %p3348_p8  ;;  %s166_s25 = sshll.u32 %s3257_s24, 4  ;;  %s3359_s25 = int_to_ptr.vmem [resolvable:$true] %s166_s25 }
  0x11   : > { %p3355_p11 = pnand %p2882_p9, %p75_p4  ;;  %s3080_s30 = scalar_lea.hbm %s4467_s0, 16 }
  0x12   : > { %p3363_p12 = pnand %p2869_p10, %p3336_p3  ;;  %p3081_p13 = scmp.ne.s32.totalorder %s4467_s0, %s3080_s30 }
  0x13   : > { %p3087_p4 = scmp.lt.u32.totalorder %s3080_s30, %s4467_s0 }
  0x14   : > { %p3082_p0 = pneg %p3363_p12 }
  0x16   : > { %p3083_p1 = pnand %p3082_p0, %p3081_p13 }
  0x18   : > { %p3084_p2 = pneg %p3083_p1 }
  0x1a   : > { %p3089_p5 = pnand %p3087_p4, %p3084_p2 }
  0x1c   : > { %3092 = shalt.err (!%p3089_p5)
}
  0x1d   : > { %s3258_s8 = smov [#allocation6]   ;;  %s3093_s24 = scalar_lea.hbm %s4469_s2, 2048 }
  0x1e   : > { %2872 = dma.hbm_to_smem (!%p3363_p12), %s4467_s0, 16, %s3258_s8, [#allocation9]  }
  0x1f   : > { %p3094_p7 = scmp.ne.s32.totalorder %s4469_s2, %s3093_s24  ;;  %p3100_p13 = scmp.lt.u32.totalorder %s3093_s24, %s4469_s2 }
  0x21   : > { %p3096_p9 = pnand %p3094_p7, %p3082_p0 }
  0x23   : > { %p3097_p10 = pneg %p3096_p9 }
  0x25   : > { %p3102_p1 = pnand %p3100_p13, %p3097_p10 }
  0x27   : > { %3105 = shalt.err (!%p3102_p1)
}
  0x28   : > { %s3106_s5 = scalar_lea.vmem %s3359_s25, 2048  ;;  %p3114_p6 = scmp.lt.s32.totalorder %s3359_s25, %s3359_s25 }
  0x29   : > { %p3107_p2 = scmp.ne.s32.totalorder %s3359_s25, %s3106_s5  ;;  %p3115_p7 = scmp.lt.s32.totalorder %s3106_s5, %s3106_s5 }
  0x2b   : > { %p3109_p4 = pnand %p3107_p2, %p3082_p0  ;;  %p3116_p9 = por %p3115_p7, %p3114_p6 }
  0x2d   : > { %p3110_p5 = pneg %p3109_p4 }
  0x2f   : > { %p3117_p3 = pnand %p3116_p9, %p3110_p5 }
  0x31   : > { %3120 = shalt.err (!%p3117_p3)
}
  0x32   : > { %s4475_s6 = smov 128   ;;  %s3260_s7 = smov 8  }
  0x33   : > { %2875 = dma.hbm_to_vmem [thread:$0]  (!%p3363_p12), %s4469_s2, 2048, %s3359_s25, [#allocation12], %s4475_s6, %s4475_s6, %s3260_s7  }
  0x34   : > { %s31_s10 = sadd.s32 1, %s3247_s17  ;;  %s34_s11 = sadd.s32 1, %s3251_s18 }
  0x35   : > { %p32_p3 = scmp.ge.s32.totalorder %s31_s10, 2  ;;  %s66_s12 = sadd.s32 1, %s3235_s14 }
  0x36   : > { %s180_s24 = sand.u32 1, %s3235_s14   ;;  %s2558_s27 = sshll.u32 %s3247_s17, 9 }
  0x37   : > { %s4528_s10 = smov (%p32_p3, %s31_s10), 0  ;;  %s4530_s11 = smov (!%p32_p3, %s34_s11), %s3251_s18 }
  0x38   : > { %s63_s28 = ssub.s32 %s3247_s17, %s4528_s10  ;;  %p36_p6 = scmp.ge.s32.totalorder %s4530_s11, 2 }
  0x39   : > { %p64_p0 = scmp.eq.s32.totalorder %s63_s28, 0  ;;  %s2504_s29 = sshll.u32 %s180_s24, 5 }
  0x3a   : > { %s4532_s11 = smov (%p36_p6, %s4530_s11), 0  ;;  %s3432_s5 = scalar_lea.hbm %s4468_s1, %s2558_s27 }
  0x3b   : > { %s3427_s30 = scalar_select %p64_p0, %s3235_s14, %s66_s12  }
  0x3c   : > { %s184_s8 = scalar_lea.vmem [#allocation10], %s2504_s29  ;;  %s3436_s20 = scalar_lea.sflag [#allocation7], %s180_s24 }
  0x3d   : > { %s191_s9 = sshll.u32 %s184_s8, 4  ;;  %s3121_s28 = scalar_lea.hbm %s3432_s5, 512  ;;  %s3434_s9 = int_to_ptr.vmem [resolvable:$true] %s191_s9 }
  0x3e   : > { %p3122_p12 = scmp.ne.s32.totalorder %s3432_s5, %s3121_s28  ;;  %p3123_p10 = pneg %p3355_p11 }
  0x3f   : > { %s3126_s25 = scalar_lea.hbm %s4468_s1, 1024  ;;  %p3127_p2 = scmp.lt.u32.totalorder %s3432_s5, %s4468_s1 }
  0x40   : > { %p3124_p13 = pnand %p3123_p10, %p3122_p12  ;;  %p3128_p4 = scmp.lt.u32.totalorder %s3126_s25, %s3121_s28 }
  0x41   : > { %p3130_p7 = scmp.lt.u32.totalorder %s3121_s28, %s3432_s5 }
  0x42   : > { %p3125_p1 = pneg %p3124_p13  ;;  %p3129_p5 = por %p3128_p4, %p3127_p2 }
  0x44   : > { %p3131_p9 = por %p3130_p7, %p3129_p5 }
  0x46   : > { %p3132_p3 = pnand %p3131_p9, %p3125_p1 }
  0x48   : > { %3135 = shalt.err (!%p3132_p3)
}
  0x49   : > { %s3136_s24 = scalar_lea.vmem %s3434_s9, 512  ;;  %s3261_s29 = smov [#allocation10]  }
  0x4a   : > { %p3137_p6 = scmp.ne.s32.totalorder %s3434_s9, %s3136_s24  ;;  %s3141_s8 = sshll.u32 %s3261_s29, 4  ;;  %s3142_s8 = int_to_ptr.vmem [resolvable:$false] %s3141_s8 }
  0x4b   : > { %s3143_s6 = scalar_lea.vmem %s3142_s8, 1024  ;;  %p3144_p13 = scmp.lt.s32.totalorder %s3434_s9, %s3142_s8 }
  0x4c   : > { %p3139_p0 = pnand %p3137_p6, %p3123_p10  ;;  %p3145_p2 = scmp.lt.s32.totalorder %s3143_s6, %s3136_s24 }
  0x4e   : > { %p3140_p12 = pneg %p3139_p0  ;;  %p3146_p4 = por %p3145_p2, %p3144_p13 }
  0x50   : > { %p3147_p5 = pnand %p3146_p4, %p3140_p12 }
  0x52   : > { %3150 = shalt.err (!%p3147_p5)
}
  0x53   : > { %s4482_s28 = smov 128   ;;  %203 = sbr.rel (%p3348_p8) target bundleno = 2800 (0xaf0), region = 32 }
  0x54   : > { %2879 = dma.hbm_to_vmem [thread:$0]  (!%p3355_p11), %s3432_s5, 512, %s3434_s9, %s3436_s20, %s4482_s28, %s4482_s28, %s3260_s7  }
  0x55   : > { %p4483_p10 = scmp.ne.s32.totalorder (!%p3348_p8), %s4477_s21, 0 }
  0x5a   : > { %3210 = dma.done.wait (%p4483_p10), [#allocation9], 16  }
  0x5b   : > { %3212 = vsyncadd (%p4483_p10), [#allocation9], 4294967280  ;;  %s209_s12 = sand.u32 1, %s3231_s13   ;;  %p4484_p1 = scmp.ne.s32.totalorder %s4478_s22, 0 }
  0x5c   : > { %s2509_s26 = sshll.u32 %s209_s12, 5  ;;  %s210_s27 = scalar_lea.sflag [#allocation7], %s209_s12 }
  0x5d   : > { %s213_s25 = scalar_lea.vmem [#allocation10], %s2509_s26 }
  0x5e   : > { %3214 = dma.done.wait (%p4484_p1), %s210_s27, 512  }
  0x5f   : > { %3216 = vsyncadd (%p4484_p1), %s210_s27, 4294966784 }
  0x60   : > { %3218 = dma.done.wait (%p4483_p10), [#allocation12], 2048  }
  0x61   : > { %3220 = vsyncadd (%p4483_p10), [#allocation12], 4294965248 }
  0x62   : > { %222 = sfence }
  0x63   : > { %s240_s20 = sld [smem:[#allocation6]]  ;;  %s3482_s23 = sld [smem:[#allocation6 + $0x1]]  ;;  %v3484_v0 = vld [vmem:[%s213_s25] sm:$0xff]  ;;  %v3486_v1 = vld [vmem:[%s213_s25 + $0x8] sm:$0xff]  ;;  %v3490_v2 = vld [vmem:[%s213_s25 + $0x10] sm:$0xff] }
  0x64   : > { %s3488_s7 = sld [smem:[#allocation6 + $0x2]]  ;;  %v3492_v3 = vld [vmem:[%s213_s25 + $0x18] sm:$0xff]  ;;  %v3494_v4 = vld [vmem:[#allocation11] sm:$0xff]  ;;  %p272_p8 = scmp.eq.s32.totalorder %s3243_s16, 0  ;;  %v3497_v5 = vld [vmem:[#allocation11 + $0x8] sm:$0xff] }
  0x65   : > { %v3499_v6 = vld [vmem:[#allocation11 + $0x10] sm:$0xff]  ;;  %v3501_v7 = vld [vmem:[#allocation11 + $0x18] sm:$0xff]  ;;  %p273_p11 = scmp.eq.s32.totalorder %s3239_s15, 0  ;;  %v3504_v8 = vld [vmem:[#allocation11 + $0x20] sm:$0xff] }
  0x66   : > { %v3506_v9 = vld [vmem:[#allocation11 + $0x28] sm:$0xff]  ;;  %v3508_v10 = vld [vmem:[#allocation11 + $0x30] sm:$0xff]  ;;  %v3510_v11 = vld [vmem:[#allocation11 + $0x38] sm:$0xff] }
  0x67   : > { %v3512_v12 = vld [vmem:[#allocation11 + $0x40] sm:$0xff]  ;;  %v3514_v13 = vld [vmem:[#allocation11 + $0x48] sm:$0xff]  ;;  %p3516_p7 = pnand %p273_p11, %p272_p8  ;;  %v3520_v14 = vld [vmem:[#allocation11 + $0x50] sm:$0xff] }
  0x68   : > { %v3522_v15 = vld [vmem:[#allocation11 + $0x58] sm:$0xff]  ;;  %v3524_v16 = vld [vmem:[#allocation11 + $0x60] sm:$0xff]  ;;  %v3531_v19 = vld [vmem:[#allocation11 + $0x68] sm:$0xff]  ;;  %v295_v26 = vmul.f32 (!%p3516_p7), %v3494_v4, %v3494_v4  ;;  %v297_v27 = vmul.f32 (!%p3516_p7), %v3499_v6, %v3499_v6  ;;  %v296_v28 = vmul.f32 (!%p3516_p7), %v3497_v5, %v3497_v5  ;;  %v298_v29 = vmul.f32 (!%p3516_p7), %v3501_v7, %v3501_v7 }
  0x69   : > { %v3526_v17 = vstv %s240_s20  ;;  %v3529_v18 = vstv %s3482_s23  ;;  %v3533_v20 = vld [vmem:[#allocation11 + $0x70] sm:$0xff]  ;;  %v3535_v21 = vld [vmem:[#allocation11 + $0x78] sm:$0xff]  ;;  %v299_v30 = vmul.f32 (!%p3516_p7), %v3504_v8, %v3504_v8  ;;  %v300_v31 = vmul.f32 (!%p3516_p7), %v3506_v9, %v3506_v9 }
  0x6a   : > { %2966 = vrcp.f32 %v3526_v17  ;;  %v3539_v22 = vstv %s3488_s7  ;;  %311 = vadd.xlane.f32.xlu0 (!%p3516_p7), %v295_v26  ;;  %315 = vadd.xlane.f32.xlu1 (!%p3516_p7), %v297_v27  ;;  %v301_v32 = vmul.f32 (!%p3516_p7), %v3508_v10, %v3508_v10  ;;  %v302_v33 = vmul.f32 (!%p3516_p7), %v3510_v11, %v3510_v11 }
  0x6b   : > { %2968 = vrcp.f32 %v3529_v18  ;;  %v303_v34 = vmul.f32 (!%p3516_p7), %v3512_v12, %v3512_v12  ;;  %v304_v35 = vmul.f32 (!%p3516_p7), %v3514_v13, %v3514_v13  ;;  %v305_v36 = vmul.f32 (!%p3516_p7), %v3520_v14, %v3520_v14 }
  0x6c   : > { %2970 = vrcp.f32 %v3539_v22  ;;  %v306_v37 = vmul.f32 (!%p3516_p7), %v3522_v15, %v3522_v15  ;;  %v307_v38 = vmul.f32 (!%p3516_p7), %v3524_v16, %v3524_v16  ;;  %v308_v39 = vmul.f32 (!%p3516_p7), %v3531_v19, %v3531_v19 }
  0x6d   : > { %v309_v40 = vmul.f32 (!%p3516_p7), %v3533_v20, %v3533_v20  ;;  %v310_v41 = vmul.f32 (!%p3516_p7), %v3535_v21, %v3535_v21  ;;  %v377_v42 = vlaneseq (!%p3516_p7)  ;;  %v3262_v45 = vmov (!%p3516_p7), 0.0  }
  0x6e   : > { %313 = vadd.xlane.f32.xlu0 (!%p3516_p7), %v296_v28  ;;  %317 = vadd.xlane.f32.xlu1 (!%p3516_p7), %v298_v29  ;;  %278 = vst [vmem:[#allocation2] sm:$0x1] (!%p3516_p7), %v3262_v45  ;;  %279 = vst [vmem:[#allocation3] sm:$0xff] (!%p3516_p7), %v3262_v45 }
  0x6f   : > { %v378_v43 = vand.u32 (!%p3516_p7), 127, %v377_v42  ;;  %280 = vst [vmem:[#allocation3 + $0x8] sm:$0xff] (!%p3516_p7), %v3262_v45  ;;  %281 = vst [vmem:[#allocation3 + $0x10] sm:$0xff] (!%p3516_p7), %v3262_v45 }
  0x70   : > { %282 = vst [vmem:[#allocation3 + $0x18] sm:$0xff] (!%p3516_p7), %v3262_v45  ;;  %283 = vst [vmem:[#allocation3 + $0x20] sm:$0xff] (!%p3516_p7), %v3262_v45 }
  0x71   : > { %vm381_vm0 = vcmp.lt.s32.totalorder (!%p3516_p7), %v378_v43, 16  ;;  %284 = vst [vmem:[#allocation3 + $0x28] sm:$0xff] (!%p3516_p7), %v3262_v45  ;;  %285 = vst [vmem:[#allocation3 + $0x30] sm:$0xff] (!%p3516_p7), %v3262_v45 }
  0x72   : > { %319 = vadd.xlane.f32.xlu0 (!%p3516_p7), %v299_v30  ;;  %321 = vadd.xlane.f32.xlu1 (!%p3516_p7), %v300_v31  ;;  %286 = vst [vmem:[#allocation3 + $0x38] sm:$0xff] (!%p3516_p7), %v3262_v45  ;;  %287 = vst [vmem:[#allocation3 + $0x40] sm:$0xff] (!%p3516_p7), %v3262_v45  ;;  %v382_v46 = vsel (!%p3516_p7), %vm381_vm0, 1.0, %v3262_v45 }
  0x73   : > { %288 = vst [vmem:[#allocation3 + $0x48] sm:$0xff] (!%p3516_p7), %v3262_v45  ;;  %289 = vst [vmem:[#allocation3 + $0x50] sm:$0xff] (!%p3516_p7), %v3262_v45 }
  0x74   : > { %v2967_v23 = vpop.eup %2966  ;;  %290 = vst [vmem:[#allocation3 + $0x58] sm:$0xff] (!%p3516_p7), %v3262_v45  ;;  %291 = vst [vmem:[#allocation3 + $0x60] sm:$0xff] (!%p3516_p7), %v3262_v45 }
  0x75   : > { %v2969_v24 = vpop.eup %2968  ;;  %2849 = vpush %v2967_v23  ;;  %292 = vst [vmem:[#allocation3 + $0x68] sm:$0xff] (!%p3516_p7), %v3262_v45 }
  0x76   : > { %v2971_v25 = vpop.eup %2970  ;;  %2851 = vpush %v2969_v24  ;;  %323 = vadd.xlane.f32.xlu0 (!%p3516_p7), %v301_v32  ;;  %325 = vadd.xlane.f32.xlu1 (!%p3516_p7), %v302_v33  ;;  %293 = vst [vmem:[#allocation3 + $0x70] sm:$0xff] (!%p3516_p7), %v3262_v45 }
  0x77   : > { %2853 = vpush %v2971_v25  ;;  %294 = vst [vmem:[#allocation3 + $0x78] sm:$0xff] (!%p3516_p7), %v3262_v45 }
  0x78   : > { %383 = vst [vmem:[#allocation5 + $0x4] sm:$0x1] (!%p3516_p7), %v382_v46 }
  0x7a   : > { %327 = vadd.xlane.f32.xlu0 (!%p3516_p7), %v303_v34  ;;  %329 = vadd.xlane.f32.xlu1 (!%p3516_p7), %v304_v35 }
  0x7e   : > { %331 = vadd.xlane.f32.xlu0 (!%p3516_p7), %v305_v36  ;;  %333 = vadd.xlane.f32.xlu1 (!%p3516_p7), %v306_v37 }
  0x82   : > { %335 = vadd.xlane.f32.xlu0 (!%p3516_p7), %v307_v38  ;;  %337 = vadd.xlane.f32.xlu1 (!%p3516_p7), %v308_v39 }
  0x86   : > { %339 = vadd.xlane.f32.xlu0 (!%p3516_p7), %v309_v40  ;;  %341 = vadd.xlane.f32.xlu1 (!%p3516_p7), %v310_v41 }
  0xa2   : > { %277 = sbr.rel (%p3516_p7) target bundleno = 378 (0x17a), region = 48 }
  0xa6   : > { %s3543_s22 = spop %2849 }
  0xa7   : > { %s3545_s5 = spop %2851 }
  0xa8   : > { %s3547_s9 = spop %2853 }
  0xf7   : > { %v312_v44 = vpop.xlane.xlu0 %311  ;;  %v316_v48 = vpop.xlane.xlu1 %315 }
  0xf8   : > { %343 = vxpose.xlu0.b32.start [1/16] (narrow) %v312_v44, 8 }
  0xfb   : > { %v314_v47 = vpop.xlane.xlu0 %313  ;;  %v318_v49 = vpop.xlane.xlu1 %317 }
  0xfc   : > { %344 = vxpose.xlu0.b32.cont [2/16] (narrow) %v314_v47, 8 }
  0xff   : > { %v320_v50 = vpop.xlane.xlu0 %319  ;;  %v322_v51 = vpop.xlane.xlu1 %321 }
 0x100   : > { %345 = vxpose.xlu0.b32.cont [3/16] (narrow) %v316_v48, 8 }
 0x103   : > { %v324_v52 = vpop.xlane.xlu0 %323  ;;  %v326_v53 = vpop.xlane.xlu1 %325 }
 0x104   : > { %346 = vxpose.xlu0.b32.cont [4/16] (narrow) %v318_v49, 8 }
 0x107   : > { %v328_v54 = vpop.xlane.xlu0 %327  ;;  %v330_v55 = vpop.xlane.xlu1 %329 }
 0x108   : > { %347 = vxpose.xlu0.b32.cont [5/16] (narrow) %v320_v50, 8 }
 0x10b   : > { %v332_v56 = vpop.xlane.xlu0 %331  ;;  %v334_v57 = vpop.xlane.xlu1 %333 }
 0x10c   : > { %348 = vxpose.xlu0.b32.cont [6/16] (narrow) %v322_v51, 8 }
 0x10f   : > { %v336_v58 = vpop.xlane.xlu0 %335  ;;  %v338_v59 = vpop.xlane.xlu1 %337 }
 0x110   : > { %349 = vxpose.xlu0.b32.cont [7/16] (narrow) %v324_v52, 8 }
 0x113   : > { %v340_v60 = vpop.xlane.xlu0 %339  ;;  %v342_v61 = vpop.xlane.xlu1 %341 }
 0x114   : > { %350 = vxpose.xlu0.b32.cont [8/16] (narrow) %v326_v53, 8 }
 0x118   : > { %351 = vxpose.xlu0.b32.cont [9/16] (narrow) %v328_v54, 8 }
 0x11c   : > { %352 = vxpose.xlu0.b32.cont [10/16] (narrow) %v330_v55, 8 }
 0x120   : > { %353 = vxpose.xlu0.b32.cont [11/16] (narrow) %v332_v56, 8 }
 0x124   : > { %354 = vxpose.xlu0.b32.cont [12/16] (narrow) %v334_v57, 8 }
 0x128   : > { %355 = vxpose.xlu0.b32.cont [13/16] (narrow) %v336_v58, 8 }
 0x12c   : > { %356 = vxpose.xlu0.b32.cont [14/16] (narrow) %v338_v59, 8 }
 0x130   : > { %357 = vxpose.xlu0.b32.cont [15/16] (narrow) %v340_v60, 8 }
 0x134   : > { %358 = vxpose.xlu0.b32.end [16/16] (narrow) %v342_v61, 8 }
 0x178   : > { %v359_v62 = vpop.trf.xlu0 }
 0x179   : > { %375 = vst [vmem:[#allocation5 + $0x3] sm:$0x1] %v359_v62 }
 0x17a PF: > { %s2513_s4 = sshll.u32 %s3239_s15, 5  ;;  %v386_v63 = vlaneseq  ;;  %v2757_v23 = vpack.c.bf16 %v3497_v5, %v3494_v4  ;;  %v2761_v24 = vpack.c.bf16 %v3501_v7, %v3499_v6  ;;  %2661 = vmatprep.mubr.f32.mxu0 %v3484_v0  ;;  %2664 = vmatprep.mubr.f32.mxu1 %v3490_v2  ;;  %v402_v27 = vmul.f32 %v3490_v2, %v3490_v2  ;;  %p2515_p9 = scmp.ne.s32.totalorder %s3243_s16, 0 }
 0x17b   : > { %v391_v25 = vstv %s2513_s4  ;;  %v400_v28 = vmul.f32 %v3484_v0, %v3484_v0  ;;  %v403_v33 = vmul.f32 %v3492_v3, %v3492_v3  ;;  %v401_v34 = vmul.f32 %v3486_v1, %v3486_v1 }
 0x17c   : > { %v3591_v26 = vshrl.u32 %v386_v63, 7  ;;  %2758 = vmatprep.subr.bf16.mxu0 %v2757_v23  ;;  %2829 = vmatprep.subr.bf16.mxu1 %v2757_v23  ;;  %v2765_v38 = vpack.c.bf16 %v3506_v9, %v3504_v8  ;;  %v2769_v39 = vpack.c.bf16 %v3510_v11, %v3508_v10  ;;  %v2773_v40 = vpack.c.bf16 %v3514_v13, %v3512_v12 }
 0x17d   : > { %2760 = vmatpush3.bf16.xpose.msra.mxu0 %v2757_v23  ;;  %2837 = vmatpush3.bf16.xpose.msra.mxu1 %v2757_v23  ;;  %v2777_v41 = vpack.c.bf16 %v3522_v15, %v3520_v14  ;;  %v2781_v42 = vpack.c.bf16 %v3531_v19, %v3524_v16  ;;  %v2785_v43 = vpack.c.bf16 %v3535_v21, %v3533_v20  ;;  %vm622_vm13 = vcmask (!%p2515_p9), 261120  }
 0x17e   : > { %v388_v29 = vadd.s32 8, %v3591_v26  ;;  %v389_v30 = vadd.s32 16, %v3591_v26  ;;  %v390_v31 = vadd.s32 24, %v3591_v26  ;;  %v3601_v32 = vadd.s32 %v391_v25, %v3591_v26  ;;  %2762 = vmatprep.subr.bf16.mxu0 %v2761_v24  ;;  %2830 = vmatprep.subr.bf16.mxu1 %v2761_v24 }
 0x17f   : > { %408 = vadd.xlane.f32.xlu1 %v402_v27  ;;  %404 = vadd.xlane.f32.xlu0 %v400_v28 }
 0x180   : > { %v3607_v35 = vadd.s32 %v391_v25, %v388_v29  ;;  %v3609_v36 = vadd.s32 %v391_v25, %v389_v30  ;;  %v3611_v37 = vadd.s32 %v391_v25, %v390_v31  ;;  %vm396_vm1 = vcmp.lt.s32.totalorder %v3601_v32, 64  ;;  %v2514_v48 = vld [vmem:[#allocation5 + $0x3] ss:$0 sm:$0xff] }
 0x181   : > { %v520_v29 = vstv (!%p2515_p9), %s3543_s22 }
 0x182   : > { %vm397_vm2 = vcmp.lt.s32.totalorder %v3607_v35, 64  ;;  %vm398_vm3 = vcmp.lt.s32.totalorder %v3609_v36, 64  ;;  %vm4476_vm4 = vcmp.lt.s32.totalorder %v3611_v37, 64 }
 0x183   : > { %410 = vadd.xlane.f32.xlu1 %v403_v33  ;;  %406 = vadd.xlane.f32.xlu0 %v401_v34 }
 0x185   : > { %2764 = vmatpush3.bf16.xpose.msra.mxu0 %v2761_v24  ;;  %2838 = vmatpush3.bf16.xpose.msra.mxu1 %v2761_v24 }
 0x186   : > { %2766 = vmatprep.subr.bf16.mxu0 %v2765_v38  ;;  %2831 = vmatprep.subr.bf16.mxu1 %v2765_v38 }
 0x18d   : > { %2768 = vmatpush3.bf16.xpose.msra.mxu0 %v2765_v38  ;;  %2839 = vmatpush3.bf16.xpose.msra.mxu1 %v2765_v38  ;;  %v2789_v38 = vpack.c.bf16 (!%p2515_p9), %v3486_v1, %v3484_v0 }
 0x18e   : > { %2770 = vmatprep.subr.bf16.mxu0 %v2769_v39  ;;  %2832 = vmatprep.subr.bf16.mxu1 %v2769_v39 }
 0x195   : > { %2772 = vmatpush3.bf16.xpose.msra.mxu0 %v2769_v39  ;;  %2840 = vmatpush3.bf16.xpose.msra.mxu1 %v2769_v39 }
 0x196   : > { %2774 = vmatprep.subr.bf16.mxu0 %v2773_v40  ;;  %2833 = vmatprep.subr.bf16.mxu1 %v2773_v40 }
 0x19d   : > { %2776 = vmatpush3.bf16.xpose.msra.mxu0 %v2773_v40  ;;  %2841 = vmatpush3.bf16.xpose.msra.mxu1 %v2773_v40 }
 0x19e   : > { %2778 = vmatprep.subr.bf16.mxu0 %v2777_v41  ;;  %2834 = vmatprep.subr.bf16.mxu1 %v2777_v41 }
 0x1a5   : > { %2780 = vmatpush3.bf16.xpose.msra.mxu0 %v2777_v41  ;;  %2842 = vmatpush3.bf16.xpose.msra.mxu1 %v2777_v41 }
 0x1a6   : > { %2782 = vmatprep.subr.bf16.mxu0 %v2781_v42  ;;  %2835 = vmatprep.subr.bf16.mxu1 %v2781_v42 }
 0x1ad   : > { %2784 = vmatpush3.bf16.xpose.msra.mxu0 %v2781_v42  ;;  %2843 = vmatpush3.bf16.xpose.msra.mxu1 %v2781_v42 }
 0x1ae   : > { %2786 = vmatprep.subr.bf16.mxu0 %v2785_v43  ;;  %2836 = vmatprep.subr.bf16.mxu1 %v2785_v43 }
 0x1b5   : > { %2788 = vmatpush3.bf16.xpose.msra.mxu0 %v2785_v43  ;;  %2844 = vmatpush3.bf16.xpose.msra.mxu1 %v2785_v43 }
 0x1b6   : > { %2790 = vmatprep.subr.bf16.mxu0 (!%p2515_p9), %v2789_v38  ;;  %2845 = vmatprep.subr.bf16.mxu1 (!%p2515_p9), %v2789_v38 }
 0x1bc   : > { %2662 = vmatmul.mubr.f32.vlgmr.msra.gmra.mrb[0].mxu0 %v3486_v1  ;;  %2665 = vmatmul.mubr.f32.vlgmr.msra.gmra.mrb[0].mxu1 %v3492_v3 }
 0x1bd   : > { %2792 = vmatpush3.bf16.msra.mxu0 (!%p2515_p9), %v2789_v38  ;;  %2847 = vmatpush3.bf16.msra.mxu1 (!%p2515_p9), %v2789_v38 }
 0x20c   : > { %v409_v44 = vpop.xlane.xlu1 %408  ;;  %v405_v45 = vpop.xlane.xlu0 %404 }
 0x20d   : > { %v503_v57 = vadd.f32 %v2514_v48, %v409_v44  ;;  %v501_v58 = vadd.f32 %v2514_v48, %v405_v45 }
 0x210   : > { %v411_v46 = vpop.xlane.xlu1 %410  ;;  %v407_v47 = vpop.xlane.xlu0 %406 }
 0x211   : > { %v504_v49 = vadd.f32 %v2514_v48, %v411_v46  ;;  %v502_v50 = vadd.f32 %v2514_v48, %v407_v47 }
 0x28f   : > { %v2663_v51 = vpop.f32.mrb[0].mxu0  ;;  %v2666_v52 = vpop.f32.mrb[0].mxu1  ;;  %519 = sbr.rel (%p2515_p9) target bundleno = 1079 (0x437), region = 52 }
 0x290   : > { %v506_v53 = vmul.f32 2.0, %v2663_v51  ;;  %v508_v54 = vmul.f32 2.0, %v2666_v52  ;;  %v478_v55 = vpop.f32.mrb[1].mxu0  ;;  %v488_v56 = vpop.f32.mrb[1].mxu1 }
 0x291   : > { %v505_v59 = vmul.f32 2.0, %v478_v55  ;;  %v507_v60 = vmul.f32 2.0, %v488_v56 }
 0x292   : > { %v512_v61 = vsub.f32 %v504_v49, %v508_v54  ;;  %v510_v62 = vsub.f32 %v502_v50, %v506_v53 }
 0x293   : > { %v509_v63 = vsub.f32 %v501_v58, %v505_v59  ;;  %v511_v23 = vsub.f32 %v503_v57, %v507_v60  ;;  %v2793_v58 = vpack.c.bf16 (!%p2515_p9), %v3492_v3, %v3490_v2 }
 0x294   : > { %v3631_v24 = vmax.f32 %v512_v61, 0.0  ;;  %v3633_v25 = vmax.f32 %v510_v62, 0.0 }
 0x295   : > { %v3635_v27 = vmax.f32 %v509_v63, 0.0  ;;  %v3637_v28 = vmax.f32 %v511_v23, 0.0  ;;  %2794 = vmatprep.subr.bf16.mxu0 (!%p2515_p9), %v2793_v58  ;;  %2846 = vmatprep.subr.bf16.mxu1 (!%p2515_p9), %v2793_v58 }
 0x296   : > { %v522_v31 = vmul.f32 %v520_v29, %v3633_v25  ;;  %v524_v34 = vmul.f32 %v520_v29, %v3631_v24  ;;  %vm535_vm6 = vcmp.lt.f32.partialorder %v3633_v25, %v3526_v17  ;;  %vm537_vm10 = vcmp.lt.f32.partialorder %v3631_v24, %v3526_v17  ;;  %2796 = vmatpush3.bf16.msra.mxu0 %v2793_v58 }
 0x297   : > { %v521_v30 = vmul.f32 %v520_v29, %v3635_v27  ;;  %v523_v33 = vmul.f32 %v520_v29, %v3637_v28  ;;  %vm534_vm5 = vcmp.lt.f32.partialorder %v3635_v27, %v3526_v17  ;;  %vm536_vm7 = vcmp.lt.f32.partialorder %v3637_v28, %v3526_v17  ;;  %vm547_vm9 = vmand %vm535_vm6, %vm397_vm2  ;;  %2848 = vmatpush3.bf16.msra.mxu1 %v2793_v58 }
 0x298   : > { %v526_v40 = vsub.f32 1.0, %v522_v31  ;;  %v528_v42 = vsub.f32 1.0, %v524_v34  ;;  %vm546_vm8 = vmand %vm534_vm5, %vm396_vm1 }
 0x299   : > { %v525_v39 = vsub.f32 1.0, %v521_v30  ;;  %v527_v41 = vsub.f32 1.0, %v523_v33  ;;  %vm548_vm11 = vmand %vm536_vm7, %vm398_vm3  ;;  %v562_v33 = vld [vmem:[#allocation2] sm:$0x1] }
 0x29a   : > { %v530_v44 = vmax.f32 %v526_v40, 0.0  ;;  %v532_v46 = vmax.f32 %v528_v42, 0.0  ;;  %vm549_vm12 = vmand %vm537_vm10, %vm4476_vm4 }
 0x29b   : > { %v529_v43 = vmax.f32 %v525_v39, 0.0  ;;  %v531_v45 = vmax.f32 %v527_v41, 0.0 }
 0x29c   : > { %v551_v48 = vmul.f32 %v530_v44, %v530_v44  ;;  %v553_v50 = vmul.f32 %v532_v46, %v532_v46 }
 0x29d   : > { %v550_v47 = vmul.f32 %v529_v43, %v529_v43  ;;  %v552_v49 = vmul.f32 %v531_v45, %v531_v45 }
 0x29e   : > { %v555_v52 = vmul.f32 %v551_v48, %v530_v44  ;;  %v557_v56 = vmul.f32 %v553_v50, %v532_v46 }
 0x29f   : > { %v554_v51 = vmul.f32 %v550_v47, %v529_v43  ;;  %v556_v53 = vmul.f32 %v552_v49, %v531_v45 }
 0x2a0   : > { %v559_v55 = vsel %vm547_vm9, %v555_v52, 0.0  ;;  %v561_v61 = vsel %vm549_vm12, %v557_v56, 0.0  ;;  %v574_v56 = vld [vmem:[#allocation3] sm:$0xff] }
 0x2a1   : > { %v558_v54 = vsel %vm546_vm8, %v554_v51, 0.0  ;;  %v560_v59 = vsel %vm548_vm11, %v556_v53, 0.0 }
 0x2a2   : > { %590 = vxpose.xlu0.b32.start [1/4] (short) %v558_v54, 128  ;;  %v563_v57 = vadd.f32 %v559_v55, %v558_v54 }
 0x2a4   : > { %v564_v60 = vadd.f32 %v563_v57, %v560_v59 }
 0x2a6   : > { %591 = vxpose.xlu0.b32.cont [2/4] (short) %v559_v55, 128  ;;  %v565_v62 = vadd.f32 %v564_v60, %v561_v61  ;;  %v575_v55 = vld [vmem:[#allocation3 + $0x8] sm:$0xff] }
 0x2a8   : > { %v566_v63 = vrot.slane %v565_v62, 4 }
 0x2aa   : > { %592 = vxpose.xlu0.b32.cont [3/4] (short) %v560_v59, 128  ;;  %v567_v23 = vadd.f32 %v566_v63, %v565_v62  ;;  %v576_v62 = vld [vmem:[#allocation3 + $0x10] sm:$0xff] }
 0x2ac   : > { %v568_v29 = vrot.slane %v567_v23, 2 }
 0x2ae   : > { %593 = vxpose.xlu0.b32.end [4/4] (short) %v561_v61, 128  ;;  %v569_v30 = vadd.f32 %v568_v29, %v567_v23  ;;  %v577_v61 = vld [vmem:[#allocation3 + $0x18] sm:$0xff] }
 0x2b0   : > { %v570_v31 = vrot.slane %v569_v30, 1 }
 0x2b2   : > { %v571_v34 = vadd.f32 %v570_v31, %v569_v30  ;;  %v579_v31 = vld [vmem:[#allocation3 + $0x28] sm:$0xff] }
 0x2b4   : > { %v572_v38 = vadd.f32 %v571_v34, %v562_v33  ;;  %v578_v33 = vld [vmem:[#allocation3 + $0x20] sm:$0xff] }
 0x2b6   : > { %573 = vst [vmem:[#allocation2] sm:$0x1] %v572_v38 }
 0x322   : > { %v606_v39 = vpop.trf.xlu0 }
 0x323   : > { %2675 = vmatprep.mubr.msk.f32.mxu0 %vm622_vm13, %v606_v39 }
 0x326   : > { %v607_v40 = vpop.trf.xlu0 }
 0x327   : > { %2676 = vmatmul.mubr.msk.f32.vlgmr.msra.gmra.mrb[0].mxu0 %vm622_vm13, %v607_v40 }
 0x32a   : > { %v608_v41 = vpop.trf.xlu0 }
 0x32b   : > { %2678 = vmatprep.mubr.msk.f32.mxu0 %vm622_vm13, %v608_v41  ;;  %v581_v41 = vld [vmem:[#allocation3 + $0x38] sm:$0xff] }
 0x32e   : > { %v609_v42 = vpop.trf.xlu0 }
 0x32f   : > { %2679 = vmatmul.mubr.msk.f32.gmra.mrb[2].mxu0 %vm622_vm13, %v609_v42  ;;  %v580_v42 = vld [vmem:[#allocation3 + $0x30] sm:$0xff] }
 0x332   : > { %v610_v43 = vpop.trf.xlu0 }
 0x333   : > { %2681 = vmatprep.mubr.msk.f32.mxu0 %vm622_vm13, %v610_v43 }
 0x336   : > { %v611_v44 = vpop.trf.xlu0 }
 0x337   : > { %2682 = vmatmul.mubr.msk.f32.gmra.mrb[4].mxu0 %vm622_vm13, %v611_v44 }
 0x33a   : > { %v612_v45 = vpop.trf.xlu0 }
 0x33b   : > { %2684 = vmatprep.mubr.msk.f32.mxu0 %vm622_vm13, %v612_v45 }
 0x33e   : > { %v613_v46 = vpop.trf.xlu0 }
 0x33f   : > { %2685 = vmatmul.mubr.msk.f32.gmra.mrb[6].mxu0 %vm622_vm13, %v613_v46 }
 0x342   : > { %v614_v47 = vpop.trf.xlu0 }
 0x343   : > { %2687 = vmatprep.mubr.msk.f32.mxu1 %vm622_vm13, %v614_v47  ;;  %v583_v47 = vld [vmem:[#allocation3 + $0x48] sm:$0xff] }
 0x346   : > { %v615_v48 = vpop.trf.xlu0 }
 0x347   : > { %2688 = vmatmul.mubr.msk.f32.vlgmr.msra.gmra.mrb[0].mxu1 %vm622_vm13, %v615_v48  ;;  %v582_v48 = vld [vmem:[#allocation3 + $0x40] sm:$0xff] }
 0x34a   : > { %v616_v49 = vpop.trf.xlu0 }
 0x34b   : > { %2690 = vmatprep.mubr.msk.f32.mxu1 %vm622_vm13, %v616_v49 }
 0x34e   : > { %v617_v50 = vpop.trf.xlu0 }
 0x34f   : > { %2691 = vmatmul.mubr.msk.f32.gmra.mrb[2].mxu1 %vm622_vm13, %v617_v50 }
 0x352   : > { %v618_v51 = vpop.trf.xlu0 }
 0x353   : > { %2693 = vmatprep.mubr.msk.f32.mxu1 %vm622_vm13, %v618_v51 }
 0x356   : > { %v619_v52 = vpop.trf.xlu0 }
 0x357   : > { %2694 = vmatmul.mubr.msk.f32.gmra.mrb[4].mxu1 %vm622_vm13, %v619_v52 }
 0x35a   : > { %v620_v53 = vpop.trf.xlu0 }
 0x35b   : > { %2696 = vmatprep.mubr.msk.f32.mxu1 %vm622_vm13, %v620_v53  ;;  %v585_v53 = vld [vmem:[#allocation3 + $0x58] sm:$0xff] }
 0x35e   : > { %v621_v54 = vpop.trf.xlu0 }
 0x35f   : > { %2697 = vmatmul.mubr.msk.f32.gmra.mrb[6].mxu1 %vm622_vm13, %v621_v54  ;;  %v584_v54 = vld [vmem:[#allocation3 + $0x50] sm:$0xff] }
 0x3fa   : > { %v2677_v57 = vpop.f32.mrb[0].mxu0 }
 0x3fb   : > { %v817_v58 = vadd.f32 %v2677_v57, %v575_v55  ;;  %v737_v59 = vpop.f32.mrb[1].mxu0 }
 0x3fc   : > { %v816_v60 = vadd.f32 %v737_v59, %v574_v56  ;;  %v587_v59 = vld [vmem:[#allocation3 + $0x68] sm:$0xff] }
 0x3fd   : > { %833 = vst [vmem:[#allocation3 + $0x8] sm:$0xff] %v817_v58 }
 0x3fe   : > { %832 = vst [vmem:[#allocation3] sm:$0xff] %v816_v60  ;;  %v586_v60 = vld [vmem:[#allocation3 + $0x60] sm:$0xff] }
 0x402   : > { %v2680_v63 = vpop.f32.mrb[2].mxu0 }
 0x403   : > { %v819_v23 = vadd.f32 %v2680_v63, %v577_v61  ;;  %v747_v29 = vpop.f32.mrb[3].mxu0 }
 0x404   : > { %v818_v30 = vadd.f32 %v747_v29, %v576_v62  ;;  %v589_v29 = vld [vmem:[#allocation3 + $0x78] sm:$0xff] }
 0x405   : > { %835 = vst [vmem:[#allocation3 + $0x18] sm:$0xff] %v819_v23 }
 0x406   : > { %834 = vst [vmem:[#allocation3 + $0x10] sm:$0xff] %v818_v30  ;;  %v588_v30 = vld [vmem:[#allocation3 + $0x70] sm:$0xff] }
 0x40a   : > { %v2683_v34 = vpop.f32.mrb[4].mxu0 }
 0x40b   : > { %v821_v38 = vadd.f32 %v2683_v34, %v579_v31  ;;  %v757_v39 = vpop.f32.mrb[5].mxu0 }
 0x40c   : > { %v820_v40 = vadd.f32 %v757_v39, %v578_v33 }
 0x40d   : > { %837 = vst [vmem:[#allocation3 + $0x28] sm:$0xff] %v821_v38 }
 0x40e   : > { %836 = vst [vmem:[#allocation3 + $0x20] sm:$0xff] %v820_v40 }
 0x412   : > { %v2686_v43 = vpop.f32.mrb[6].mxu0 }
 0x413   : > { %v823_v44 = vadd.f32 %v2686_v43, %v581_v41  ;;  %v767_v45 = vpop.f32.mrb[7].mxu0 }
 0x414   : > { %v822_v46 = vadd.f32 %v767_v45, %v580_v42 }
 0x415   : > { %839 = vst [vmem:[#allocation3 + $0x38] sm:$0xff] %v823_v44 }
 0x416   : > { %838 = vst [vmem:[#allocation3 + $0x30] sm:$0xff] %v822_v46 }
 0x41a   : > { %v2689_v49 = vpop.f32.mrb[0].mxu1 }
 0x41b   : > { %v825_v50 = vadd.f32 %v2689_v49, %v583_v47  ;;  %v777_v51 = vpop.f32.mrb[1].mxu1 }
 0x41c   : > { %v824_v52 = vadd.f32 %v777_v51, %v582_v48 }
 0x41d   : > { %841 = vst [vmem:[#allocation3 + $0x48] sm:$0xff] %v825_v50 }
 0x41e   : > { %840 = vst [vmem:[#allocation3 + $0x40] sm:$0xff] %v824_v52 }
 0x422   : > { %v2692_v55 = vpop.f32.mrb[2].mxu1 }
 0x423   : > { %v827_v56 = vadd.f32 %v2692_v55, %v585_v53  ;;  %v787_v57 = vpop.f32.mrb[3].mxu1 }
 0x424   : > { %v826_v58 = vadd.f32 %v787_v57, %v584_v54 }
 0x425   : > { %843 = vst [vmem:[#allocation3 + $0x58] sm:$0xff] %v827_v56 }
 0x426   : > { %842 = vst [vmem:[#allocation3 + $0x50] sm:$0xff] %v826_v58 }
 0x42a   : > { %v2695_v61 = vpop.f32.mrb[4].mxu1 }
 0x42b   : > { %v829_v62 = vadd.f32 %v2695_v61, %v587_v59  ;;  %v797_v63 = vpop.f32.mrb[5].mxu1 }
 0x42c   : > { %v828_v23 = vadd.f32 %v797_v63, %v586_v60 }
 0x42d   : > { %845 = vst [vmem:[#allocation3 + $0x68] sm:$0xff] %v829_v62 }
 0x42e   : > { %844 = vst [vmem:[#allocation3 + $0x60] sm:$0xff] %v828_v23 }
 0x432   : > { %v2698_v31 = vpop.f32.mrb[6].mxu1 }
 0x433   : > { %v831_v33 = vadd.f32 %v2698_v31, %v589_v29  ;;  %v807_v34 = vpop.f32.mrb[7].mxu1 }
 0x434   : > { %v830_v38 = vadd.f32 %v807_v34, %v588_v30 }
 0x435   : > { %847 = vst [vmem:[#allocation3 + $0x78] sm:$0xff] %v831_v33 }
 0x436   : > { %846 = vst [vmem:[#allocation3 + $0x70] sm:$0xff] %v830_v38 }
 0x437 PF: > { %p2532_p3 = scmp.ne.s32.totalorder %s3243_s16, 1 }
 0x438   : > { %p2533_p6 = scmp.ne.s32.totalorder (!%p2532_p3), %s3239_s15, 0 }
 0x439   : > { %851 = sbr.rel (%p2532_p3) target bundleno = 2774 (0xad6), region = 56 }
 0x440   : > { %854 = sbr.rel (%p2533_p6) target bundleno = 1747 (0x6d3), region = 60  ;;  %v855_v39 = vld [vmem:[#allocation2] sm:$0x1] (!%p2533_p6)  ;;  %v3263_v40 = vmov (!%p2533_p6), 0.0   ;;  %v3264_v41 = vmov (!%p2533_p6), 0   ;;  %v3694_v49 = vld [vmem:[#allocation3] sm:$0xff] (!%p2533_p6) }
 0x441   : > { %856 = vxpose.xlu0.b32.start.end [1/1] (short) (!%p2533_p6), %v855_v39, 128  ;;  %1499 = vst [vmem:[#allocation2] sm:$0x1] (!%p2533_p6), %v3263_v40  ;;  %2973 = vset.pattern.permute.xlu1 (!%p2533_p6), %v3264_v41  ;;  %1500 = vst [vmem:[#allocation3] sm:$0xff] (!%p2533_p6), %v3263_v40  ;;  %v3700_v56 = vld [vmem:[#allocation3 + $0x8] sm:$0xff] (!%p2533_p6)  ;;  %v3705_v61 = vld [vmem:[#allocation3 + $0x10] sm:$0xff] (!%p2533_p6) }
 0x442   : > { %1501 = vst [vmem:[#allocation3 + $0x8] sm:$0xff] (!%p2533_p6), %v3263_v40  ;;  %1502 = vst [vmem:[#allocation3 + $0x10] sm:$0xff] (!%p2533_p6), %v3263_v40  ;;  %v3713_v31 = vld [vmem:[#allocation3 + $0x18] sm:$0xff] (!%p2533_p6) }
 0x443   : > { %1503 = vst [vmem:[#allocation3 + $0x18] sm:$0xff] (!%p2533_p6), %v3263_v40 }
 0x46a   : > { %2972 = vset.pattern.permute.xlu0 %v3264_v41 }
 0x4c1   : > { %v872_v42 = vpop.trf.xlu0 }
 0x4c2   : > { %2974 = vrcp.f32 %v872_v42  ;;  %vm888_vm14 = vcmp.gt.f32.partialorder %v872_v42, 0.0 }
 0x4c3   : > { %v1064_v43 = vsel %vm888_vm14, 1, %v3264_v41 }
 0x4c4   : > { %1081 = vperm.xlu1 %2973, %v1064_v43   ;;  %v3723_v43 = vld [vmem:[#allocation3 + $0x20] sm:$0xff] }
 0x4c5   : > { %v873_v44 = vpop.trf.xlu0  ;;  %1504 = vst [vmem:[#allocation3 + $0x20] sm:$0xff] %v3263_v40 }
 0x4c6   : > { %vm889_vm15 = vcmp.gt.f32.partialorder %v873_v44, 0.0  ;;  %2976 = vrcp.f32 %v873_v44 }
 0x4c7   : > { %v1065_v45 = vsel %vm889_vm15, 1, %v3264_v41 }
 0x4c8   : > { %1084 = vperm.xlu1 %2973, %v1065_v45  }
 0x4c9   : > { %v874_v46 = vpop.trf.xlu0 }
 0x4ca   : > { %vm890_vm0 = vcmp.gt.f32.partialorder %v874_v46, 0.0  ;;  %2978 = vrcp.f32 %v874_v46 }
 0x4cb   : > { %v1066_v47 = vsel %vm890_vm0, 1, %v3264_v41 }
 0x4cc   : > { %v2975_v48 = vpop.eup %2974  ;;  %1087 = vperm.xlu1 %2973, %v1066_v47  }
 0x4cd   : > { %v875_v50 = vpop.trf.xlu0  ;;  %v936_v51 = vsel %vm888_vm14, %v2975_v48, 0.0 }
 0x4ce   : > { %vm891_vm5 = vcmp.gt.f32.partialorder %v875_v50, 0.0  ;;  %970 = vperm.xlu0 %2972, %v936_v51   ;;  %2980 = vrcp.f32 %v875_v50  ;;  %v3733_v50 = vld [vmem:[#allocation3 + $0x28] sm:$0xff] }
 0x4cf   : > { %v1067_v52 = vsel %vm891_vm5, 1, %v3264_v41  ;;  %1505 = vst [vmem:[#allocation3 + $0x28] sm:$0xff] %v3263_v40 }
 0x4d0   : > { %v2977_v53 = vpop.eup %2976  ;;  %1090 = vperm.xlu1 %2973, %v1067_v52  }
 0x4d1   : > { %v876_v54 = vpop.trf.xlu0  ;;  %v937_v55 = vsel %vm889_vm15, %v2977_v53, 0.0 }
 0x4d2   : > { %vm892_vm6 = vcmp.gt.f32.partialorder %v876_v54, 0.0  ;;  %2982 = vrcp.f32 %v876_v54 }
 0x4d3   : > { %v1068_v58 = vsel %vm892_vm6, 1, %v3264_v41 }
 0x4d4   : > { %975 = vperm.xlu1 %2973, %v937_v55   ;;  %v2979_v59 = vpop.eup %2978 }
 0x4d5   : > { %v877_v57 = vpop.trf.xlu0  ;;  %v938_v62 = vsel %vm890_vm0, %v2979_v59, 0.0  ;;  %v3749_v59 = vld [vmem:[#allocation3 + $0x30] sm:$0xff] }
 0x4d6   : > { %vm893_vm7 = vcmp.gt.f32.partialorder %v877_v57, 0.0  ;;  %2984 = vrcp.f32 %v877_v57  ;;  %1506 = vst [vmem:[#allocation3 + $0x30] sm:$0xff] %v3263_v40 }
 0x4d7   : > { %v1069_v23 = vsel %vm893_vm7, 1, %v3264_v41 }
 0x4d8   : > { %1093 = vperm.xlu1 %2973, %v1068_v58   ;;  %v2981_v29 = vpop.eup %2980 }
 0x4d9   : > { %v878_v60 = vpop.trf.xlu0  ;;  %v939_v33 = vsel %vm891_vm5, %v2981_v29, 0.0 }
 0x4da   : > { %vm894_vm8 = vcmp.gt.f32.partialorder %v878_v60, 0.0  ;;  %2986 = vrcp.f32 %v878_v60 }
 0x4db   : > { %v1070_v38 = vsel %vm894_vm8, 1, %v3264_v41 }
 0x4dc   : > { %980 = vperm.xlu1 %2973, %v938_v62   ;;  %v2983_v39 = vpop.eup %2982 }
 0x4dd   : > { %v879_v63 = vpop.trf.xlu0  ;;  %v940_v44 = vsel %vm892_vm6, %v2983_v39, 0.0 }
 0x4de   : > { %vm895_vm9 = vcmp.gt.f32.partialorder %v879_v63, 0.0  ;;  %2988 = vrcp.f32 %v879_v63 }
 0x4df   : > { %v1071_v46 = vsel %vm895_vm9, 1, %v3264_v41 }
 0x4e0   : > { %1096 = vperm.xlu1 %2973, %v1069_v23   ;;  %v2985_v47 = vpop.eup %2984 }
 0x4e1   : > { %v3711_v30 = vpop.trf.xlu0  ;;  %v941_v51 = vsel %vm893_vm7, %v2985_v47, 0.0 }
 0x4e2   : > { %vm896_vm10 = vcmp.gt.f32.partialorder %v3711_v30, 0.0  ;;  %2990 = vrcp.f32 %v3711_v30 }
 0x4e3   : > { %v1072_v54 = vsel %vm896_vm10, 1, %v3264_v41 }
 0x4e4   : > { %985 = vperm.xlu1 %2973, %v939_v33   ;;  %v2987_v55 = vpop.eup %2986  ;;  %v3762_v33 = vld [vmem:[#allocation3 + $0x38] sm:$0xff] }
 0x4e5   : > { %v3717_v34 = vpop.trf.xlu0  ;;  %v942_v57 = vsel %vm894_vm8, %v2987_v55, 0.0  ;;  %1507 = vst [vmem:[#allocation3 + $0x38] sm:$0xff] %v3263_v40  ;;  %v3791_v55 = vld [vmem:[#allocation3 + $0x50] sm:$0xff] }
 0x4e6   : > { %vm897_vm12 = vcmp.gt.f32.partialorder %v3717_v34, 0.0  ;;  %2992 = vrcp.f32 %v3717_v34  ;;  %1510 = vst [vmem:[#allocation3 + $0x50] sm:$0xff] %v3263_v40 }
 0x4e7   : > { %v1073_v23 = vsel %vm897_vm12, 1, %v3264_v41 }
 0x4e8   : > { %1099 = vperm.xlu1 %2973, %v1070_v38   ;;  %v2989_v29 = vpop.eup %2988 }
 0x4e9   : > { %v3721_v42 = vpop.trf.xlu0  ;;  %v943_v60 = vsel %vm895_vm9, %v2989_v29, 0.0 }
 0x4ea   : > { %vm898_vm14 = vcmp.gt.f32.partialorder %v3721_v42, 0.0  ;;  %2994 = vrcp.f32 %v3721_v42 }
 0x4eb   : > { %v1074_v38 = vsel %vm898_vm14, 1, %v3264_v41 }
 0x4ec   : > { %990 = vperm.xlu1 %2973, %v940_v44   ;;  %v2991_v39 = vpop.eup %2990  ;;  %v3771_v44 = vld [vmem:[#allocation3 + $0x40] sm:$0xff] }
 0x4ed   : > { %v3727_v45 = vpop.trf.xlu0  ;;  %1508 = vst [vmem:[#allocation3 + $0x40] sm:$0xff] %v3263_v40  ;;  %v944_v63 = vsel %vm896_vm10, %v2991_v39, 0.0 }
 0x4ee   : > { %vm899_vm15 = vcmp.gt.f32.partialorder %v3727_v45, 0.0  ;;  %2996 = vrcp.f32 %v3727_v45 }
 0x4f0   : > { %1102 = vperm.xlu1 %2973, %v1071_v46   ;;  %v1075_v46 = vsel %vm899_vm15, 1, %v3264_v41  ;;  %v2993_v47 = vpop.eup %2992 }
 0x4f1   : > { %v3731_v48 = vpop.trf.xlu0 }
 0x4f2   : > { %vm900_vm11 = vcmp.gt.f32.partialorder %v3731_v48, 0.0  ;;  %2998 = vrcp.f32 %v3731_v48 }
 0x4f3   : > { %v1076_v52 = vsel %vm900_vm11, 1, %v3264_v41 }
 0x4f4   : > { %995 = vperm.xlu1 %2973, %v941_v51   ;;  %1117 = vperm.xlu0 %2972, %v1076_v52   ;;  %v3781_v51 = vld [vmem:[#allocation3 + $0x48] sm:$0xff]  ;;  %v945_v52 = vsel %vm897_vm12, %v2993_v47, 0.0 }
 0x4f5   : > { %v3742_v53 = vpop.trf.xlu0  ;;  %1509 = vst [vmem:[#allocation3 + $0x48] sm:$0xff] %v3263_v40 }
 0x4f6   : > { %vm901_vm0 = vcmp.gt.f32.partialorder %v3742_v53, 0.0  ;;  %3000 = vrcp.f32 %v3742_v53 }
 0x4f8   : > { %1105 = vperm.xlu1 %2973, %v1072_v54   ;;  %v2995_v54 = vpop.eup %2994 }
 0x4f9   : > { %v3747_v58 = vpop.trf.xlu0  ;;  %v946_v30 = vsel %vm898_vm14, %v2995_v54, 0.0  ;;  %v2997_v34 = vpop.eup %2996 }
 0x4fa   : > { %vm902_vm13 = vcmp.gt.f32.partialorder %v3747_v58, 0.0  ;;  %v947_v42 = vsel %vm899_vm15, %v2997_v34, 0.0  ;;  %3002 = vrcp.f32 %v3747_v58 }
 0x4fb   : > { %v1078_v62 = vsel %vm902_vm13, 1, %v3264_v41 }
 0x4fc   : > { %1000 = vperm.xlu1 %2973, %v942_v57   ;;  %1123 = vperm.xlu0 %2972, %v1078_v62   ;;  %v1077_v57 = vsel %vm901_vm0, 1, %v3264_v41  ;;  %v3797_v62 = vld [vmem:[#allocation3 + $0x58] sm:$0xff] }
 0x4fd   : > { %1511 = vst [vmem:[#allocation3 + $0x58] sm:$0xff] %v3263_v40  ;;  %v887_v29 = vpop.trf.xlu0 }
 0x4fe   : > { %vm903_vm5 = vcmp.gt.f32.partialorder %v887_v29, 0.0  ;;  %3004 = vrcp.f32 %v887_v29 }
 0x4ff   : > { %v1079_v39 = vsel %vm903_vm5, 1, %v3264_v41 }
 0x500   : > { %1108 = vperm.xlu1 %2973, %v1073_v23   ;;  %v2999_v23 = vpop.eup %2998 }
 0x501   : > { %v3001_v45 = vpop.eup %3000 }
 0x504   : > { %1005 = vperm.xlu1 %2973, %v943_v60   ;;  %v948_v60 = vsel %vm900_vm11, %v2999_v23, 0.0  ;;  %v3003_v48 = vpop.eup %3002 }
 0x505   : > { %v950_v47 = vsel %vm902_vm13, %v3003_v48, 0.0 }
 0x508   : > { %1111 = vperm.xlu1 %2973, %v1074_v38   ;;  %v3806_v38 = vld [vmem:[#allocation3 + $0x60] sm:$0xff]  ;;  %v3005_v54 = vpop.eup %3004 }
 0x509   : > { %1512 = vst [vmem:[#allocation3 + $0x60] sm:$0xff] %v3263_v40  ;;  %v951_v41 = vsel %vm903_vm5, %v3005_v54, 0.0 }
 0x50c   : > { %1010 = vperm.xlu1 %2973, %v944_v63   ;;  %v3811_v63 = vld [vmem:[#allocation3 + $0x68] sm:$0xff] }
 0x50d   : > { %1513 = vst [vmem:[#allocation3 + $0x68] sm:$0xff] %v3263_v40 }
 0x510   : > { %1114 = vperm.xlu1 %2973, %v1075_v46   ;;  %v949_v46 = vsel %vm901_vm0, %v3001_v45, 0.0 }
 0x514   : > { %1015 = vperm.xlu1 %2973, %v945_v52   ;;  %v3818_v52 = vld [vmem:[#allocation3 + $0x70] sm:$0xff] }
 0x515   : > { %1514 = vst [vmem:[#allocation3 + $0x70] sm:$0xff] %v3263_v40 }
 0x518   : > { %1020 = vperm.xlu1 %2973, %v946_v30   ;;  %v3822_v30 = vld [vmem:[#allocation3 + $0x78] sm:$0xff] }
 0x519   : > { %1515 = vst [vmem:[#allocation3 + $0x78] sm:$0xff] %v3263_v40 }
 0x51c   : > { %1120 = vperm.xlu1 %2973, %v1077_v57  }
 0x520   : > { %1025 = vperm.xlu1 %2973, %v947_v42  }
 0x524   : > { %1030 = vperm.xlu1 %2973, %v948_v60  }
 0x528   : > { %1126 = vperm.xlu1 %2973, %v1079_v39  }
 0x52c   : > { %1035 = vperm.xlu1 %2973, %v949_v46  }
 0x530   : > { %1040 = vperm.xlu1 %2973, %v950_v47  }
 0x534   : > { %1045 = vperm.xlu1 %2973, %v951_v41  }
 0x543   : > { %v1082_v53 = vpop.permute.xlu1 %1081 }
 0x544   : > { %vm1128_vm6 = vcmp.eq.s32.totalorder %v1082_v53, 1 }
 0x547   : > { %v1085_v57 = vpop.permute.xlu1 %1084 }
 0x548   : > { %vm1129_vm7 = vcmp.eq.s32.totalorder %v1085_v57, 1 }
 0x54b   : > { %v1088_v34 = vpop.permute.xlu1 %1087 }
 0x54c   : > { %vm1130_vm8 = vcmp.eq.s32.totalorder %v1088_v34, 1 }
 0x54d   : > { %v971_v42 = vpop.permute.xlu0 %970 }
 0x54e   : > { %v1048_v58 = vmul.f32 %v971_v42, %v3694_v49 }
 0x54f   : > { %v1091_v23 = vpop.permute.xlu1 %1090 }
 0x550   : > { %v1144_v60 = vsel %vm1128_vm6, %v1048_v58, %v3494_v4  ;;  %vm1131_vm9 = vcmp.eq.s32.totalorder %v1091_v23, 1 }
 0x551   : > { %v1160_v39 = vsub.f32 %v3494_v4, %v1144_v60 }
 0x553   : > { %1176 = vst [vmem:[#allocation4] sm:$0xff] %v1160_v39  ;;  %v976_v29 = vpop.permute.xlu1 %975  ;;  %v1192_v45 = vmul.f32 %v1160_v39, %v1160_v39  ;;  %v1240_v49 = vmul.f32 %v1160_v39, %v3494_v4 }
 0x554   : > { %v1049_v46 = vmul.f32 %v976_v29, %v3700_v56 }
 0x555   : > { %1208 = vadd.xlane.f32.xlu0 %v1192_v45 }
 0x556   : > { %v1145_v40 = vsel %vm1129_vm7, %v1049_v46, %v3497_v5 }
 0x557   : > { %v1161_v48 = vsub.f32 %v3497_v5, %v1145_v40  ;;  %v1094_v47 = vpop.permute.xlu1 %1093 }
 0x558   : > { %vm1132_vm10 = vcmp.eq.s32.totalorder %v1094_v47, 1 }
 0x559   : > { %1177 = vst [vmem:[#allocation4 + $0x8] sm:$0xff] %v1161_v48  ;;  %1256 = vadd.xlane.f32.xlu0 %v1240_v49  ;;  %v1193_v54 = vmul.f32 %v1161_v48, %v1161_v48  ;;  %v1241_v42 = vmul.f32 %v1161_v48, %v3497_v5 }
 0x55b   : > { %v981_v41 = vpop.permute.xlu1 %980  ;;  %1210 = vadd.xlane.f32.xlu1 %v1193_v54 }
 0x55c   : > { %v1050_v53 = vmul.f32 %v981_v41, %v3705_v61 }
 0x55e   : > { %v1146_v56 = vsel %vm1130_vm8, %v1050_v53, %v3499_v6 }
 0x55f   : > { %v1162_v57 = vsub.f32 %v3499_v6, %v1146_v56  ;;  %v1097_v58 = vpop.permute.xlu1 %1096  ;;  %1258 = vadd.xlane.f32.xlu1 %v1241_v42 }
 0x560   : > { %vm1133_vm11 = vcmp.eq.s32.totalorder %v1097_v58, 1 }
 0x561   : > { %1178 = vst [vmem:[#allocation4 + $0x10] sm:$0xff] %v1162_v57  ;;  %v1194_v60 = vmul.f32 %v1162_v57, %v1162_v57  ;;  %v1242_v45 = vmul.f32 %v1162_v57, %v3499_v6 }
 0x563   : > { %v986_v29 = vpop.permute.xlu1 %985  ;;  %1212 = vadd.xlane.f32.xlu0 %v1194_v60 }
 0x564   : > { %v1051_v39 = vmul.f32 %v986_v29, %v3713_v31 }
 0x566   : > { %v1147_v61 = vsel %vm1131_vm9, %v1051_v39, %v3501_v7 }
 0x567   : > { %v1163_v34 = vsub.f32 %v3501_v7, %v1147_v61  ;;  %v1100_v46 = vpop.permute.xlu1 %1099  ;;  %1260 = vadd.xlane.f32.xlu0 %v1242_v45 }
 0x568   : > { %vm1134_vm12 = vcmp.eq.s32.totalorder %v1100_v46, 1 }
 0x569   : > { %1179 = vst [vmem:[#allocation4 + $0x18] sm:$0xff] %v1163_v34  ;;  %v1243_v40 = vmul.f32 %v1163_v34, %v3501_v7  ;;  %v1195_v48 = vmul.f32 %v1163_v34, %v1163_v34 }
 0x56b   : > { %v991_v49 = vpop.permute.xlu1 %990  ;;  %1262 = vadd.xlane.f32.xlu1 %v1243_v40  ;;  %1214 = vadd.xlane.f32.xlu0 %v1195_v48 }
 0x56c   : > { %v1052_v54 = vmul.f32 %v991_v49, %v3723_v43 }
 0x56e   : > { %v1148_v31 = vsel %vm1132_vm10, %v1052_v54, %v3504_v8 }
 0x56f   : > { %v1164_v23 = vsub.f32 %v3504_v8, %v1148_v31  ;;  %v1103_v41 = vpop.permute.xlu1 %1102 }
 0x570   : > { %vm1135_vm13 = vcmp.eq.s32.totalorder %v1103_v41, 1 }
 0x571   : > { %1180 = vst [vmem:[#allocation4 + $0x20] sm:$0xff] %v1164_v23  ;;  %v1196_v53 = vmul.f32 %v1164_v23, %v1164_v23  ;;  %v1244_v57 = vmul.f32 %v1164_v23, %v3504_v8 }
 0x573   : > { %v996_v42 = vpop.permute.xlu1 %995  ;;  %1216 = vadd.xlane.f32.xlu0 %v1196_v53 }
 0x574   : > { %v1053_v56 = vmul.f32 %v996_v42, %v3733_v50 }
 0x576   : > { %v1149_v60 = vsel %vm1133_vm11, %v1053_v56, %v3506_v9 }
 0x577   : > { %v1165_v29 = vsub.f32 %v3506_v9, %v1149_v60  ;;  %v1106_v43 = vpop.permute.xlu1 %1105  ;;  %1264 = vadd.xlane.f32.xlu0 %v1244_v57 }
 0x578   : > { %vm1136_vm14 = vcmp.eq.s32.totalorder %v1106_v43, 1 }
 0x579   : > { %1181 = vst [vmem:[#allocation4 + $0x28] sm:$0xff] %v1165_v29  ;;  %v1197_v47 = vmul.f32 %v1165_v29, %v1165_v29  ;;  %v1245_v61 = vmul.f32 %v1165_v29, %v3506_v9 }
 0x57b   : > { %v1001_v39 = vpop.permute.xlu1 %1000  ;;  %1218 = vadd.xlane.f32.xlu1 %v1197_v47 }
 0x57c   : > { %v1054_v45 = vmul.f32 %v1001_v39, %v3749_v59 }
 0x57e   : > { %v1150_v50 = vsel %vm1134_vm12, %v1054_v45, %v3508_v10 }
 0x57f   : > { %v1166_v58 = vsub.f32 %v3508_v10, %v1150_v50  ;;  %v1109_v34 = vpop.permute.xlu1 %1108  ;;  %1266 = vadd.xlane.f32.xlu1 %v1245_v61 }
 0x580   : > { %vm1137_vm15 = vcmp.eq.s32.totalorder %v1109_v34, 1 }
 0x581   : > { %1182 = vst [vmem:[#allocation4 + $0x30] sm:$0xff] %v1166_v58  ;;  %v1198_v40 = vmul.f32 %v1166_v58, %v1166_v58  ;;  %v1246_v54 = vmul.f32 %v1166_v58, %v3508_v10 }
 0x583   : > { %v1006_v48 = vpop.permute.xlu1 %1005  ;;  %1220 = vadd.xlane.f32.xlu0 %v1198_v40 }
 0x584   : > { %v1055_v49 = vmul.f32 %v1006_v48, %v3762_v33 }
 0x586   : > { %v1151_v59 = vsel %vm1135_vm13, %v1055_v49, %v3510_v11 }
 0x587   : > { %v1167_v46 = vsub.f32 %v3510_v11, %v1151_v59  ;;  %v1112_v31 = vpop.permute.xlu1 %1111  ;;  %1268 = vadd.xlane.f32.xlu0 %v1246_v54  ;;  %v1118_v59 = vpop.permute.xlu0 %1117 }
 0x588   : > { %vm1138_vm0 = vcmp.eq.s32.totalorder %v1112_v31, 1  ;;  %vm1140_vm6 = vcmp.eq.s32.totalorder %v1118_v59, 1 }
 0x589   : > { %1183 = vst [vmem:[#allocation4 + $0x38] sm:$0xff] %v1167_v46  ;;  %v1199_v23 = vmul.f32 %v1167_v46, %v1167_v46  ;;  %v1247_v56 = vmul.f32 %v1167_v46, %v3510_v11 }
 0x58b   : > { %v1011_v53 = vpop.permute.xlu1 %1010  ;;  %1222 = vadd.xlane.f32.xlu1 %v1199_v23 }
 0x58c   : > { %v1056_v42 = vmul.f32 %v1011_v53, %v3771_v44 }
 0x58e   : > { %v1152_v33 = vsel %vm1136_vm14, %v1056_v42, %v3512_v12 }
 0x58f   : > { %v1168_v41 = vsub.f32 %v3512_v12, %v1152_v33  ;;  %v1115_v57 = vpop.permute.xlu1 %1114  ;;  %1270 = vadd.xlane.f32.xlu1 %v1247_v56 }
 0x590   : > { %vm1139_vm5 = vcmp.eq.s32.totalorder %v1115_v57, 1 }
 0x591   : > { %1184 = vst [vmem:[#allocation4 + $0x40] sm:$0xff] %v1168_v41  ;;  %v1200_v60 = vmul.f32 %v1168_v41, %v1168_v41  ;;  %v1248_v39 = vmul.f32 %v1168_v41, %v3512_v12 }
 0x593   : > { %v1016_v29 = vpop.permute.xlu1 %1015  ;;  %1224 = vadd.xlane.f32.xlu0 %v1200_v60 }
 0x594   : > { %v1057_v47 = vmul.f32 %v1016_v29, %v3781_v51 }
 0x596   : > { %v1153_v44 = vsel %vm1137_vm15, %v1057_v47, %v3514_v13  ;;  %v1124_v47 = vpop.permute.xlu0 %1123 }
 0x597   : > { %v1169_v43 = vsub.f32 %v3514_v13, %v1153_v44  ;;  %v1021_v45 = vpop.permute.xlu1 %1020  ;;  %1272 = vadd.xlane.f32.xlu0 %v1248_v39  ;;  %vm1142_vm8 = vcmp.eq.s32.totalorder %v1124_v47, 1 }
 0x598   : > { %v1058_v61 = vmul.f32 %v1021_v45, %v3791_v55 }
 0x599   : > { %1185 = vst [vmem:[#allocation4 + $0x48] sm:$0xff] %v1169_v43  ;;  %v1201_v50 = vmul.f32 %v1169_v43, %v1169_v43  ;;  %v1249_v51 = vmul.f32 %v1169_v43, %v3514_v13 }
 0x59a   : > { %v1154_v58 = vsel %vm1138_vm0, %v1058_v61, %v3520_v14 }
 0x59b   : > { %v1170_v40 = vsub.f32 %v3520_v14, %v1154_v58  ;;  %v1121_v48 = vpop.permute.xlu1 %1120  ;;  %1226 = vadd.xlane.f32.xlu1 %v1201_v50 }
 0x59c   : > { %vm1141_vm7 = vcmp.eq.s32.totalorder %v1121_v48, 1 }
 0x59d   : > { %1186 = vst [vmem:[#allocation4 + $0x50] sm:$0xff] %v1170_v40  ;;  %v1202_v34 = vmul.f32 %v1170_v40, %v1170_v40  ;;  %v1250_v55 = vmul.f32 %v1170_v40, %v3520_v14 }
 0x59f   : > { %v1026_v49 = vpop.permute.xlu1 %1025  ;;  %1274 = vadd.xlane.f32.xlu1 %v1249_v51  ;;  %1228 = vadd.xlane.f32.xlu0 %v1202_v34 }
 0x5a0   : > { %v1059_v54 = vmul.f32 %v1026_v49, %v3797_v62 }
 0x5a2   : > { %v1155_v46 = vsel %vm1139_vm5, %v1059_v54, %v3522_v15 }
 0x5a3   : > { %v1171_v31 = vsub.f32 %v3522_v15, %v1155_v46  ;;  %v1031_v23 = vpop.permute.xlu1 %1030  ;;  %1276 = vadd.xlane.f32.xlu0 %v1250_v55 }
 0x5a4   : > { %v1060_v53 = vmul.f32 %v1031_v23, %v3806_v38 }
 0x5a5   : > { %1187 = vst [vmem:[#allocation4 + $0x58] sm:$0xff] %v1171_v31  ;;  %v1203_v42 = vmul.f32 %v1171_v31, %v1171_v31  ;;  %v1251_v41 = vmul.f32 %v1171_v31, %v3522_v15 }
 0x5a6   : > { %v1156_v56 = vsel %vm1140_vm6, %v1060_v53, %v3524_v16 }
 0x5a7   : > { %v1172_v33 = vsub.f32 %v3524_v16, %v1156_v56  ;;  %v1127_v62 = vpop.permute.xlu1 %1126  ;;  %1230 = vadd.xlane.f32.xlu1 %v1203_v42 }
 0x5a8   : > { %vm1143_vm9 = vcmp.eq.s32.totalorder %v1127_v62, 1 }
 0x5a9   : > { %1188 = vst [vmem:[#allocation4 + $0x60] sm:$0xff] %v1172_v33  ;;  %v1204_v57 = vmul.f32 %v1172_v33, %v1172_v33  ;;  %v1252_v38 = vmul.f32 %v1172_v33, %v3524_v16 }
 0x5ab   : > { %v1036_v60 = vpop.permute.xlu1 %1035  ;;  %1278 = vadd.xlane.f32.xlu1 %v1251_v41  ;;  %1232 = vadd.xlane.f32.xlu0 %v1204_v57 }
 0x5ac   : > { %v1061_v29 = vmul.f32 %v1036_v60, %v3811_v63 }
 0x5ae   : > { %v1157_v39 = vsel %vm1141_vm7, %v1061_v29, %v3531_v19 }
 0x5af   : > { %v1173_v44 = vsub.f32 %v3531_v19, %v1157_v39  ;;  %v1041_v43 = vpop.permute.xlu1 %1040  ;;  %1280 = vadd.xlane.f32.xlu0 %v1252_v38 }
 0x5b0   : > { %v1062_v45 = vmul.f32 %v1041_v43, %v3818_v52 }
 0x5b1   : > { %1189 = vst [vmem:[#allocation4 + $0x68] sm:$0xff] %v1173_v44  ;;  %v1205_v61 = vmul.f32 %v1173_v44, %v1173_v44  ;;  %v1253_v48 = vmul.f32 %v1173_v44, %v3531_v19 }
 0x5b2   : > { %v1158_v50 = vsel %vm1142_vm8, %v1062_v45, %v3533_v20 }
 0x5b3   : > { %v1174_v58 = vsub.f32 %v3533_v20, %v1158_v50  ;;  %1234 = vadd.xlane.f32.xlu1 %v1205_v61  ;;  %v1046_v63 = vpop.permute.xlu1 %1045 }
 0x5b4   : > { %v1063_v40 = vmul.f32 %v1046_v63, %v3822_v30 }
 0x5b5   : > { %1190 = vst [vmem:[#allocation4 + $0x70] sm:$0xff] %v1174_v58  ;;  %v1206_v51 = vmul.f32 %v1174_v58, %v1174_v58  ;;  %v1254_v54 = vmul.f32 %v1174_v58, %v3533_v20 }
 0x5b6   : > { %v1159_v34 = vsel %vm1143_vm9, %v1063_v40, %v3535_v21 }
 0x5b7   : > { %v1175_v52 = vsub.f32 %v3535_v21, %v1159_v34  ;;  %1282 = vadd.xlane.f32.xlu1 %v1253_v48  ;;  %1236 = vadd.xlane.f32.xlu0 %v1206_v51 }
 0x5b9   : > { %1191 = vst [vmem:[#allocation4 + $0x78] sm:$0xff] %v1175_v52  ;;  %v1207_v49 = vmul.f32 %v1175_v52, %v1175_v52  ;;  %v1255_v55 = vmul.f32 %v1175_v52, %v3535_v21 }
 0x5bb   : > { %1238 = vadd.xlane.f32.xlu1 %v1207_v49  ;;  %1284 = vadd.xlane.f32.xlu0 %v1254_v54 }
 0x5bf   : > { %1286 = vadd.xlane.f32.xlu1 %v1255_v55 }
 0x5e2   : > { %v3889_v30 = vpop.xlane.xlu0 %1208 }
 0x5e3   : > { %3006 = vrsqrt.f32 %v3889_v30  ;;  %vm1356_vm10 = vcmp.eq.f32.partialorder %v3889_v30, inf  ;;  %vm1358_vm11 = vcmp.eq.f32.partialorder %v3889_v30, 0.0 }
 0x5e6   : > { %v1257_v59 = vpop.xlane.xlu0 %1256 }
 0x5e8   : > { %v3891_v46 = vpop.xlane.xlu1 %1210  ;;  %1288 = vxpose.xlu0.b32.start [1/16] (narrow) %v1257_v59, 8 }
 0x5e9   : > { %3008 = vrsqrt.f32 %v3891_v46  ;;  %vm1363_vm12 = vcmp.eq.f32.partialorder %v3891_v46, inf  ;;  %vm1365_vm13 = vcmp.eq.f32.partialorder %v3891_v46, 0.0 }
 0x5ec   : > { %v1259_v31 = vpop.xlane.xlu1 %1258 }
 0x5ed   : > { %1289 = vxpose.xlu0.b32.cont [2/16] (narrow) %v1259_v31, 8  ;;  %v3007_v49 = vpop.eup %3006 }
 0x5ee   : > { %v1355_v59 = vmul.f32 %v3007_v49, %v3889_v30 }
 0x5f0   : > { %v3893_v23 = vpop.xlane.xlu0 %1212 }
 0x5f1   : > { %3010 = vrsqrt.f32 %v3893_v23  ;;  %vm1370_vm14 = vcmp.eq.f32.partialorder %v3893_v23, inf  ;;  %vm1372_vm15 = vcmp.eq.f32.partialorder %v3893_v23, 0.0 }
 0x5f2   : > { %1321 = vxpose.xlu1.b32.start [1/16] (narrow) %v3889_v30, 8 }
 0x5f3   : > { %v3009_v31 = vpop.eup %3008 }
 0x5f4   : > { %v1261_v53 = vpop.xlane.xlu0 %1260 }
 0x5f5   : > { %1290 = vxpose.xlu0.b32.cont [3/16] (narrow) %v1261_v53, 8 }
 0x5f6   : > { %1322 = vxpose.xlu1.b32.cont [2/16] (narrow) %v3891_v46, 8 }
 0x5f8   : > { %v1263_v42 = vpop.xlane.xlu1 %1262  ;;  %v3898_v56 = vpop.xlane.xlu0 %1214 }
 0x5f9   : > { %1291 = vxpose.xlu0.b32.cont [4/16] (narrow) %v1263_v42, 8  ;;  %3012 = vrsqrt.f32 %v3898_v56  ;;  %v1357_v42 = vsel %vm1356_vm10, %v3889_v30, %v1355_v59  ;;  %vm1377_vm0 = vcmp.eq.f32.partialorder %v3898_v56, inf  ;;  %vm1379_vm5 = vcmp.eq.f32.partialorder %v3898_v56, 0.0 }
 0x5fa   : > { %1323 = vxpose.xlu1.b32.cont [3/16] (narrow) %v3893_v23, 8 }
 0x5fe   : > { %1324 = vxpose.xlu1.b32.cont [4/16] (narrow) %v3898_v56, 8 }
 0x600   : > { %v3901_v33 = vpop.xlane.xlu0 %1216 }
 0x601   : > { %3014 = vrsqrt.f32 %v3901_v33  ;;  %vm1384_vm6 = vcmp.eq.f32.partialorder %v3901_v33, inf  ;;  %vm1386_vm7 = vcmp.eq.f32.partialorder %v3901_v33, 0.0 }
 0x602   : > { %1325 = vxpose.xlu1.b32.cont [5/16] (narrow) %v3901_v33, 8 }
 0x604   : > { %v1265_v62 = vpop.xlane.xlu0 %1264 }
 0x605   : > { %1292 = vxpose.xlu0.b32.cont [5/16] (narrow) %v1265_v62, 8  ;;  %v1362_v62 = vmul.f32 %v3009_v31, %v3891_v46 }
 0x608   : > { %v3904_v41 = vpop.xlane.xlu1 %1218 }
 0x609   : > { %1326 = vxpose.xlu1.b32.cont [6/16] (narrow) %v3904_v41, 8  ;;  %3016 = vrsqrt.f32 %v3904_v41  ;;  %vm1391_vm8 = vcmp.eq.f32.partialorder %v3904_v41, inf  ;;  %vm1393_vm9 = vcmp.eq.f32.partialorder %v3904_v41, 0.0 }
 0x60c   : > { %v1267_v57 = vpop.xlane.xlu1 %1266 }
 0x60d   : > { %1293 = vxpose.xlu0.b32.cont [6/16] (narrow) %v1267_v57, 8  ;;  %v3011_v57 = vpop.eup %3010 }
 0x610   : > { %v3907_v60 = vpop.xlane.xlu0 %1220 }
 0x611   : > { %1327 = vxpose.xlu1.b32.cont [7/16] (narrow) %v3907_v60, 8  ;;  %3018 = vrsqrt.f32 %v3907_v60  ;;  %vm1398_vm10 = vcmp.eq.f32.partialorder %v3907_v60, inf }
 0x614   : > { %v1269_v29 = vpop.xlane.xlu0 %1268 }
 0x615   : > { %1294 = vxpose.xlu0.b32.cont [7/16] (narrow) %v1269_v29, 8  ;;  %v1359_v29 = vand.u32 2147483648, %v3889_v30 }
 0x618   : > { %v3910_v38 = vpop.xlane.xlu1 %1222 }
 0x619   : > { %1328 = vxpose.xlu1.b32.cont [8/16] (narrow) %v3910_v38, 8  ;;  %3020 = vrsqrt.f32 %v3910_v38 }
 0x61c   : > { %v1271_v47 = vpop.xlane.xlu1 %1270 }
 0x61d   : > { %1295 = vxpose.xlu0.b32.cont [8/16] (narrow) %v1271_v47, 8  ;;  %v1360_v47 = vsel %vm1358_vm11, %v1359_v29, %v1357_v42  ;;  %v1380_v42 = vand.u32 2147483648, %v3898_v56  ;;  %vm1400_vm11 = vcmp.eq.f32.partialorder %v3907_v60, 0.0 }
 0x620   : > { %v3913_v39 = vpop.xlane.xlu0 %1224 }
 0x621   : > { %1329 = vxpose.xlu1.b32.cont [9/16] (narrow) %v3913_v39, 8  ;;  %3022 = vrsqrt.f32 %v3913_v39 }
 0x624   : > { %v1273_v44 = vpop.xlane.xlu0 %1272 }
 0x625   : > { %1296 = vxpose.xlu0.b32.cont [9/16] (narrow) %v1273_v44, 8  ;;  %v1364_v44 = vsel %vm1363_vm12, %v3891_v46, %v1362_v62  ;;  %vm1405_vm12 = vcmp.eq.f32.partialorder %v3910_v38, inf }
 0x628   : > { %v3916_v43 = vpop.xlane.xlu1 %1226 }
 0x629   : > { %1330 = vxpose.xlu1.b32.cont [10/16] (narrow) %v3916_v43, 8  ;;  %3024 = vrsqrt.f32 %v3916_v43 }
 0x62c   : > { %v1275_v45 = vpop.xlane.xlu1 %1274  ;;  %v3919_v61 = vpop.xlane.xlu0 %1228 }
 0x62d   : > { %1297 = vxpose.xlu0.b32.cont [10/16] (narrow) %v1275_v45, 8  ;;  %1331 = vxpose.xlu1.b32.cont [11/16] (narrow) %v3919_v61, 8  ;;  %v1369_v45 = vmul.f32 %v3011_v57, %v3893_v23  ;;  %3026 = vrsqrt.f32 %v3919_v61 }
 0x62f   : > { %v1371_v30 = vsel %vm1370_vm14, %v3893_v23, %v1369_v45  ;;  %vm1412_vm14 = vcmp.eq.f32.partialorder %v3913_v39, inf }
 0x630   : > { %v1277_v50 = vpop.xlane.xlu0 %1276 }
 0x631   : > { %1298 = vxpose.xlu0.b32.cont [11/16] (narrow) %v1277_v50, 8  ;;  %v3013_v50 = vpop.eup %3012 }
 0x632   : > { %v3015_v49 = vpop.eup %3014 }
 0x633   : > { %v1383_v31 = vmul.f32 %v3015_v49, %v3901_v33  ;;  %v1401_v49 = vand.u32 2147483648, %v3907_v60 }
 0x634   : > { %v3922_v58 = vpop.xlane.xlu1 %1230 }
 0x635   : > { %1332 = vxpose.xlu1.b32.cont [12/16] (narrow) %v3922_v58, 8  ;;  %3028 = vrsqrt.f32 %v3922_v58 }
 0x638   : > { %v1279_v63 = vpop.xlane.xlu1 %1278  ;;  %v3925_v40 = vpop.xlane.xlu0 %1232 }
 0x639   : > { %1299 = vxpose.xlu0.b32.cont [12/16] (narrow) %v1279_v63, 8  ;;  %1333 = vxpose.xlu1.b32.cont [13/16] (narrow) %v3925_v40, 8  ;;  %v1366_v63 = vand.u32 2147483648, %v3891_v46  ;;  %3030 = vrsqrt.f32 %v3925_v40 }
 0x63c   : > { %v1281_v48 = vpop.xlane.xlu0 %1280 }
 0x63d   : > { %1300 = vxpose.xlu0.b32.cont [13/16] (narrow) %v1281_v48, 8  ;;  %v1367_v48 = vsel %vm1365_vm13, %v1366_v63, %v1364_v44  ;;  %v1394_v63 = vand.u32 2147483648, %v3904_v41  ;;  %vm1407_vm13 = vcmp.eq.f32.partialorder %v3910_v38, 0.0 }
 0x640   : > { %v3930_v51 = vpop.xlane.xlu1 %1234 }
 0x641   : > { %1334 = vxpose.xlu1.b32.cont [14/16] (narrow) %v3930_v51, 8  ;;  %3032 = vrsqrt.f32 %v3930_v51 }
 0x644   : > { %v1283_v34 = vpop.xlane.xlu1 %1282  ;;  %v3934_v52 = vpop.xlane.xlu0 %1236 }
 0x645   : > { %1301 = vxpose.xlu0.b32.cont [14/16] (narrow) %v1283_v34, 8  ;;  %1335 = vxpose.xlu1.b32.cont [15/16] (narrow) %v3934_v52, 8  ;;  %v1376_v34 = vmul.f32 %v3013_v50, %v3898_v56  ;;  %3034 = vrsqrt.f32 %v3934_v52 }
 0x647   : > { %v1378_v46 = vsel %vm1377_vm0, %v3898_v56, %v1376_v34  ;;  %vm1419_vm0 = vcmp.eq.f32.partialorder %v3916_v43, inf }
 0x648   : > { %v3938_v54 = vpop.xlane.xlu1 %1238  ;;  %v1285_v55 = vpop.xlane.xlu0 %1284  ;;  %v1381_v62 = vsel %vm1379_vm5, %v1380_v42, %v1378_v46  ;;  %vm1421_vm5 = vcmp.eq.f32.partialorder %v3916_v43, 0.0 }
 0x649   : > { %1336 = vxpose.xlu1.b32.end [16/16] (narrow) %v3938_v54, 8  ;;  %1302 = vxpose.xlu0.b32.cont [15/16] (narrow) %v1285_v55, 8  ;;  %v1373_v55 = vand.u32 2147483648, %v3893_v23  ;;  %v1385_v23 = vsel %vm1384_vm6, %v3901_v33, %v1383_v31  ;;  %v1408_v31 = vand.u32 2147483648, %v3910_v38  ;;  %vm1426_vm6 = vcmp.eq.f32.partialorder %v3919_v61, inf }
 0x64a   : > { %3036 = vrsqrt.f32 %v3938_v54 }
 0x64b   : > { %v1374_v59 = vsel %vm1372_vm15, %v1373_v55, %v1371_v30  ;;  %vm1414_vm15 = vcmp.eq.f32.partialorder %v3913_v39, 0.0 }
 0x64c   : > { %v1287_v53 = vpop.xlane.xlu1 %1286 }
 0x64d   : > { %1303 = vxpose.xlu0.b32.end [16/16] (narrow) %v1287_v53, 8  ;;  %v3017_v53 = vpop.eup %3016 }
 0x64e   : > { %v1390_v57 = vmul.f32 %v3017_v53, %v3904_v41  ;;  %v3019_v29 = vpop.eup %3018 }
 0x64f   : > { %v1397_v45 = vmul.f32 %v3019_v29, %v3907_v60  ;;  %v3021_v50 = vpop.eup %3020 }
 0x650   : > { %v1392_v56 = vsel %vm1391_vm8, %v3904_v41, %v1390_v57  ;;  %v1404_v30 = vmul.f32 %v3021_v50, %v3910_v38  ;;  %v3023_v34 = vpop.eup %3022  ;;  %vm1433_vm8 = vcmp.eq.f32.partialorder %v3922_v58, inf }
 0x651   : > { %1466 = vxpose.xlu0.b32.start [1/16] (narrow) %v1360_v47, 8  ;;  %v1387_v47 = vand.u32 2147483648, %v3901_v33  ;;  %v1399_v33 = vsel %vm1398_vm10, %v3907_v60, %v1397_v45  ;;  %v3025_v46 = vpop.eup %3024  ;;  %vm1440_vm10 = vcmp.eq.f32.partialorder %v3925_v40, inf }
 0x652   : > { %v1402_v55 = vsel %vm1400_vm11, %v1401_v49, %v1399_v33  ;;  %v1406_v41 = vsel %vm1405_vm12, %v3910_v38, %v1404_v30  ;;  %v1418_v42 = vmul.f32 %v3025_v46, %v3916_v43  ;;  %vm1442_vm11 = vcmp.eq.f32.partialorder %v3925_v40, 0.0 }
 0x653   : > { %v1388_v44 = vsel %vm1386_vm7, %v1387_v47, %v1385_v23  ;;  %v1409_v53 = vsel %vm1407_vm13, %v1408_v31, %v1406_v41  ;;  %v1415_v23 = vand.u32 2147483648, %v3913_v39  ;;  %vm1428_vm7 = vcmp.eq.f32.partialorder %v3919_v61, 0.0 }
 0x654   : > { %v1420_v38 = vsel %vm1419_vm0, %v3916_v43, %v1418_v42  ;;  %vm1447_vm12 = vcmp.eq.f32.partialorder %v3930_v51, inf  ;;  %vm1449_vm13 = vcmp.eq.f32.partialorder %v3930_v51, 0.0  ;;  %vm1461_vm0 = vcmp.eq.f32.partialorder %v3938_v54, inf }
 0x655   : > { %1467 = vxpose.xlu0.b32.cont [2/16] (narrow) %v1367_v48, 8  ;;  %v1395_v48 = vsel %vm1393_vm9, %v1394_v63, %v1392_v56  ;;  %v1429_v63 = vand.u32 2147483648, %v3919_v61  ;;  %vm1435_vm9 = vcmp.eq.f32.partialorder %v3922_v58, 0.0 }
 0x659   : > { %1468 = vxpose.xlu0.b32.cont [3/16] (narrow) %v1374_v59, 8  ;;  %v1411_v59 = vmul.f32 %v3023_v34, %v3913_v39  ;;  %v1436_v34 = vand.u32 2147483648, %v3922_v58 }
 0x65b   : > { %v1413_v60 = vsel %vm1412_vm14, %v3913_v39, %v1411_v59  ;;  %v1443_v59 = vand.u32 2147483648, %v3925_v40  ;;  %vm1454_vm14 = vcmp.eq.f32.partialorder %v3934_v52, inf }
 0x65c   : > { %v1416_v57 = vsel %vm1414_vm15, %v1415_v23, %v1413_v60  ;;  %v1450_v60 = vand.u32 2147483648, %v3930_v51  ;;  %v1457_v23 = vand.u32 2147483648, %v3934_v52  ;;  %vm1456_vm15 = vcmp.eq.f32.partialorder %v3934_v52, 0.0 }
 0x65d   : > { %1469 = vxpose.xlu0.b32.cont [4/16] (narrow) %v1381_v62, 8  ;;  %v3027_v62 = vpop.eup %3026 }
 0x65e   : > { %v1425_v29 = vmul.f32 %v3027_v62, %v3919_v61  ;;  %v3029_v47 = vpop.eup %3028 }
 0x65f   : > { %v1432_v45 = vmul.f32 %v3029_v47, %v3922_v58  ;;  %v3031_v50 = vpop.eup %3030 }
 0x660   : > { %v1427_v39 = vsel %vm1426_vm6, %v3919_v61, %v1425_v29  ;;  %v1439_v33 = vmul.f32 %v3031_v50, %v3925_v40  ;;  %v3033_v30 = vpop.eup %3032 }
 0x661   : > { %1470 = vxpose.xlu0.b32.cont [5/16] (narrow) %v1388_v44, 8  ;;  %v1422_v44 = vand.u32 2147483648, %v3916_v43  ;;  %v1434_v43 = vsel %vm1433_vm8, %v3922_v58, %v1432_v45  ;;  %v3035_v41 = vpop.eup %3034 }
 0x662   : > { %v1437_v49 = vsel %vm1435_vm9, %v1436_v34, %v1434_v43  ;;  %v1441_v61 = vsel %vm1440_vm10, %v3925_v40, %v1439_v33  ;;  %v1453_v58 = vmul.f32 %v3035_v41, %v3934_v52 }
 0x663   : > { %v1423_v56 = vsel %vm1421_vm5, %v1422_v44, %v1420_v38  ;;  %v1444_v46 = vsel %vm1442_vm11, %v1443_v59, %v1441_v61  ;;  %vm1463_vm5 = vcmp.eq.f32.partialorder %v3938_v54, 0.0 }
 0x664   : > { %v1455_v62 = vsel %vm1454_vm14, %v3934_v52, %v1453_v58 }
 0x665   : > { %1471 = vxpose.xlu0.b32.cont [6/16] (narrow) %v1395_v48, 8  ;;  %v1430_v48 = vsel %vm1428_vm7, %v1429_v63, %v1427_v39 }
 0x669   : > { %1472 = vxpose.xlu0.b32.cont [7/16] (narrow) %v1402_v55, 8  ;;  %v1446_v55 = vmul.f32 %v3033_v30, %v3930_v51 }
 0x66b   : > { %v1448_v31 = vsel %vm1447_vm12, %v3930_v51, %v1446_v55  ;;  %v1464_v51 = vand.u32 2147483648, %v3938_v54 }
 0x66c   : > { %v1451_v42 = vsel %vm1449_vm13, %v1450_v60, %v1448_v31 }
 0x66d   : > { %1473 = vxpose.xlu0.b32.cont [8/16] (narrow) %v1409_v53, 8  ;;  %v3037_v53 = vpop.eup %3036 }
 0x66e   : > { %v1460_v40 = vmul.f32 %v3037_v53, %v3938_v54 }
 0x670   : > { %v1462_v38 = vsel %vm1461_vm0, %v3938_v54, %v1460_v40 }
 0x671   : > { %1474 = vxpose.xlu0.b32.cont [9/16] (narrow) %v1416_v57, 8  ;;  %v1458_v57 = vsel %vm1456_vm15, %v1457_v23, %v1455_v62  ;;  %v1465_v29 = vsel %vm1463_vm5, %v1464_v51, %v1462_v38 }
 0x675   : > { %1475 = vxpose.xlu0.b32.cont [10/16] (narrow) %v1423_v56, 8 }
 0x679   : > { %1476 = vxpose.xlu0.b32.cont [11/16] (narrow) %v1430_v48, 8 }
 0x67d   : > { %1477 = vxpose.xlu0.b32.cont [12/16] (narrow) %v1437_v49, 8 }
 0x681   : > { %1478 = vxpose.xlu0.b32.cont [13/16] (narrow) %v1444_v46, 8 }
 0x685   : > { %1479 = vxpose.xlu0.b32.cont [14/16] (narrow) %v1451_v42, 8 }
 0x689   : > { %1480 = vxpose.xlu0.b32.cont [15/16] (narrow) %v1458_v57, 8 }
 0x68d   : > { %1481 = vxpose.xlu0.b32.end [16/16] (narrow) %v1465_v29, 8  ;;  %v1337_v47 = vpop.trf.xlu1 }
 0x68e   : > { %1353 = vst [vmem:[#allocation5 + $0x1] sm:$0x1] %v1337_v47 }
 0x691   : > { %v1304_v44 = vpop.trf.xlu0 }
 0x692   : > { %1320 = vst [vmem:[#allocation5] sm:$0x1] %v1304_v44 }
 0x6d1   : > { %v1482_v56 = vpop.trf.xlu0 }
 0x6d2   : > { %1498 = vst [vmem:[#allocation5 + $0x2] sm:$0x1] %v1482_v56 }
 0x6d3 PF: > { %v1516_v52 = vld [vmem:[#allocation4] sm:$0xff]  ;;  %v1517_v39 = vld [vmem:[#allocation4 + $0x8] sm:$0xff]  ;;  %v1518_v45 = vld [vmem:[#allocation4 + $0x10] sm:$0xff]  ;;  %2731 = vmatprep.mubr.f32.mxu0 %v3484_v0  ;;  %v1702_v54 = vsub.s32 0, %v3591_v26  ;;  %v3265_v34 = vmov 0   ;;  %vm1694_vm7 = vcmp.le.f32.partialorder %v3635_v27, %v3526_v17  ;;  %vm1696_vm8 = vcmp.le.f32.partialorder %v3637_v28, %v3526_v17  ;;  %s1826_s16 = smul.f32 0.5, %s3488_s7 }
 0x6d4   : > { %v2797_v50 = vpack.c.bf16 %v1517_v39, %v1516_v52  ;;  %v1519_v63 = vld [vmem:[#allocation4 + $0x18] sm:$0xff]  ;;  %v1692_v43 = vld [vmem:[#allocation5 + $0x4] sm:$0x1]  ;;  %v1521_v30 = vld [vmem:[#allocation4 + $0x28] sm:$0xff]  ;;  %vm1695_vm10 = vcmp.le.f32.partialorder %v3633_v25, %v3526_v17  ;;  %vm1697_vm12 = vcmp.le.f32.partialorder %v3631_v24, %v3526_v17  ;;  %v3266_v26 = vmov 0.0   ;;  %s1766_s24 = smul.f32 0.5, %s3482_s23 }
 0x6d5   : > { %v2801_v48 = vpack.c.bf16 %v1519_v63, %v1518_v45  ;;  %v1520_v33 = vld [vmem:[#allocation4 + $0x20] sm:$0xff]  ;;  %vm1698_vm6 = vcmp.gt.f32.partialorder %v1692_v43, 0.0  ;;  %v1522_v46 = vld [vmem:[#allocation4 + $0x30] sm:$0xff]  ;;  %v1523_v31 = vld [vmem:[#allocation4 + $0x38] sm:$0xff]  ;;  %v1899_v52 = vpack.c.bf16 %v3486_v1, %v3484_v0  ;;  %p2553_p0 = scmp.ne.s32.totalorder %s3239_s15, 1 }
 0x6d6   : > { %2798 = vmatprep.subr.bf16.mxu0 %v2797_v50  ;;  %v1699_v49 = vsel %vm1698_vm6, 1, %v3265_v34  ;;  %v2805_v55 = vpack.c.bf16 %v1521_v30, %v1520_v33  ;;  %v2809_v60 = vpack.c.bf16 %v1523_v31, %v1522_v46  ;;  %v1524_v17 = vld [vmem:[#allocation4 + $0x40] sm:$0xff]  ;;  %v1525_v42 = vld [vmem:[#allocation4 + $0x48] sm:$0xff]  ;;  %v1526_v40 = vld [vmem:[#allocation4 + $0x50] sm:$0xff] }
 0x6d7   : > { %2800 = vmatpush3.bf16.xpose.msra.mxu0 %v2797_v50  ;;  %v1703_v61 = vrot.slane %v1699_v49, %v1702_v54  ;;  %v2813_v62 = vpack.c.bf16 %v1525_v42, %v1524_v17  ;;  %v1527_v23 = vld [vmem:[#allocation4 + $0x58] sm:$0xff]  ;;  %v1528_v38 = vld [vmem:[#allocation4 + $0x60] sm:$0xff]  ;;  %v1529_v51 = vld [vmem:[#allocation4 + $0x68] sm:$0xff]  ;;  %2737 = vmatprep.subr.bf16.mxu1 %v1899_v52 }
 0x6d8   : > { %2802 = vmatprep.subr.bf16.mxu0 %v2801_v48  ;;  %v2817_v57 = vpack.c.bf16 %v1527_v23, %v1526_v40  ;;  %v2821_v29 = vpack.c.bf16 %v1529_v51, %v1528_v38  ;;  %v1530_v47 = vld [vmem:[#allocation4 + $0x70] sm:$0xff]  ;;  %v1531_v44 = vld [vmem:[#allocation4 + $0x78] sm:$0xff]  ;;  %2738 = vmatpush3.bf16.msra.mxu1 %v1899_v52  ;;  %v2534_v39 = vld [vmem:[#allocation5] ss:$0 sm:$0xff] }
 0x6d9   : > { %vm1704_vm9 = vcmp.eq.s32.totalorder %v1703_v61, 1  ;;  %v2825_v56 = vpack.c.bf16 %v1531_v44, %v1530_v47  ;;  %v1805_v47 = vstv %s3547_s9 }
 0x6da   : > { %vm1705_vm11 = vmand %vm1694_vm7, %vm1704_vm9 }
 0x6db   : > { %v1709_v41 = vsel %vm1705_vm11, 1.0, %v3266_v26  ;;  %vm1707_vm13 = vmand %vm1696_vm8, %vm1704_vm9 }
 0x6dc   : > { %1713 = vmax.xlane.f32.xlu0 %v1709_v41  ;;  %v1711_v59 = vsel %vm1707_vm13, 1.0, %v3266_v26  ;;  %vm1706_vm14 = vmand %vm1695_vm10, %vm1704_vm9 }
 0x6dd   : > { %1717 = vmax.xlane.f32.xlu1 %v1711_v59  ;;  %v1710_v58 = vsel %vm1706_vm14, 1.0, %v3266_v26  ;;  %vm1708_vm15 = vmand %vm1697_vm12, %vm1704_vm9 }
 0x6de   : > { %v1712_v53 = vsel %vm1708_vm15, 1.0, %v3266_v26 }
 0x6df   : > { %2804 = vmatpush3.bf16.xpose.msra.mxu0 %v2801_v48  ;;  %v2535_v48 = vld [vmem:[#allocation5 + $0x1] ss:$0 sm:$0xff] }
 0x6e0   : > { %2806 = vmatprep.subr.bf16.mxu0 %v2805_v55  ;;  %1715 = vmax.xlane.f32.xlu0 %v1710_v58 }
 0x6e1   : > { %1719 = vmax.xlane.f32.xlu1 %v1712_v53 }
 0x6e7   : > { %2808 = vmatpush3.bf16.xpose.msra.mxu0 %v2805_v55 }
 0x6e8   : > { %2810 = vmatprep.subr.bf16.mxu0 %v2809_v60 }
 0x6ef   : > { %2812 = vmatpush3.bf16.xpose.msra.mxu0 %v2809_v60 }
 0x6f0   : > { %2814 = vmatprep.subr.bf16.mxu0 %v2813_v62 }
 0x6f7   : > { %2816 = vmatpush3.bf16.xpose.msra.mxu0 %v2813_v62 }
 0x6f8   : > { %2818 = vmatprep.subr.bf16.mxu0 %v2817_v57 }
 0x6ff   : > { %2820 = vmatpush3.bf16.xpose.msra.mxu0 %v2817_v57 }
 0x700   : > { %2822 = vmatprep.subr.bf16.mxu0 %v2821_v29 }
 0x707   : > { %2824 = vmatpush3.bf16.xpose.msra.mxu0 %v2821_v29 }
 0x708   : > { %2826 = vmatprep.subr.bf16.mxu0 %v2825_v56 }
 0x70f   : > { %2828 = vmatpush3.bf16.xpose.msra.mxu0 %v2825_v56 }
 0x716   : > { %2732 = vmatmul.mubr.f32.vlgmr.msra.gmra.mrb[0].mxu0 %v3486_v1  ;;  %v2536_v1 = vld [vmem:[#allocation5 + $0x2] ss:$0 sm:$0xff] }
 0x717   : > { %2734 = vmatprep.mubr.f32.mxu0 %v3490_v2 }
 0x71a   : > { %2735 = vmatmul.mubr.f32.gmra.mrb[2].mxu0 %v3492_v3 }
 0x7e9   : > { %v2733_v45 = vpop.f32.mrb[0].mxu0 }
 0x7ea   : > { %v1625_v50 = vsub.f32 %v2733_v45, %v2534_v39  ;;  %v1601_v63 = vpop.f32.mrb[1].mxu0 }
 0x7eb   : > { %v1624_v54 = vsub.f32 %v1601_v63, %v2534_v39  ;;  %v4091_v63 = vpop.xlane.xlu0 %1713 }
 0x7ec   : > { %v1629_v43 = vmul.f32 %v1625_v50, %v1625_v50  ;;  %v1681_v23 = vand.u32 2147483647, %v1625_v50  ;;  %vm1721_vm13 = vcmp.gt.f32.partialorder %v4091_v63, 0.0 }
 0x7ed   : > { %v1628_v33 = vmul.f32 %v1624_v54, %v1624_v54  ;;  %v2736_v30 = vpop.f32.mrb[2].mxu0  ;;  %v1680_v53 = vand.u32 2147483647, %v1624_v54 }
 0x7ee   : > { %v1637_v34 = vmul.f32 %v2535_v48, %v1629_v43  ;;  %v1627_v49 = vsub.f32 %v2736_v30, %v2534_v39  ;;  %v1611_v61 = vpop.f32.mrb[3].mxu0  ;;  %v4097_v30 = vstv %s1766_s24 }
 0x7ef   : > { %v1636_v55 = vmul.f32 %v2535_v48, %v1628_v33  ;;  %v1626_v26 = vsub.f32 %v1611_v61, %v2534_v39  ;;  %v4075_v29 = vmul.f32 %v2536_v1, %v1680_v53  ;;  %v4084_v39 = vmul.f32 %v2536_v1, %v1681_v23  ;;  %v4112_v23 = vpop.xlane.xlu0 %1715 }
 0x7f0   : > { %v1631_v41 = vmul.f32 %v1627_v49, %v1627_v49  ;;  %v1683_v59 = vand.u32 2147483647, %v1627_v49  ;;  %v4053_v0 = vsub.f32 %v3633_v25, %v1637_v34  ;;  %v4095_v33 = vstv %s3545_s5  ;;  %v4101_v49 = vpop.xlane.xlu1 %1717 }
 0x7f1   : > { %v4056_v46 = vsub.f32 %v3635_v27, %v1636_v55  ;;  %v1630_v31 = vmul.f32 %v1626_v26, %v1626_v26  ;;  %v1682_v58 = vand.u32 2147483647, %v1626_v26  ;;  %v4099_v34 = vstv %s1826_s16 }
 0x7f2   : > { %v4058_v60 = vmul.f32 %v2536_v1, %v1683_v59  ;;  %v1649_v17 = vmax.f32 %v4053_v0, 0.0  ;;  %v1639_v42 = vmul.f32 %v2535_v48, %v1631_v41 }
 0x7f3   : > { %v4062_v62 = vmax.f32 %v4056_v46, 0.0  ;;  %v1638_v40 = vmul.f32 %v2535_v48, %v1630_v31  ;;  %v4064_v25 = vmul.f32 %v2536_v1, %v1682_v58  ;;  %v1802_v48 = vmul.f32 2.0, %v4084_v39 }
 0x7f4   : > { %v1804_v27 = vmul.f32 2.0, %v4058_v60  ;;  %3038 = vrsqrt.f32 %v1649_v17  ;;  %v4068_v57 = vsub.f32 %v3631_v24, %v1639_v42  ;;  %vm1661_vm9 = vcmp.eq.f32.partialorder %v1649_v17, inf }
 0x7f5   : > { %3040 = vrsqrt.f32 %v4062_v62  ;;  %v1803_v38 = vmul.f32 2.0, %v4064_v25  ;;  %v4073_v51 = vsub.f32 %v3637_v28, %v1638_v40  ;;  %v1801_v28 = vmul.f32 2.0, %v4075_v29 }
 0x7f6   : > { %v4079_v44 = vmax.f32 %v4068_v57, 0.0  ;;  %v1809_v24 = vmul.f32 %v1805_v47, %v1804_v27  ;;  %vm1830_vm6 = vcmp.ge.f32.partialorder %v4064_v25, %v4099_v34  ;;  %vm1835_vm7 = vcmp.lt.f32.partialorder %v4064_v25, %v3539_v22 }
 0x7f7   : > { %v4082_v56 = vmax.f32 %v4073_v51, 0.0  ;;  %v1808_v52 = vmul.f32 %v1805_v47, %v1803_v38  ;;  %v1806_v41 = vmul.f32 %v1805_v47, %v1801_v28  ;;  %vm1654_vm8 = vcmp.eq.f32.partialorder %v4062_v62, inf }
 0x7f8   : > { %3042 = vrsqrt.f32 %v4079_v44  ;;  %v2544_v50 = vadd.f32 -1.0, %v1809_v24  ;;  %vm1675_vm0 = vcmp.eq.f32.partialorder %v4079_v44, inf  ;;  %vm1677_vm5 = vcmp.eq.f32.partialorder %v4079_v44, 0.0 }
 0x7f9   : > { %3044 = vrsqrt.f32 %v4082_v56  ;;  %v2543_v45 = vadd.f32 -1.0, %v1808_v52  ;;  %v1678_v1 = vand.u32 2147483648, %v4079_v44  ;;  %v1664_v42 = vand.u32 2147483648, %v1649_v17 }
 0x7fa   : > { %v1817_v43 = vmul.f32 %v2544_v50, %v2544_v50  ;;  %v1807_v40 = vmul.f32 %v1805_v47, %v1802_v48  ;;  %vm1831_vm10 = vcmp.ge.f32.partialorder %v4058_v60, %v4099_v34  ;;  %v1657_v38 = vand.u32 2147483648, %v4062_v62  ;;  %v4122_v48 = vpop.xlane.xlu1 %1719 }
 0x7fb   : > { %v1816_v54 = vmul.f32 %v2543_v45, %v2543_v45  ;;  %vm1663_vm11 = vcmp.eq.f32.partialorder %v1649_v17, 0.0  ;;  %vm1656_vm12 = vcmp.eq.f32.partialorder %v4062_v62, 0.0  ;;  %v2541_v50 = vadd.f32 -1.0, %v1806_v41 }
 0x7fc   : > { %v1821_v26 = vsub.f32 1.0, %v1817_v43  ;;  %vm1668_vm14 = vcmp.eq.f32.partialorder %v4082_v56, inf  ;;  %vm1670_vm15 = vcmp.eq.f32.partialorder %v4082_v56, 0.0  ;;  %vm1724_vm4 = vcmp.gt.f32.partialorder %v4122_v48, 0.0 }
 0x7fd   : > { %v1820_v55 = vsub.f32 1.0, %v1816_v54 }
 0x7fe   : > { %v3039_v61 = vpop.eup %3038  ;;  %v1825_v27 = vmax.f32 %v1821_v26, 0.0  ;;  %v1671_v26 = vand.u32 2147483648, %v4082_v56 }
 0x7ff   : > { %v3041_v59 = vpop.eup %3040  ;;  %v1660_v31 = vmul.f32 %v3039_v61, %v1649_v17  ;;  %v1824_v58 = vmax.f32 %v1820_v55, 0.0 }
 0x800   : > { %v1653_v53 = vmul.f32 %v3041_v59, %v4062_v62  ;;  %v1844_v59 = vmul.f32 %v1825_v27, %v1825_v27 }
 0x801   : > { %v1662_v52 = vsel %vm1661_vm9, %v1649_v17, %v1660_v31  ;;  %v1843_v47 = vmul.f32 %v1824_v58, %v1824_v58  ;;  %vm1723_vm9 = vcmp.gt.f32.partialorder %v4101_v49, 0.0 }
 0x802   : > { %v3043_v24 = vpop.eup %3042  ;;  %v1655_v28 = vsel %vm1654_vm8, %v4062_v62, %v1653_v53  ;;  %v4119_v45 = vsel %vm1663_vm11, %v1664_v42, %v1662_v52  ;;  %vm1722_vm8 = vcmp.gt.f32.partialorder %v4112_v23, 0.0  ;;  %v2542_v62 = vadd.f32 -1.0, %v1807_v40 }
 0x803   : > { %v3045_v54 = vpop.eup %3044  ;;  %v1674_v43 = vmul.f32 %v3043_v24, %v4079_v44  ;;  %v4125_v61 = vsel %vm1656_vm12, %v1657_v38, %v1655_v28  ;;  %v1742_v17 = vmul.f32 2.0, %v4119_v45  ;;  %vm1836_vm11 = vcmp.lt.f32.partialorder %v4058_v60, %v3539_v22 }
 0x804   : > { %v1667_v55 = vmul.f32 %v3045_v54, %v4082_v56  ;;  %vm1855_vm12 = vcmp.lt.f32.partialorder %v4064_v25, %v4099_v34  ;;  %v1741_v42 = vmul.f32 2.0, %v4125_v61  ;;  %v1847_v52 = vmul.f32 %v1843_v47, %v1824_v58 }
 0x805   : > { %v1676_v41 = vsel %vm1675_vm0, %v4079_v44, %v1674_v43  ;;  %v1747_v40 = vmul.f32 %v4095_v33, %v1742_v17  ;;  %v1814_v28 = vmul.f32 %v2541_v50, %v2541_v50  ;;  %v1815_v54 = vmul.f32 %v2542_v62, %v2542_v62  ;;  %vm4171_vm0 = vmand %vm1830_vm6, %vm1835_vm7 }
 0x806   : > { %v1669_v31 = vsel %vm1668_vm14, %v4082_v56, %v1667_v55  ;;  %v4144_v53 = vsel %vm1677_vm5, %v1678_v1, %v1676_v41  ;;  %v4158_v1 = vmul.f32 %v1844_v59, %v1825_v27  ;;  %v1746_v27 = vmul.f32 %v4095_v33, %v1741_v42  ;;  %vm4190_vm6 = vmand %vm1831_vm10, %vm1836_vm11 }
 0x807   : > { %v4149_v38 = vsel %vm1670_vm15, %v1671_v26, %v1669_v31  ;;  %v1744_v24 = vmul.f32 2.0, %v4144_v53  ;;  %v2538_v47 = vadd.f32 -1.0, %v1747_v40  ;;  %vm1768_vm5 = vcmp.ge.f32.partialorder %v4125_v61, %v4097_v30  ;;  %vm4207_vm11 = vmand %vm396_vm1, %vm1721_vm13 }
 0x808   : > { %v1743_v56 = vmul.f32 2.0, %v4149_v38  ;;  %vm1769_vm15 = vcmp.ge.f32.partialorder %v4119_v45, %v4097_v30  ;;  %v1851_v43 = vsel %vm4171_vm0, %v1847_v52, 0.0  ;;  %vm1773_vm14 = vcmp.lt.f32.partialorder %v4125_v61, %v3529_v18  ;;  %vm4220_vm10 = vmand %vm397_vm2, %vm1722_vm8 }
 0x809   : > { %v1749_v44 = vmul.f32 %v4095_v33, %v1744_v24  ;;  %v1818_v55 = vsub.f32 1.0, %v1814_v28  ;;  %vm1856_vm7 = vcmp.lt.f32.partialorder %v4058_v60, %v4099_v34  ;;  %v2537_v26 = vadd.f32 -1.0, %v1746_v27 }
 0x80a   : > { %v1748_v58 = vmul.f32 %v4095_v33, %v1743_v56  ;;  %v1755_v41 = vmul.f32 %v2538_v47, %v2538_v47  ;;  %v1819_v59 = vsub.f32 1.0, %v1815_v54  ;;  %v1852_v42 = vsel %vm4190_vm6, %v4158_v1, 0.0  ;;  %v1883_v33 = vld [vmem:[#allocation3 + $0x10] sm:$0xff] }
 0x80b   : > { %v2540_v17 = vadd.f32 -1.0, %v1749_v44  ;;  %v1822_v40 = vmax.f32 %v1818_v55, 0.0  ;;  %v1900_v52 = vpack.c.bf16 %v3492_v3, %v3490_v2  ;;  %v1754_v56 = vmul.f32 %v2537_v26, %v2537_v26 }
 0x80c   : > { %v2539_v62 = vadd.f32 -1.0, %v1748_v58  ;;  %v1759_v54 = vsub.f32 1.0, %v1755_v41  ;;  %v1823_v44 = vmax.f32 %v1819_v59, 0.0  ;;  %v1859_v2 = vsel %vm1855_vm12, 1.0, %v1851_v43  ;;  %vm4232_vm12 = vmand %vm398_vm3, %vm1723_vm9 }
 0x80d   : > { %v1757_v31 = vmul.f32 %v2540_v17, %v2540_v17  ;;  %v1841_v63 = vmul.f32 %v1822_v40, %v1822_v40  ;;  %2739 = vmatprep.subr.bf16.mxu1 %v1900_v52  ;;  %v1758_v23 = vsub.f32 1.0, %v1754_v56  ;;  %vm4496_vm0 = vcmp.lt.s32.totalorder %v3611_v37, 64 }
 0x80e   : > { %v1756_v28 = vmul.f32 %v2539_v62, %v2539_v62  ;;  %v1763_v1 = vmax.f32 %v1759_v54, 0.0  ;;  %v1842_v58 = vmul.f32 %v1823_v44, %v1823_v44  ;;  %2740 = vmatpush3.bf16.msra.mxu1 %v1900_v52  ;;  %vm4244_vm1 = vmand %vm4496_vm0, %vm1724_vm4  ;;  %vm1774_vm3 = vcmp.lt.f32.partialorder %v4119_v45, %v3529_v18 }
 0x80f   : > { %v1761_v32 = vsub.f32 1.0, %v1757_v31  ;;  %v1845_v50 = vmul.f32 %v1841_v63, %v1822_v40  ;;  %v1762_v47 = vmax.f32 %v1758_v23, 0.0  ;;  %vm4499_vm9 = vcmp.lt.f32.partialorder %v4075_v29, %v3539_v22  ;;  %vm4282_vm0 = vmand %vm1768_vm5, %vm1773_vm14 }
 0x810   : > { %v1760_v25 = vsub.f32 1.0, %v1756_v28  ;;  %v1782_v43 = vmul.f32 %v1763_v1, %v1763_v1  ;;  %vm4500_vm2 = vcmp.ge.f32.partialorder %v4075_v29, %v4099_v34  ;;  %v1846_v48 = vmul.f32 %v1842_v58, %v1823_v44  ;;  %vm1778_vm5 = vmand %vm1769_vm15, %vm1774_vm3 }
 0x811   : > { %v1765_v49 = vmax.f32 %v1761_v32, 0.0  ;;  %vm4256_vm6 = vmand %vm4500_vm2, %vm4499_vm9  ;;  %vm1775_vm4 = vcmp.lt.f32.partialorder %v4149_v38, %v3529_v18  ;;  %vm1776_vm8 = vcmp.lt.f32.partialorder %v4144_v53, %v3529_v18  ;;  %vm4503_vm13 = vcmp.lt.f32.partialorder %v4084_v39, %v3539_v22 }
 0x812   : > { %v1764_v27 = vmax.f32 %v1760_v25, 0.0  ;;  %vm4504_vm2 = vcmp.ge.f32.partialorder %v4084_v39, %v4099_v34  ;;  %v1781_v26 = vmul.f32 %v1762_v47, %v1762_v47  ;;  %v1786_v22 = vmul.f32 %v1782_v43, %v1763_v1 }
 0x813   : > { %v1784_v17 = vmul.f32 %v1765_v49, %v1765_v49  ;;  %vm4272_vm9 = vmand %vm4504_vm2, %vm4503_vm13  ;;  %vm1796_vm13 = vcmp.lt.f32.partialorder %v4144_v53, %v4097_v30  ;;  %v1860_v31 = vsel %vm1856_vm7, 1.0, %v1852_v42  ;;  %vm1794_vm14 = vcmp.lt.f32.partialorder %v4119_v45, %v4097_v30 }
 0x814   : > { %v1783_v62 = vmul.f32 %v1764_v27, %v1764_v27  ;;  %v1850_v41 = vsel %vm4272_vm9, %v1846_v48, 0.0  ;;  %vm4509_vm2 = vcmp.ge.f32.partialorder %v4144_v53, %v4097_v30  ;;  %v1785_v52 = vmul.f32 %v1781_v26, %v1762_v47  ;;  %v1881_v26 = vld [vmem:[#allocation3] sm:$0xff] }
 0x815   : > { %v1788_v59 = vmul.f32 %v1784_v17, %v1765_v49  ;;  %vm1780_vm9 = vmand %vm4509_vm2, %vm1776_vm8  ;;  %v1790_v28 = vsel %vm1778_vm5, %v1786_v22, 0.0  ;;  %v1849_v60 = vsel %vm4256_vm6, %v1845_v50, 0.0  ;;  %vm4510_vm7 = vcmp.ge.f32.partialorder %v4149_v38, %v4097_v30  ;;  %v1869_v50 = vld [vmem:[#allocation2] sm:$0x1] }
 0x816   : > { %v1787_v40 = vmul.f32 %v1783_v62, %v1764_v27  ;;  %vm1779_vm15 = vmand %vm4510_vm7, %vm1775_vm4  ;;  %vm1793_vm3 = vcmp.lt.f32.partialorder %v4125_v61, %v4097_v30  ;;  %v1798_v45 = vsel %vm1794_vm14, 1.0, %v1790_v28  ;;  %vm4511_vm8 = vcmp.lt.f32.partialorder %v4084_v39, %v4099_v34 }
 0x817   : > { %v1792_v42 = vsel %vm1780_vm9, %v1788_v59, 0.0  ;;  %v1858_v56 = vsel %vm4511_vm8, 1.0, %v1850_v41  ;;  %vm4512_vm6 = vcmp.ge.f32.partialorder %v4053_v0, 0.0  ;;  %v1789_v44 = vsel %vm4282_vm0, %v1785_v52, 0.0  ;;  %v1884_v41 = vld [vmem:[#allocation3 + $0x18] sm:$0xff] }
 0x818   : > { %v1791_v54 = vsel %vm1779_vm15, %v1787_v40, 0.0  ;;  %vm1738_vm5 = vmand %vm4512_vm6, %vm4220_vm10  ;;  %v1800_v18 = vsel %vm1796_vm13, 1.0, %v1792_v42  ;;  %v1862_v32 = vmul.f32 %v1858_v56, %v1798_v45  ;;  %vm4513_vm4 = vcmp.ge.f32.partialorder %v4056_v46, 0.0  ;;  %v1882_v40 = vld [vmem:[#allocation3 + $0x8] sm:$0xff]  ;;  %v1887_v56 = vld [vmem:[#allocation3 + $0x30] sm:$0xff] }
 0x819   : > { %vm1737_vm14 = vmand %vm4513_vm4, %vm4207_vm11  ;;  %vm4514_vm2 = vcmp.lt.f32.partialorder %v4149_v38, %v4097_v30  ;;  %v1864_v61 = vmul.f32 %v1860_v31, %v1800_v18  ;;  %v1797_v0 = vsel %vm1793_vm3, 1.0, %v1789_v44  ;;  %vm4515_vm10 = vcmp.lt.f32.partialorder %v4075_v29, %v4099_v34  ;;  %v1888_v44 = vld [vmem:[#allocation3 + $0x38] sm:$0xff] }
 0x81a   : > { %v1799_v39 = vsel %vm4514_vm2, 1.0, %v1791_v54  ;;  %v1857_v53 = vsel %vm4515_vm10, 1.0, %v1849_v60  ;;  %vm4516_vm0 = vcmp.ge.f32.partialorder %v4068_v57, 0.0  ;;  %v1866_v63 = vsel %vm1738_vm5, %v1862_v32, 0.0  ;;  %v1885_v54 = vld [vmem:[#allocation3 + $0x20] sm:$0xff] }
 0x81b   : > { %v1863_v3 = vmul.f32 %v1859_v2, %v1799_v39  ;;  %vm1740_vm13 = vmand %vm4516_vm0, %vm4244_vm1  ;;  %v1861_v24 = vmul.f32 %v1857_v53, %v1797_v0  ;;  %vm4517_vm11 = vcmp.ge.f32.partialorder %v4073_v51, 0.0  ;;  %vm1917_vm1 = vcmask 261120  }
 0x81c   : > { %vm1739_vm9 = vmand %vm4517_vm11, %vm4232_vm12  ;;  %v1868_v46 = vsel %vm1740_vm13, %v1864_v61, 0.0  ;;  %v1886_v61 = vld [vmem:[#allocation3 + $0x28] sm:$0xff] }
 0x81d   : > { %v1867_v30 = vsel %vm1739_vm9, %v1863_v3, 0.0  ;;  %v1865_v38 = vsel %vm1737_vm14, %v1861_v24, 0.0 }
 0x81e   : > { %v1898_v25 = vpack.c.bf16 %v1868_v46, %v1867_v30  ;;  %v1897_v23 = vpack.c.bf16 %v1866_v63, %v1865_v38  ;;  %v1870_v29 = vadd.f32 %v1866_v63, %v1865_v38 }
 0x820   : > { %1901 = vxpose.xlu0.c.b16.start [1/2] (short) %v1897_v23, 128  ;;  %v1871_v34 = vadd.f32 %v1870_v29, %v1867_v30  ;;  %v1889_v30 = vld [vmem:[#allocation3 + $0x40] sm:$0xff] }
 0x822   : > { %v1872_v2 = vadd.f32 %v1871_v34, %v1868_v46  ;;  %v1891_v46 = vld [vmem:[#allocation3 + $0x50] sm:$0xff]  ;;  %v1890_v34 = vld [vmem:[#allocation3 + $0x48] sm:$0xff] }
 0x824   : > { %v1873_v1 = vrot.slane %v1872_v2, 4  ;;  %1902 = vxpose.xlu0.c.b16.end [2/2] (short) %v1898_v25, 128  ;;  %v1892_v25 = vld [vmem:[#allocation3 + $0x58] sm:$0xff] }
 0x826   : > { %v1874_v57 = vadd.f32 %v1873_v1, %v1872_v2 }
 0x828   : > { %v1875_v58 = vrot.slane %v1874_v57, 2 }
 0x82a   : > { %v1876_v36 = vadd.f32 %v1875_v58, %v1874_v57 }
 0x82c   : > { %v1877_v49 = vrot.slane %v1876_v36, 1 }
 0x82e   : > { %v1878_v35 = vadd.f32 %v1877_v49, %v1876_v36  ;;  %v1895_v49 = vld [vmem:[#allocation3 + $0x70] sm:$0xff] }
 0x830   : > { %v1879_v27 = vadd.f32 %v1878_v35, %v1869_v50  ;;  %v1893_v50 = vld [vmem:[#allocation3 + $0x60] sm:$0xff] }
 0x832   : > { %1880 = vst [vmem:[#allocation2] sm:$0x1] %v1879_v27  ;;  %v1896_v27 = vld [vmem:[#allocation3 + $0x78] sm:$0xff] }
 0x886   : > { %v1909_v51 = vpop.trf.xlu0 }
 0x887   : > { %2741 = vmatprep.mubr.msk.bf16.mxu1 %vm1917_vm1, %v1909_v51 }
 0x88a   : > { %v1910_v47 = vpop.trf.xlu0 }
 0x88b   : > { %2742 = vmatmul.mubr.msk.bf16.vlgmr.msra.gmra.mrb[0].mxu1 %vm1917_vm1, %v1910_v47 }
 0x88e   : > { %v1911_v43 = vpop.trf.xlu0 }
 0x88f   : > { %2745 = vmatprep.mubr.msk.bf16.mxu1 %vm1917_vm1, %v1911_v43  ;;  %v1894_v43 = vld [vmem:[#allocation3 + $0x68] sm:$0xff] }
 0x892   : > { %v1912_v37 = vpop.trf.xlu0 }
 0x893   : > { %2746 = vmatmul.mubr.msk.bf16.gmra.mrb[4].mxu1 %vm1917_vm1, %v1912_v37 }
 0x896   : > { %v1913_v48 = vpop.trf.xlu0 }
 0x897   : > { %2749 = vmatprep.mubr.msk.bf16.mxu1 %vm1917_vm1, %v1913_v48 }
 0x89a   : > { %v1914_v17 = vpop.trf.xlu0 }
 0x89b   : > { %2750 = vmatmul.mubr.msk.bf16.gmra.mrb[8].mxu1 %vm1917_vm1, %v1914_v17 }
 0x89e   : > { %v1915_v55 = vpop.trf.xlu0 }
 0x89f   : > { %2753 = vmatprep.mubr.msk.bf16.mxu1 %vm1917_vm1, %v1915_v55 }
 0x8a2   : > { %v1916_v62 = vpop.trf.xlu0 }
 0x8a3   : > { %2754 = vmatmul.mubr.msk.bf16.gmra.mrb[12].mxu1 %vm1917_vm1, %v1916_v62 }
 0x95e   : > { %v2743_v22 = vpop.f32.mrb[0].mxu1 }
 0x95f   : > { %v2041_v59 = vadd.f32 %v2743_v22, %v1883_v33  ;;  %v1976_v31 = vpop.f32.mrb[1].mxu1  ;;  %v2075_v33 = vld [vmem:[#allocation2] sm:$0x1] (!%p2553_p0) }
 0x960   : > { %v2039_v52 = vadd.f32 %v1976_v31, %v1881_v26  ;;  %v2744_v28 = vpop.f32.mrb[2].mxu1  ;;  %2076 = vxpose.xlu0.b32.start.end [1/1] (short) (!%p2553_p0), %v2075_v33, 128  ;;  %v3267_v26 = vmov (!%p2553_p0), 0  }
 0x961   : > { %2057 = vst [vmem:[#allocation3 + $0x10] sm:$0xff] %v2041_v59  ;;  %v2042_v60 = vadd.f32 %v2744_v28, %v1884_v41  ;;  %v1979_v42 = vpop.f32.mrb[3].mxu1  ;;  %3047 = vset.pattern.permute.xlu1 (!%p2553_p0), %v3267_v26 }
 0x962   : > { %2055 = vst [vmem:[#allocation3] sm:$0xff] %v2039_v52  ;;  %v2040_v45 = vadd.f32 %v1979_v42, %v1882_v40 }
 0x963   : > { %2058 = vst [vmem:[#allocation3 + $0x18] sm:$0xff] %v2042_v60 }
 0x964   : > { %2056 = vst [vmem:[#allocation3 + $0x8] sm:$0xff] %v2040_v45 }
 0x966   : > { %v2747_v18 = vpop.f32.mrb[4].mxu1 }
 0x967   : > { %v2045_v32 = vadd.f32 %v2747_v18, %v1887_v56  ;;  %v1992_v39 = vpop.f32.mrb[5].mxu1 }
 0x968   : > { %v2043_v0 = vadd.f32 %v1992_v39, %v1885_v54  ;;  %v2748_v53 = vpop.f32.mrb[6].mxu1 }
 0x969   : > { %2061 = vst [vmem:[#allocation3 + $0x30] sm:$0xff] %v2045_v32  ;;  %v2046_v3 = vadd.f32 %v2748_v53, %v1888_v44  ;;  %v1995_v24 = vpop.f32.mrb[7].mxu1 }
 0x96a   : > { %2059 = vst [vmem:[#allocation3 + $0x20] sm:$0xff] %v2043_v0  ;;  %v2044_v63 = vadd.f32 %v1995_v24, %v1886_v61 }
 0x96b   : > { %2062 = vst [vmem:[#allocation3 + $0x38] sm:$0xff] %v2046_v3 }
 0x96c   : > { %2060 = vst [vmem:[#allocation3 + $0x28] sm:$0xff] %v2044_v63 }
 0x96e   : > { %v2751_v38 = vpop.f32.mrb[8].mxu1 }
 0x96f   : > { %v2049_v23 = vadd.f32 %v2751_v38, %v1891_v46  ;;  %v2008_v29 = vpop.f32.mrb[9].mxu1 }
 0x970   : > { %v2047_v2 = vadd.f32 %v2008_v29, %v1889_v30  ;;  %v2752_v1 = vpop.f32.mrb[10].mxu1 }
 0x971   : > { %2065 = vst [vmem:[#allocation3 + $0x50] sm:$0xff] %v2049_v23  ;;  %v2050_v57 = vadd.f32 %v2752_v1, %v1892_v25  ;;  %v2011_v58 = vpop.f32.mrb[11].mxu1 }
 0x972   : > { %2063 = vst [vmem:[#allocation3 + $0x40] sm:$0xff] %v2047_v2  ;;  %v2048_v36 = vadd.f32 %v2011_v58, %v1890_v34 }
 0x973   : > { %2066 = vst [vmem:[#allocation3 + $0x58] sm:$0xff] %v2050_v57 }
 0x974   : > { %2064 = vst [vmem:[#allocation3 + $0x48] sm:$0xff] %v2048_v36 }
 0x976   : > { %v2755_v35 = vpop.f32.mrb[12].mxu1  ;;  %2074 = sbr.rel (%p2553_p0) target bundleno = 2774 (0xad6), region = 64 }
 0x977   : > { %v2053_v51 = vadd.f32 %v2755_v35, %v1895_v49  ;;  %v2024_v47 = vpop.f32.mrb[13].mxu1 }
 0x978   : > { %v2051_v37 = vadd.f32 %v2024_v47, %v1893_v50  ;;  %v2756_v48 = vpop.f32.mrb[14].mxu1 }
 0x979   : > { %2069 = vst [vmem:[#allocation3 + $0x70] sm:$0xff] %v2053_v51  ;;  %v2054_v17 = vadd.f32 %v2756_v48, %v1896_v27  ;;  %v2027_v55 = vpop.f32.mrb[15].mxu1 }
 0x97a   : > { %2067 = vst [vmem:[#allocation3 + $0x60] sm:$0xff] %v2051_v37  ;;  %v2052_v62 = vadd.f32 %v2027_v55, %v1894_v43 }
 0x97b   : > { %2070 = vst [vmem:[#allocation3 + $0x78] sm:$0xff] %v2054_v17 }
 0x97c   : > { %2068 = vst [vmem:[#allocation3 + $0x68] sm:$0xff] %v2052_v62 }
 0x989   : > { %3046 = vset.pattern.permute.xlu0 %v3267_v26 }
 0x9e0   : > { %v2092_v22 = vpop.trf.xlu0 }
 0x9e1   : > { %3048 = vrcp.f32 %v2092_v22  ;;  %vm2108_vm12 = vcmp.gt.f32.partialorder %v2092_v22, 0.0 }
 0x9e2   : > { %v2284_v41 = vsel %vm2108_vm12, 1, %v3267_v26 }
 0x9e3   : > { %2301 = vperm.xlu1 %3047, %v2284_v41  }
 0x9e4   : > { %v2093_v59 = vpop.trf.xlu0 }
 0x9e5   : > { %vm2109_vm7 = vcmp.gt.f32.partialorder %v2093_v59, 0.0  ;;  %3050 = vrcp.f32 %v2093_v59 }
 0x9e6   : > { %v2285_v31 = vsel %vm2109_vm7, 1, %v3267_v26 }
 0x9e7   : > { %2304 = vperm.xlu1 %3047, %v2285_v31  }
 0x9e8   : > { %v2094_v40 = vpop.trf.xlu0 }
 0x9e9   : > { %vm2110_vm15 = vcmp.gt.f32.partialorder %v2094_v40, 0.0  ;;  %3052 = vrcp.f32 %v2094_v40 }
 0x9ea   : > { %v2286_v52 = vsel %vm2110_vm15, 1, %v3267_v26 }
 0x9eb   : > { %v3049_v28 = vpop.eup %3048  ;;  %2307 = vperm.xlu1 %3047, %v2286_v52  }
 0x9ec   : > { %v2095_v60 = vpop.trf.xlu0  ;;  %v2156_v42 = vsel %vm2108_vm12, %v3049_v28, 0.0 }
 0x9ed   : > { %vm2111_vm3 = vcmp.gt.f32.partialorder %v2095_v60, 0.0  ;;  %2190 = vperm.xlu0 %3046, %v2156_v42   ;;  %3054 = vrcp.f32 %v2095_v60 }
 0x9ee   : > { %v2287_v45 = vsel %vm2111_vm3, 1, %v3267_v26 }
 0x9ef   : > { %v3051_v56 = vpop.eup %3050  ;;  %2310 = vperm.xlu1 %3047, %v2287_v45  }
 0x9f0   : > { %v2096_v54 = vpop.trf.xlu0  ;;  %v2157_v18 = vsel %vm2109_vm7, %v3051_v56, 0.0 }
 0x9f1   : > { %vm2112_vm8 = vcmp.gt.f32.partialorder %v2096_v54, 0.0  ;;  %3056 = vrcp.f32 %v2096_v54 }
 0x9f2   : > { %v2288_v32 = vsel %vm2112_vm8, 1, %v3267_v26 }
 0x9f3   : > { %2195 = vperm.xlu1 %3047, %v2157_v18   ;;  %v3053_v39 = vpop.eup %3052 }
 0x9f4   : > { %v2097_v44 = vpop.trf.xlu0  ;;  %v2158_v0 = vsel %vm2110_vm15, %v3053_v39, 0.0 }
 0x9f5   : > { %vm2113_vm6 = vcmp.gt.f32.partialorder %v2097_v44, 0.0  ;;  %3058 = vrcp.f32 %v2097_v44 }
 0x9f6   : > { %v2289_v53 = vsel %vm2113_vm6, 1, %v3267_v26 }
 0x9f7   : > { %2313 = vperm.xlu1 %3047, %v2288_v32   ;;  %v3055_v24 = vpop.eup %3054 }
 0x9f8   : > { %v2098_v61 = vpop.trf.xlu0  ;;  %v2159_v46 = vsel %vm2111_vm3, %v3055_v24, 0.0  ;;  %v2172_v24 = vld [vmem:[#allocation3] sm:$0xff] }
 0x9f9   : > { %vm2114_vm5 = vcmp.gt.f32.partialorder %v2098_v61, 0.0  ;;  %3060 = vrcp.f32 %v2098_v61 }
 0x9fa   : > { %v2290_v30 = vsel %vm2114_vm5, 1, %v3267_v26 }
 0x9fb   : > { %2200 = vperm.xlu1 %3047, %v2158_v0   ;;  %v3057_v25 = vpop.eup %3056 }
 0x9fc   : > { %v2099_v3 = vpop.trf.xlu0  ;;  %v2160_v29 = vsel %vm2112_vm8, %v3057_v25, 0.0  ;;  %v2173_v25 = vld [vmem:[#allocation3 + $0x8] sm:$0xff] }
 0x9fd   : > { %vm2115_vm4 = vcmp.gt.f32.partialorder %v2099_v3, 0.0  ;;  %3062 = vrcp.f32 %v2099_v3 }
 0x9fe   : > { %v2291_v34 = vsel %vm2115_vm4, 1, %v3267_v26 }
 0x9ff   : > { %2316 = vperm.xlu1 %3047, %v2289_v53   ;;  %v3059_v1 = vpop.eup %3058 }
 0xa00   : > { %v2100_v63 = vpop.trf.xlu0  ;;  %v2161_v58 = vsel %vm2113_vm6, %v3059_v1, 0.0 }
 0xa01   : > { %vm2116_vm14 = vcmp.gt.f32.partialorder %v2100_v63, 0.0  ;;  %3064 = vrcp.f32 %v2100_v63 }
 0xa02   : > { %v2292_v49 = vsel %vm2116_vm14, 1, %v3267_v26 }
 0xa03   : > { %2205 = vperm.xlu1 %3047, %v2159_v46   ;;  %v3061_v35 = vpop.eup %3060 }
 0xa04   : > { %v2101_v38 = vpop.trf.xlu0  ;;  %v2162_v51 = vsel %vm2114_vm5, %v3061_v35, 0.0 }
 0xa05   : > { %vm2117_vm10 = vcmp.gt.f32.partialorder %v2101_v38, 0.0  ;;  %3066 = vrcp.f32 %v2101_v38 }
 0xa06   : > { %v2293_v43 = vsel %vm2117_vm10, 1, %v3267_v26 }
 0xa07   : > { %2319 = vperm.xlu1 %3047, %v2290_v30   ;;  %v3063_v37 = vpop.eup %3062 }
 0xa08   : > { %v2102_v23 = vpop.trf.xlu0  ;;  %v2163_v48 = vsel %vm2115_vm4, %v3063_v37, 0.0 }
 0xa09   : > { %vm2118_vm13 = vcmp.gt.f32.partialorder %v2102_v23, 0.0  ;;  %3068 = vrcp.f32 %v2102_v23 }
 0xa0a   : > { %v2294_v17 = vsel %vm2118_vm13, 1, %v3267_v26 }
 0xa0b   : > { %2210 = vperm.xlu1 %3047, %v2160_v29   ;;  %v3065_v55 = vpop.eup %3064 }
 0xa0c   : > { %v2103_v2 = vpop.trf.xlu0  ;;  %v2164_v62 = vsel %vm2116_vm14, %v3065_v55, 0.0 }
 0xa0d   : > { %vm2119_vm11 = vcmp.gt.f32.partialorder %v2103_v2, 0.0  ;;  %3070 = vrcp.f32 %v2103_v2  ;;  %v2174_v2 = vld [vmem:[#allocation3 + $0x10] sm:$0xff] }
 0xa0e   : > { %v2295_v33 = vsel %vm2119_vm11, 1, %v3267_v26 }
 0xa0f   : > { %2322 = vperm.xlu1 %3047, %v2291_v34   ;;  %v3067_v22 = vpop.eup %3066 }
 0xa10   : > { %v2104_v57 = vpop.trf.xlu0  ;;  %v2165_v41 = vsel %vm2117_vm10, %v3067_v22, 0.0 }
 0xa11   : > { %vm2120_vm2 = vcmp.gt.f32.partialorder %v2104_v57, 0.0  ;;  %3072 = vrcp.f32 %v2104_v57 }
 0xa12   : > { %v2296_v36 = vsel %vm2120_vm2, 1, %v3267_v26 }
 0xa13   : > { %2215 = vperm.xlu1 %3047, %v2161_v58   ;;  %2337 = vperm.xlu0 %3046, %v2296_v36   ;;  %v3069_v59 = vpop.eup %3068 }
 0xa14   : > { %v2105_v50 = vpop.trf.xlu0  ;;  %v2166_v31 = vsel %vm2118_vm13, %v3069_v59, 0.0 }
 0xa15   : > { %vm2121_vm9 = vcmp.gt.f32.partialorder %v2105_v50, 0.0  ;;  %3074 = vrcp.f32 %v2105_v50 }
 0xa16   : > { %v2297_v40 = vsel %vm2121_vm9, 1, %v3267_v26 }
 0xa17   : > { %2325 = vperm.xlu1 %3047, %v2292_v49   ;;  %v3071_v52 = vpop.eup %3070  ;;  %v2175_v49 = vld [vmem:[#allocation3 + $0x18] sm:$0xff] }
 0xa18   : > { %v2106_v27 = vpop.trf.xlu0  ;;  %v2167_v60 = vsel %vm2119_vm11, %v3071_v52, 0.0 }
 0xa19   : > { %vm2122_vm0 = vcmp.gt.f32.partialorder %v2106_v27, 0.0  ;;  %3076 = vrcp.f32 %v2106_v27 }
 0xa1a   : > { %v2298_v47 = vsel %vm2122_vm0, 1, %v3267_v26 }
 0xa1b   : > { %2220 = vperm.xlu1 %3047, %v2162_v51   ;;  %2343 = vperm.xlu0 %3046, %v2298_v47   ;;  %v3073_v42 = vpop.eup %3072  ;;  %v2176_v51 = vld [vmem:[#allocation3 + $0x20] sm:$0xff] }
 0xa1c   : > { %v2107_v28 = vpop.trf.xlu0  ;;  %v2168_v45 = vsel %vm2120_vm2, %v3073_v42, 0.0 }
 0xa1d   : > { %3078 = vrcp.f32 %v2107_v28  ;;  %vm2123_vm1 = vcmp.gt.f32.partialorder %v2107_v28, 0.0 }
 0xa1e   : > { %v2299_v61 = vsel %vm2123_vm1, 1, %v3267_v26 }
 0xa1f   : > { %2328 = vperm.xlu1 %3047, %v2293_v43   ;;  %v3075_v56 = vpop.eup %3074 }
 0xa20   : > { %v2169_v54 = vsel %vm2121_vm9, %v3075_v56, 0.0 }
 0xa23   : > { %2225 = vperm.xlu1 %3047, %v2163_v48   ;;  %v3077_v18 = vpop.eup %3076  ;;  %v2177_v48 = vld [vmem:[#allocation3 + $0x28] sm:$0xff] }
 0xa24   : > { %v2170_v44 = vsel %vm2122_vm0, %v3077_v18, 0.0 }
 0xa27   : > { %2331 = vperm.xlu1 %3047, %v2294_v17   ;;  %v3079_v32 = vpop.eup %3078 }
 0xa28   : > { %v2171_v39 = vsel %vm2123_vm1, %v3079_v32, 0.0 }
 0xa2b   : > { %2230 = vperm.xlu1 %3047, %v2164_v62  }
 0xa2f   : > { %2334 = vperm.xlu1 %3047, %v2295_v33   ;;  %v2178_v33 = vld [vmem:[#allocation3 + $0x30] sm:$0xff] }
 0xa33   : > { %2235 = vperm.xlu1 %3047, %v2165_v41  }
 0xa37   : > { %2240 = vperm.xlu1 %3047, %v2166_v31   ;;  %v2179_v31 = vld [vmem:[#allocation3 + $0x38] sm:$0xff] }
 0xa3b   : > { %2340 = vperm.xlu1 %3047, %v2297_v40  }
 0xa3f   : > { %2245 = vperm.xlu1 %3047, %v2167_v60   ;;  %v2180_v60 = vld [vmem:[#allocation3 + $0x40] sm:$0xff] }
 0xa43   : > { %2250 = vperm.xlu1 %3047, %v2168_v45  }
 0xa47   : > { %2255 = vperm.xlu1 %3047, %v2169_v54   ;;  %v2181_v54 = vld [vmem:[#allocation3 + $0x48] sm:$0xff] }
 0xa4b   : > { %2260 = vperm.xlu1 %3047, %v2170_v44   ;;  %v2182_v44 = vld [vmem:[#allocation3 + $0x50] sm:$0xff] }
 0xa4f   : > { %2265 = vperm.xlu1 %3047, %v2171_v39  }
 0xa53   : > { %2346 = vperm.xlu1 %3047, %v2299_v61  }
 0xa62   : > { %v2302_v0 = vpop.permute.xlu1 %2301 }
 0xa63   : > { %vm2348_vm12 = vcmp.eq.s32.totalorder %v2302_v0, 1 }
 0xa66   : > { %v2305_v53 = vpop.permute.xlu1 %2304 }
 0xa67   : > { %vm2349_vm7 = vcmp.eq.s32.totalorder %v2305_v53, 1  ;;  %v2183_v53 = vld [vmem:[#allocation3 + $0x58] sm:$0xff] }
 0xa6a   : > { %v2308_v3 = vpop.permute.xlu1 %2307 }
 0xa6b   : > { %vm2350_vm15 = vcmp.eq.s32.totalorder %v2308_v3, 1 }
 0xa6c   : > { %v2191_v63 = vpop.permute.xlu0 %2190 }
 0xa6d   : > { %v2268_v46 = vmul.f32 %v2191_v63, %v2172_v24  ;;  %v2184_v24 = vld [vmem:[#allocation3 + $0x60] sm:$0xff] }
 0xa6e   : > { %v2311_v30 = vpop.permute.xlu1 %2310 }
 0xa6f   : > { %v2364_v38 = vsel %vm2348_vm12, %v2268_v46, %v3494_v4  ;;  %vm2351_vm3 = vcmp.eq.s32.totalorder %v2311_v30, 1 }
 0xa70   : > { %2380 = vst [vmem:[#allocation13] sm:$0xff] %v2364_v38 }
 0xa72   : > { %v2196_v23 = vpop.permute.xlu1 %2195 }
 0xa73   : > { %v2269_v29 = vmul.f32 %v2196_v23, %v2173_v25 }
 0xa75   : > { %v2365_v34 = vsel %vm2349_vm7, %v2269_v29, %v3497_v5  ;;  %v2186_v29 = vld [vmem:[#allocation3 + $0x70] sm:$0xff] }
 0xa76   : > { %2381 = vst [vmem:[#allocation13 + $0x8] sm:$0xff] %v2365_v34  ;;  %v2314_v26 = vpop.permute.xlu1 %2313 }
 0xa77   : > { %vm2352_vm8 = vcmp.eq.s32.totalorder %v2314_v26, 1 }
 0xa7a   : > { %v2201_v1 = vpop.permute.xlu1 %2200 }
 0xa7b   : > { %v2270_v57 = vmul.f32 %v2201_v1, %v2174_v2 }
 0xa7d   : > { %v2366_v58 = vsel %vm2350_vm15, %v2270_v57, %v3499_v6 }
 0xa7e   : > { %2382 = vst [vmem:[#allocation13 + $0x10] sm:$0xff] %v2366_v58  ;;  %v2317_v36 = vpop.permute.xlu1 %2316  ;;  %v2187_v58 = vld [vmem:[#allocation3 + $0x78] sm:$0xff] }
 0xa7f   : > { %vm2353_vm6 = vcmp.eq.s32.totalorder %v2317_v36, 1 }
 0xa82   : > { %v2206_v50 = vpop.permute.xlu1 %2205 }
 0xa83   : > { %v2271_v4 = vmul.f32 %v2206_v50, %v2175_v49 }
 0xa85   : > { %v2367_v35 = vsel %vm2351_vm3, %v2271_v4, %v3501_v7 }
 0xa86   : > { %2383 = vst [vmem:[#allocation13 + $0x18] sm:$0xff] %v2367_v35  ;;  %v2320_v27 = vpop.permute.xlu1 %2319 }
 0xa87   : > { %vm2354_vm5 = vcmp.eq.s32.totalorder %v2320_v27, 1 }
 0xa8a   : > { %v2211_v5 = vpop.permute.xlu1 %2210 }
 0xa8b   : > { %v2272_v47 = vmul.f32 %v2211_v5, %v2176_v51 }
 0xa8d   : > { %v2368_v43 = vsel %vm2352_vm8, %v2272_v47, %v3504_v8 }
 0xa8e   : > { %2384 = vst [vmem:[#allocation13 + $0x20] sm:$0xff] %v2368_v43  ;;  %v2323_v37 = vpop.permute.xlu1 %2322 }
 0xa8f   : > { %vm2355_vm4 = vcmp.eq.s32.totalorder %v2323_v37, 1 }
 0xa92   : > { %v2216_v6 = vpop.permute.xlu1 %2215  ;;  %v2338_v63 = vpop.permute.xlu0 %2337 }
 0xa93   : > { %v2273_v17 = vmul.f32 %v2216_v6, %v2177_v48  ;;  %vm2360_vm13 = vcmp.eq.s32.totalorder %v2338_v63, 1 }
 0xa95   : > { %v2369_v55 = vsel %vm2353_vm6, %v2273_v17, %v3506_v9 }
 0xa96   : > { %2385 = vst [vmem:[#allocation13 + $0x28] sm:$0xff] %v2369_v55  ;;  %v2326_v62 = vpop.permute.xlu1 %2325 }
 0xa97   : > { %vm2356_vm14 = vcmp.eq.s32.totalorder %v2326_v62, 1 }
 0xa9a   : > { %v2221_v7 = vpop.permute.xlu1 %2220  ;;  %v2344_v34 = vpop.permute.xlu0 %2343 }
 0xa9b   : > { %v2274_v22 = vmul.f32 %v2221_v7, %v2178_v33  ;;  %vm2362_vm9 = vcmp.eq.s32.totalorder %v2344_v34, 1 }
 0xa9d   : > { %v2370_v41 = vsel %vm2354_vm5, %v2274_v22, %v3508_v10 }
 0xa9e   : > { %2386 = vst [vmem:[#allocation13 + $0x30] sm:$0xff] %v2370_v41  ;;  %v2329_v59 = vpop.permute.xlu1 %2328 }
 0xa9f   : > { %vm2357_vm2 = vcmp.eq.s32.totalorder %v2329_v59, 1 }
 0xaa2   : > { %v2226_v8 = vpop.permute.xlu1 %2225 }
 0xaa3   : > { %v2275_v40 = vmul.f32 %v2226_v8, %v2179_v31 }
 0xaa5   : > { %v2371_v52 = vsel %vm2355_vm4, %v2275_v40, %v3510_v11 }
 0xaa6   : > { %2387 = vst [vmem:[#allocation13 + $0x38] sm:$0xff] %v2371_v52  ;;  %v2332_v28 = vpop.permute.xlu1 %2331 }
 0xaa7   : > { %vm2358_vm10 = vcmp.eq.s32.totalorder %v2332_v28, 1 }
 0xaaa   : > { %v2231_v9 = vpop.permute.xlu1 %2230 }
 0xaab   : > { %v2276_v42 = vmul.f32 %v2231_v9, %v2180_v60 }
 0xaad   : > { %v2372_v45 = vsel %vm2356_vm14, %v2276_v42, %v3512_v12 }
 0xaae   : > { %2388 = vst [vmem:[#allocation13 + $0x40] sm:$0xff] %v2372_v45  ;;  %v2335_v56 = vpop.permute.xlu1 %2334 }
 0xaaf   : > { %vm2359_vm0 = vcmp.eq.s32.totalorder %v2335_v56, 1 }
 0xab2   : > { %v2236_v10 = vpop.permute.xlu1 %2235 }
 0xab3   : > { %v2277_v18 = vmul.f32 %v2236_v10, %v2181_v54 }
 0xab5   : > { %v2373_v32 = vsel %vm2357_vm2, %v2277_v18, %v3514_v13  ;;  %v2185_v13 = vld [vmem:[#allocation3 + $0x68] sm:$0xff] }
 0xab6   : > { %2389 = vst [vmem:[#allocation13 + $0x48] sm:$0xff] %v2373_v32  ;;  %v2241_v39 = vpop.permute.xlu1 %2240 }
 0xab7   : > { %v2278_v11 = vmul.f32 %v2241_v39, %v2182_v44 }
 0xab9   : > { %v2374_v61 = vsel %vm2358_vm10, %v2278_v11, %v3520_v14 }
 0xaba   : > { %2390 = vst [vmem:[#allocation13 + $0x50] sm:$0xff] %v2374_v61  ;;  %v2341_v0 = vpop.permute.xlu1 %2340 }
 0xabb   : > { %vm2361_vm11 = vcmp.eq.s32.totalorder %v2341_v0, 1 }
 0xabe   : > { %v2246_v3 = vpop.permute.xlu1 %2245 }
 0xabf   : > { %v2279_v12 = vmul.f32 %v2246_v3, %v2183_v53 }
 0xac1   : > { %v2375_v46 = vsel %vm2359_vm0, %v2279_v12, %v3522_v15 }
 0xac2   : > { %2391 = vst [vmem:[#allocation13 + $0x58] sm:$0xff] %v2375_v46  ;;  %v2251_v30 = vpop.permute.xlu1 %2250 }
 0xac3   : > { %v2280_v38 = vmul.f32 %v2251_v30, %v2184_v24 }
 0xac5   : > { %v2376_v25 = vsel %vm2360_vm13, %v2280_v38, %v3524_v16 }
 0xac6   : > { %2392 = vst [vmem:[#allocation13 + $0x60] sm:$0xff] %v2376_v25  ;;  %v2256_v23 = vpop.permute.xlu1 %2255 }
 0xac7   : > { %v2281_v14 = vmul.f32 %v2256_v23, %v2185_v13 }
 0xac9   : > { %v2377_v26 = vsel %vm2361_vm11, %v2281_v14, %v3531_v19 }
 0xaca   : > { %2393 = vst [vmem:[#allocation13 + $0x68] sm:$0xff] %v2377_v26  ;;  %v2261_v2 = vpop.permute.xlu1 %2260 }
 0xacb   : > { %v2282_v1 = vmul.f32 %v2261_v2, %v2186_v29 }
 0xacd   : > { %v2378_v15 = vsel %vm2362_vm9, %v2282_v1, %v3533_v20 }
 0xace   : > { %2394 = vst [vmem:[#allocation13 + $0x70] sm:$0xff] %v2378_v15  ;;  %v2266_v57 = vpop.permute.xlu1 %2265 }
 0xacf   : > { %v2283_v36 = vmul.f32 %v2266_v57, %v2187_v58 }
 0xad2   : > { %v2347_v49 = vpop.permute.xlu1 %2346 }
 0xad3   : > { %vm2363_vm1 = vcmp.eq.s32.totalorder %v2347_v49, 1 }
 0xad4   : > { %v2379_v16 = vsel %vm2363_vm1, %v2283_v36, %v3535_v21 }
 0xad5   : > { %2395 = vst [vmem:[#allocation13 + $0x78] sm:$0xff] %v2379_v16 }
 0xad6 PF: > { %s4518_s15 = sadd.s32 4294967295, %s3255_s19   ;;  %s3268_s8 = smov [#allocation13]  }
 0xad7   : > { %p4417_p12 = scmp.eq.s32.totalorder %s4518_s15, 3  ;;  %s2405_s6 = sshll.u32 %s3268_s8, 4  ;;  %s2406_s6 = int_to_ptr.vmem [resolvable:$true] %s2405_s6 }
 0xad8   : > { %s3151_s28 = scalar_lea.vmem %s2406_s6, 2048  ;;  %p3158_p5 = scmp.lt.s32.totalorder %s2406_s6, %s2406_s6 }
 0xad9   : > { %p3152_p13 = scmp.ne.s32.totalorder %s2406_s6, %s3151_s28  ;;  %p3159_p10 = scmp.lt.s32.totalorder %s3151_s28, %s3151_s28 }
 0xadb   : > { %p3153_p2 = pnand %p3152_p13, %p4417_p12  ;;  %p3160_p1 = por %p3159_p10, %p3158_p5 }
 0xadd   : > { %p3154_p4 = pneg %p3153_p2 }
 0xadf   : > { %p3161_p8 = pnand %p3160_p1, %p3154_p4 }
 0xae1   : > { %3164 = shalt.err (!%p3161_p8)
}
 0xae2   : > { %s3165_s27 = scalar_lea.hbm %s4470_s3, 2048 }
 0xae3   : > { %p3166_p11 = scmp.ne.s32.totalorder %s4470_s3, %s3165_s27  ;;  %p3171_p3 = scmp.lt.u32.totalorder %s3165_s27, %s4470_s3 }
 0xae5   : > { %p3167_p7 = pnand %p3166_p11, %p4417_p12 }
 0xae7   : > { %p3168_p9 = pneg %p3167_p7 }
 0xae9   : > { %p3173_p6 = pnand %p3171_p3, %p3168_p9 }
 0xaeb   : > { %3176 = shalt.err (!%p3173_p6)
}
 0xaec   : > { %s3269_s21 = smov 128   ;;  %s3270_s22 = smov 8  }
 0xaed   : > { %2866 = dma.vmem_to_hbm [thread:$0]  (%p4417_p12), %s2406_s6, 2048, %s4470_s3, [#allocation8], %s3269_s21, %s3269_s21, %s3270_s22  }
 0xaee   : > { %3222 = dma.done.wait (%p4417_p12), [#allocation8], 2048  }
 0xaef   : > { %3224 = vsyncadd (%p4417_p12), [#allocation8], 4294965248 }
 0xaf0 PF: > { %s19_s19 = sadd.s32 1, %s3255_s19   ;;  %s4520_s12 = smov %s3231_s13 }
 0xaf1   : > { %p16_p0 = scmp.ge.s32.totalorder %s19_s19, 6   ;;  %s4521_s13 = smov %s3235_s14 }
 0xaf2   : > { %s4522_s14 = smov %s3427_s30  ;;  %s4523_s15 = smov %s3247_s17 }
 0xaf3   : > { %s4524_s16 = smov %s3251_s18  ;;  %s4525_s17 = smov %s4528_s10 }
 0xaf4   : > { %s4526_s18 = smov %s4532_s11  ;;  %18 = sbr.rel (!%p16_p0) target bundleno = 8 (0x8), region = 100 }
 0xafb   :  { %2421 = vsyncpa [#allocation7], 1 }
 0xafc   :  { %2423 = vsyncpa [#allocation7 + $0x1], 1 }
 0xafd   :  { %2424 = vsyncpa [#allocation12], 1 }
 0xafe   :  { %2425 = vsyncpa [#allocation8], 1 }
 0xaff   :  { %2427 = vsyncpa [#allocation8 + $0x1], 1 }
 0xb00   :  { %2428 = vsyncpa [#allocation9], 1 }
 0xb01   :  { %2430 = vsyncpa [#allocation9 + $0x1], 1 }

</bundles_post_ra>
